<compile_context>
chip_gen: v7x
topology: tpu7x:2x2x1
jax: 0.10.0
libtpu: 0.0.40
codegen_flags: <defaults>
</compile_context>

<pallas_src>
import math

import jax
import jax.numpy as jnp
from jax import lax
from jax.experimental import pallas as pl
from jax.experimental.pallas import tpu as pltpu

ATOM = 34        # atom_dim
ATOM_PAD = 64    # lane-aligned padding of the atom feature axis
HID = 64         # hid_dim
PF = 256         # pf_dim
HEADS = 8        # n_heads
DH = HID // HEADS
LAYERS = 3       # n_layers
EPS = 1e-5       # nn.LayerNorm default eps
FC2_PAD = 128    # lane-dense padding for the [256, 1] fc_2 projection

_BF16 = jnp.bfloat16


def _vmem_specs(n):
    return [pl.BlockSpec(memory_space=pltpu.MemorySpace.VMEM) for _ in range(n)]


_OUT_SPEC = pl.BlockSpec(memory_space=pltpu.MemorySpace.VMEM)


# ----------------------------------------------------------------------------
# Single fused kernel: whole Decoder forward
# ----------------------------------------------------------------------------
def _decoder_kernel(trg_ref, src_ref, mask_s_ref, mask_c_ref,
                    ft_w_ref, ft_b_ref,
                    sa_wqkv_ref, sa_bqkv_ref, sa_wo_ref, sa_bo_ref,
                    ea_wq_ref, ea_bq_ref, ea_wkv_ref, ea_bkv_ref,
                    ea_wo_ref, ea_bo_ref,
                    pf_w1_ref, pf_b1_ref, pf_w2_ref, pf_b2_ref,
                    ln_g_ref, ln_b_ref,
                    fc1_w_ref, fc1_b_ref, fc2_w_ref, fc2_b_ref,
                    out_ref):
    n = trg_ref.shape[0]
    inv_scale = 1.0 / math.sqrt(DH)    # matches sqrt(hid_dim // n_heads)

    def layer_norm(z, g_b, b_b):
        mu = jnp.mean(z, axis=-1, keepdims=True)
        d = z - mu
        var = jnp.mean(d * d, axis=-1, keepdims=True)
        return d * lax.rsqrt(var + EPS) * g_b + b_b

    def block_diag(kv, mask_bf):
        # kv: [M, HID] f32 -> block-diagonal [HEADS*M, HID] bf16 where block h
        # keeps only head h's DH columns (rows h*M..(h+1)*M).
        tiled = jnp.concatenate([kv.astype(_BF16)] * HEADS, axis=0)
        return tiled * mask_bf

    def attention(q, k, v, mask_bf, wo, bo):
        # q: [N, HID] f32; k, v: [M, HID] f32; mask_bf: [HEADS*M, HID] bf16.
        kbd = block_diag(k, mask_bf)                       # [H*M, HID] bf16
        vbd = block_diag(v, mask_bf)                       # [H*M, HID] bf16
        # One MXU call: lane-dense per-head energies [N, HEADS*M].
        energy = lax.dot_general(
            q.astype(_BF16), kbd, (((1,), (1,)), ((), ())),
            preferred_element_type=jnp.float32) * inv_scale
        # Per-row (all-heads) max shift: exact for per-head softmax.
        e = jnp.exp(energy - jnp.max(energy, axis=-1, keepdims=True))
        e_bf = e.astype(_BF16)
        # Unnormalized per-head contexts, already concatenated head-major.
        unnorm = jnp.dot(e_bf, vbd, preferred_element_type=jnp.float32)
        # Per-head softmax denominators, broadcast DH-wide via the mask matmul.
        denom = jnp.dot(e_bf, mask_bf, preferred_element_type=jnp.float32)
        ctx = unnorm * pl.reciprocal(jnp.maximum(denom, 1e-20), approx=True)
        return jnp.dot(ctx.astype(_BF16), wo,
                       preferred_element_type=jnp.float32) + bo

    mask_s = mask_s_ref[...]           # [HEADS*n, HID] bf16 (self-attn)
    mask_c = mask_c_ref[...]           # [HEADS*m, HID] bf16 (cross-attn)

    # --- self.ft : Linear(atom_dim, hid_dim) (atom axis zero-padded to 64) --
    x = (jnp.dot(trg_ref[...].astype(_BF16), ft_w_ref[...],
                 preferred_element_type=jnp.float32) + ft_b_ref[...])
    src_bf = src_ref[...].astype(_BF16)

    # --- cross-attention K/V for ALL layers, hoisted (src is loop-invariant) -
    kv_all = (jnp.dot(src_bf, ea_wkv_ref[...],
                      preferred_element_type=jnp.float32) + ea_bkv_ref[...])

    # --- 3 decoder layers, statically unrolled ------------------------------
    for l in range(LAYERS):
        # per-layer shared LayerNorm params; broadcast hoisted once per layer
        g_b = jnp.broadcast_to(ln_g_ref[l], (n, HID))
        b_b = jnp.broadcast_to(ln_b_ref[l], (n, HID))

        # self-attention with fused QKV projection
        qkv = (jnp.dot(x.astype(_BF16), sa_wqkv_ref[l],
                       preferred_element_type=jnp.float32) + sa_bqkv_ref[l])
        sa_out = attention(qkv[:, 0:HID], qkv[:, HID:2 * HID],
                           qkv[:, 2 * HID:3 * HID],
                           mask_s, sa_wo_ref[l], sa_bo_ref[l])
        x = layer_norm(x + sa_out, g_b, b_b)

        # cross-attention: Q from trg; K/V pre-computed in kv_all
        q_c = (jnp.dot(x.astype(_BF16), ea_wq_ref[l],
                       preferred_element_type=jnp.float32) + ea_bq_ref[l])
        off = l * 2 * HID
        ea_out = attention(q_c, kv_all[:, off:off + HID],
                           kv_all[:, off + HID:off + 2 * HID],
                           mask_c, ea_wo_ref[l], ea_bo_ref[l])
        x = layer_norm(x + ea_out, g_b, b_b)

        # position-wise feed-forward (Conv1d k=1 -> ReLU -> Conv1d k=1)
        h1 = (jnp.dot(x.astype(_BF16), pf_w1_ref[l],
                      preferred_element_type=jnp.float32) + pf_b1_ref[l])
        h1 = jnp.maximum(h1, 0.0)
        ff = (jnp.dot(h1.astype(_BF16), pf_w2_ref[l],
                      preferred_element_type=jnp.float32) + pf_b2_ref[l])
        x = layer_norm(x + ff, g_b, b_b)

    # --- head: norm-softmax per-atom weighting + fc_1(ReLU) + fc_2 ----------
    nrm = jnp.sqrt(jnp.sum(x * x, axis=-1, keepdims=True))       # [N, 1]
    mx = jnp.max(nrm, axis=0, keepdims=True)
    e = jnp.exp(nrm - mx)
    a = e * pl.reciprocal(jnp.sum(e, axis=0, keepdims=True), approx=True)
    scaled = a * x                                               # [N, HID]
    h = (jnp.dot(scaled.astype(_BF16), fc1_w_ref[...],
                 preferred_element_type=jnp.float32) + fc1_b_ref[...])
    h = jnp.maximum(h, 0.0)
    # fc_2 weight/bias are zero-padded to 128 lanes -> lane-dense store
    out_ref[...] = (jnp.dot(h.astype(_BF16), fc2_w_ref[...],
                            preferred_element_type=jnp.float32)
                    + fc2_b_ref[...])


_ARG_ORDER = ["ft_w", "ft_b",
              "sa_wqkv", "sa_bqkv", "sa_wo", "sa_bo",
              "ea_wq", "ea_bq", "ea_wkv", "ea_bkv", "ea_wo", "ea_bo",
              "pf_w1", "pf_b1", "pf_w2", "pf_b2", "ln_g", "ln_b",
              "fc1_w", "fc1_b", "fc2_w", "fc2_b"]


def _head_mask(m_len):
    """Block-diagonal head-membership mask [HEADS*m_len, HID] in bf16."""
    rows = jnp.arange(HEADS * m_len, dtype=jnp.int32)[:, None] // m_len
    cols = jnp.arange(HID, dtype=jnp.int32)[None, :] // DH
    return (rows == cols).astype(_BF16)


def _cost_estimate(n, m, args):
    mm = lambda a, k, b: 2 * a * k * b
    per_layer = (mm(n, HID, 3 * HID)              # fused self QKV
                 + mm(n, HID, HEADS * n)          # self energy
                 + 2 * mm(n, HEADS * n, HID)      # self ctx + denom
                 + mm(n, HID, HID)                # self Wo
                 + mm(n, HID, HID)                # cross Q
                 + mm(n, HID, HEADS * m)          # cross energy
                 + 2 * mm(n, HEADS * m, HID)      # cross ctx + denom
                 + mm(n, HID, HID)                # cross Wo
                 + mm(n, HID, PF) + mm(n, PF, HID))
    flops = (mm(n, ATOM_PAD, HID) + mm(m, HID, LAYERS * 2 * HID)
             + LAYERS * per_layer + mm(n, HID, 256) + mm(n, 256, FC2_PAD))
    transcendentals = LAYERS * n * HEADS * (n + m) + 10 * n
    bytes_accessed = (sum(int(a.size) * a.dtype.itemsize for a in args)
                      + n * FC2_PAD * 4)
    return pl.CostEstimate(flops=flops, transcendentals=transcendentals,
                           bytes_accessed=bytes_accessed)


def decoder_forward(trg, src, packed):
    """trg: [N, ATOM], src: [M, HID]  ->  label: [N, 1]."""
    n, m = trg.shape[0], src.shape[0]
    trg_p = jnp.pad(trg, ((0, 0), (0, ATOM_PAD - ATOM)))   # lane-align K dim
    mask_s = _head_mask(n)
    mask_c = _head_mask(m)
    args = [trg_p, src, mask_s, mask_c] + [packed[k] for k in _ARG_ORDER]
    out = pl.pallas_call(
        _decoder_kernel,
        out_shape=jax.ShapeDtypeStruct((n, FC2_PAD), jnp.float32),
        in_specs=_vmem_specs(len(args)),
        out_specs=_OUT_SPEC,
        cost_estimate=_cost_estimate(n, m, args),
    )(*args)
    return out[:, :1]


# ----------------------------------------------------------------------------
# Parameter packing: natural (PyTorch-like) layout -> fused/stacked/padded/bf16
# ----------------------------------------------------------------------------
def pack_params(p):
    def stack(fn):
        return jnp.stack([fn(lp) for lp in p["layers"]], axis=0)

    return dict(
        # ft: pad atom rows 34 -> 64 (zero rows contribute nothing)
        ft_w=jnp.pad(p["ft_w"], ((0, ATOM_PAD - ATOM), (0, 0))).astype(_BF16),
        ft_b=p["ft_b"],
        # self-attention: fuse w_q|w_k|w_v -> [HID, 3*HID]
        sa_wqkv=stack(lambda lp: jnp.concatenate(
            [lp["sa"]["wq"], lp["sa"]["wk"], lp["sa"]["wv"]], axis=1)).astype(_BF16),
        sa_bqkv=stack(lambda lp: jnp.concatenate(
            [lp["sa"]["bq"], lp["sa"]["bk"], lp["sa"]["bv"]], axis=1)),
        sa_wo=stack(lambda lp: lp["sa"]["wo"]).astype(_BF16),
        sa_bo=stack(lambda lp: lp["sa"]["bo"]),
        # cross-attention: Q alone; K/V of ALL layers fused -> [HID, 6*HID]
        ea_wq=stack(lambda lp: lp["ea"]["wq"]).astype(_BF16),
        ea_bq=stack(lambda lp: lp["ea"]["bq"]),
        ea_wkv=jnp.concatenate(
            [jnp.concatenate([lp["ea"]["wk"], lp["ea"]["wv"]], axis=1)
             for lp in p["layers"]], axis=1).astype(_BF16),
        ea_bkv=jnp.concatenate(
            [jnp.concatenate([lp["ea"]["bk"], lp["ea"]["bv"]], axis=1)
             for lp in p["layers"]], axis=1),
        ea_wo=stack(lambda lp: lp["ea"]["wo"]).astype(_BF16),
        ea_bo=stack(lambda lp: lp["ea"]["bo"]),
        pf_w1=stack(lambda lp: lp["pf_w1"]).astype(_BF16),
        pf_b1=stack(lambda lp: lp["pf_b1"]),
        pf_w2=stack(lambda lp: lp["pf_w2"]).astype(_BF16),
        pf_b2=stack(lambda lp: lp["pf_b2"]),
        ln_g=stack(lambda lp: lp["ln_g"]),
        ln_b=stack(lambda lp: lp["ln_b"]),
        fc1_w=p["fc1_w"].astype(_BF16),
        fc1_b=p["fc1_b"],
        # pad fc_2 from [256, 1] to [256, 128] (zero cols) for lane-dense store
        fc2_w=jnp.pad(p["fc2_w"], ((0, 0), (0, FC2_PAD - 1))).astype(_BF16),
        fc2_b=jnp.pad(p["fc2_b"], ((0, 0), (0, FC2_PAD - 1))),
    )


# ----------------------------------------------------------------------------
# Deterministic synthetic parameter init (natural PyTorch-equivalent layout)
# ----------------------------------------------------------------------------
def _init_linear(key, din, dout, scale=0.05):
    kw, kb = jax.random.split(key)
    w = jax.random.normal(kw, (din, dout), jnp.float32) * scale
    b = jax.random.normal(kb, (1, dout), jnp.float32) * scale
    return w, b


def _init_attn(key):
    ks = jax.random.split(key, 4)
    wq, bq = _init_linear(ks[0], HID, HID)
    wk, bk = _init_linear(ks[1], HID, HID)
    wv, bv = _init_linear(ks[2], HID, HID)
    wo, bo = _init_linear(ks[3], HID, HID)
    return dict(wq=wq, bq=bq, wk=wk, bk=bk, wv=wv, bv=bv, wo=wo, bo=bo)


def init_params(key):
    keys = jax.random.split(key, 4 + LAYERS)
    ft_w, ft_b = _init_linear(keys[0], ATOM, HID)
    fc1_w, fc1_b = _init_linear(keys[1], HID, 256)
    fc2_w, fc2_b = _init_linear(keys[2], 256, 1)
    layers = []
    for i in range(LAYERS):
        lk = jax.random.split(keys[4 + i], 4)
        w1, b1 = _init_linear(lk[0], HID, PF)   # Conv1d(hid, pf, 1)
        w2, b2 = _init_linear(lk[1], PF, HID)   # Conv1d(pf, hid, 1)
        layers.append(dict(
            sa=_init_attn(lk[2]),
            ea=_init_attn(lk[3]),
            pf_w1=w1, pf_b1=b1, pf_w2=w2, pf_b2=b2,
            ln_g=jnp.ones((1, HID), jnp.float32),
            ln_b=jnp.zeros((1, HID), jnp.float32),
        ))
    return dict(ft_w=ft_w, ft_b=ft_b, fc1_w=fc1_w, fc1_b=fc1_b,
                fc2_w=fc2_w, fc2_b=fc2_b, layers=layers)


if __name__ == "__main__":
    key = jax.random.PRNGKey(0)
    k_trg, k_src, k_par = jax.random.split(key, 3)

    B, N_ATOMS, M_SRC = 1, 8, 16          # module squeezes batch dim -> B must be 1
    trg = jax.random.normal(k_trg, (B, N_ATOMS, ATOM), jnp.float32)
    src = jax.random.normal(k_src, (B, M_SRC, HID), jnp.float32)

    params = init_params(k_par)
    packed = pack_params(params)          # packed once, outside jit

    fwd = jax.jit(decoder_forward)
    out = fwd(trg[0], src[0], packed)     # [N_ATOMS, 1]
    jax.block_until_ready(out)

    assert out.shape == (N_ATOMS, 1) and out.dtype == jnp.float32
    assert bool(jnp.all(jnp.isfinite(out)))
    print("KERNEL_OK")
</pallas_src>

<mosaic_0001>
module attributes {stable_mosaic.version = 11 : i64} {
  func.func @_decoder_kernel(%arg0: memref<8x64xf32, #tpu.memory_space<vmem>>, %arg1: memref<16x64xf32, #tpu.memory_space<vmem>>, %arg2: memref<64x64xbf16, #tpu.memory_space<vmem>>, %arg3: memref<128x64xbf16, #tpu.memory_space<vmem>>, %arg4: memref<64x64xbf16, #tpu.memory_space<vmem>>, %arg5: memref<1x64xf32, #tpu.memory_space<vmem>>, %arg6: memref<3x64x192xbf16, #tpu.memory_space<vmem>>, %arg7: memref<3x1x192xf32, #tpu.memory_space<vmem>>, %arg8: memref<3x64x64xbf16, #tpu.memory_space<vmem>>, %arg9: memref<3x1x64xf32, #tpu.memory_space<vmem>>, %arg10: memref<3x64x64xbf16, #tpu.memory_space<vmem>>, %arg11: memref<3x1x64xf32, #tpu.memory_space<vmem>>, %arg12: memref<64x384xbf16, #tpu.memory_space<vmem>>, %arg13: memref<1x384xf32, #tpu.memory_space<vmem>>, %arg14: memref<3x64x64xbf16, #tpu.memory_space<vmem>>, %arg15: memref<3x1x64xf32, #tpu.memory_space<vmem>>, %arg16: memref<3x64x256xbf16, #tpu.memory_space<vmem>>, %arg17: memref<3x1x256xf32, #tpu.memory_space<vmem>>, %arg18: memref<3x256x64xbf16, #tpu.memory_space<vmem>>, %arg19: memref<3x1x64xf32, #tpu.memory_space<vmem>>, %arg20: memref<3x1x64xf32, #tpu.memory_space<vmem>>, %arg21: memref<3x1x64xf32, #tpu.memory_space<vmem>>, %arg22: memref<64x256xbf16, #tpu.memory_space<vmem>>, %arg23: memref<1x256xf32, #tpu.memory_space<vmem>>, %arg24: memref<256x128xbf16, #tpu.memory_space<vmem>>, %arg25: memref<1x128xf32, #tpu.memory_space<vmem>>, %arg26: memref<8x128xf32, #tpu.memory_space<vmem>>) attributes {dimension_semantics = [], scalar_prefetch = 0 : i64, scratch_operands = 0 : i64, tpu.core_type = #tpu.core_type<tc>} {
    %c0 = arith.constant 0 : index
    %c0_0 = arith.constant 0 : index
    %0 = vector.load %arg2[%c0, %c0_0] : memref<64x64xbf16, #tpu.memory_space<vmem>>, vector<64x64xbf16>
    %c0_1 = arith.constant 0 : index
    %c0_2 = arith.constant 0 : index
    %1 = vector.load %arg3[%c0_1, %c0_2] : memref<128x64xbf16, #tpu.memory_space<vmem>>, vector<128x64xbf16>
    %c0_3 = arith.constant 0 : index
    %c0_4 = arith.constant 0 : index
    %2 = vector.load %arg0[%c0_3, %c0_4] : memref<8x64xf32, #tpu.memory_space<vmem>>, vector<8x64xf32>
    %3 = arith.truncf %2 : vector<8x64xf32> to vector<8x64xbf16>
    %c0_5 = arith.constant 0 : index
    %c0_6 = arith.constant 0 : index
    %4 = vector.load %arg4[%c0_5, %c0_6] : memref<64x64xbf16, #tpu.memory_space<vmem>>, vector<64x64xbf16>
    %cst = arith.constant dense<0.000000e+00> : vector<8x64xf32>
    %5 = tpu.matmul %3, %4, %cst {dimension_numbers = #tpu.dot_dimension_numbers<[1], [0], [0], [1], [0, 0, 1, 1], [], []>} : vector<8x64xbf16>, vector<64x64xbf16>, vector<8x64xf32> -> vector<8x64xf32>
    %c0_7 = arith.constant 0 : index
    %c0_8 = arith.constant 0 : index
    %6 = vector.load %arg5[%c0_7, %c0_8] : memref<1x64xf32, #tpu.memory_space<vmem>>, vector<1x64xf32>
    %7 = vector.broadcast %6 : vector<1x64xf32> to vector<8x64xf32>
    %8 = arith.addf %5, %7 : vector<8x64xf32>
    %c0_9 = arith.constant 0 : index
    %c0_10 = arith.constant 0 : index
    %9 = vector.load %arg1[%c0_9, %c0_10] : memref<16x64xf32, #tpu.memory_space<vmem>>, vector<16x64xf32>
    %10 = arith.truncf %9 : vector<16x64xf32> to vector<16x64xbf16>
    %c0_11 = arith.constant 0 : index
    %c0_12 = arith.constant 0 : index
    %11 = vector.load %arg12[%c0_11, %c0_12] : memref<64x384xbf16, #tpu.memory_space<vmem>>, vector<64x384xbf16>
    %cst_13 = arith.constant dense<0.000000e+00> : vector<16x384xf32>
    %12 = tpu.matmul %10, %11, %cst_13 {dimension_numbers = #tpu.dot_dimension_numbers<[1], [0], [0], [1], [0, 0, 1, 1], [], []>} : vector<16x64xbf16>, vector<64x384xbf16>, vector<16x384xf32> -> vector<16x384xf32>
    %c0_14 = arith.constant 0 : index
    %c0_15 = arith.constant 0 : index
    %13 = vector.load %arg13[%c0_14, %c0_15] : memref<1x384xf32, #tpu.memory_space<vmem>>, vector<1x384xf32>
    %14 = vector.broadcast %13 : vector<1x384xf32> to vector<16x384xf32>
    %15 = arith.addf %12, %14 : vector<16x384xf32>
    %c0_16 = arith.constant 0 : index
    %c0_17 = arith.constant 0 : index
    %c0_18 = arith.constant 0 : index
    %16 = vector.load %arg20[%c0_16, %c0_17, %c0_18] : memref<3x1x64xf32, #tpu.memory_space<vmem>>, vector<1x1x64xf32>
    %17 = vector.shape_cast %16 : vector<1x1x64xf32> to vector<1x64xf32>
    %18 = vector.shape_cast %17 : vector<1x64xf32> to vector<1x64xf32>
    %19 = vector.broadcast %18 : vector<1x64xf32> to vector<8x64xf32>
    %c0_19 = arith.constant 0 : index
    %c0_20 = arith.constant 0 : index
    %c0_21 = arith.constant 0 : index
    %20 = vector.load %arg21[%c0_19, %c0_20, %c0_21] : memref<3x1x64xf32, #tpu.memory_space<vmem>>, vector<1x1x64xf32>
    %21 = vector.shape_cast %20 : vector<1x1x64xf32> to vector<1x64xf32>
    %22 = vector.shape_cast %21 : vector<1x64xf32> to vector<1x64xf32>
    %23 = vector.broadcast %22 : vector<1x64xf32> to vector<8x64xf32>
    %24 = arith.truncf %8 : vector<8x64xf32> to vector<8x64xbf16>
    %c0_22 = arith.constant 0 : index
    %c0_23 = arith.constant 0 : index
    %c0_24 = arith.constant 0 : index
    %25 = vector.load %arg6[%c0_22, %c0_23, %c0_24] : memref<3x64x192xbf16, #tpu.memory_space<vmem>>, vector<1x64x192xbf16>
    %26 = vector.shape_cast %25 : vector<1x64x192xbf16> to vector<64x192xbf16>
    %cst_25 = arith.constant dense<0.000000e+00> : vector<8x192xf32>
    %27 = tpu.matmul %24, %26, %cst_25 {dimension_numbers = #tpu.dot_dimension_numbers<[1], [0], [0], [1], [0, 0, 1, 1], [], []>} : vector<8x64xbf16>, vector<64x192xbf16>, vector<8x192xf32> -> vector<8x192xf32>
    %c0_26 = arith.constant 0 : index
    %c0_27 = arith.constant 0 : index
    %c0_28 = arith.constant 0 : index
    %28 = vector.load %arg7[%c0_26, %c0_27, %c0_28] : memref<3x1x192xf32, #tpu.memory_space<vmem>>, vector<1x1x192xf32>
    %29 = vector.shape_cast %28 : vector<1x1x192xf32> to vector<1x192xf32>
    %30 = vector.broadcast %29 : vector<1x192xf32> to vector<8x192xf32>
    %31 = arith.addf %27, %30 : vector<8x192xf32>
    %32 = vector.extract_strided_slice %31 {offsets = [0, 0], sizes = [8, 64], strides = [1, 1]} : vector<8x192xf32> to vector<8x64xf32>
    %33 = vector.extract_strided_slice %31 {offsets = [0, 64], sizes = [8, 64], strides = [1, 1]} : vector<8x192xf32> to vector<8x64xf32>
    %34 = vector.extract_strided_slice %31 {offsets = [0, 128], sizes = [8, 64], strides = [1, 1]} : vector<8x192xf32> to vector<8x64xf32>
    %c0_29 = arith.constant 0 : index
    %c0_30 = arith.constant 0 : index
    %c0_31 = arith.constant 0 : index
    %35 = vector.load %arg8[%c0_29, %c0_30, %c0_31] : memref<3x64x64xbf16, #tpu.memory_space<vmem>>, vector<1x64x64xbf16>
    %36 = vector.shape_cast %35 : vector<1x64x64xbf16> to vector<64x64xbf16>
    %c0_32 = arith.constant 0 : index
    %c0_33 = arith.constant 0 : index
    %c0_34 = arith.constant 0 : index
    %37 = vector.load %arg9[%c0_32, %c0_33, %c0_34] : memref<3x1x64xf32, #tpu.memory_space<vmem>>, vector<1x1x64xf32>
    %38 = vector.shape_cast %37 : vector<1x1x64xf32> to vector<1x64xf32>
    %39 = arith.truncf %33 : vector<8x64xf32> to vector<8x64xbf16>
    %40 = tpu.concatenate %39, %39, %39, %39, %39, %39, %39, %39 in 0 : vector<8x64xbf16>, vector<8x64xbf16>, vector<8x64xbf16>, vector<8x64xbf16>, vector<8x64xbf16>, vector<8x64xbf16>, vector<8x64xbf16>, vector<8x64xbf16> -> vector<64x64xbf16>
    %41 = arith.mulf %40, %0 : vector<64x64xbf16>
    %42 = arith.truncf %34 : vector<8x64xf32> to vector<8x64xbf16>
    %43 = tpu.concatenate %42, %42, %42, %42, %42, %42, %42, %42 in 0 : vector<8x64xbf16>, vector<8x64xbf16>, vector<8x64xbf16>, vector<8x64xbf16>, vector<8x64xbf16>, vector<8x64xbf16>, vector<8x64xbf16>, vector<8x64xbf16> -> vector<64x64xbf16>
    %44 = arith.mulf %43, %0 : vector<64x64xbf16>
    %45 = arith.truncf %32 : vector<8x64xf32> to vector<8x64xbf16>
    %cst_35 = arith.constant dense<0.000000e+00> : vector<8x64xf32>
    %46 = tpu.matmul %45, %41, %cst_35 {dimension_numbers = #tpu.dot_dimension_numbers<[1], [1], [0], [0], [0, 0, 1, 0], [], []>} : vector<8x64xbf16>, vector<64x64xbf16>, vector<8x64xf32> -> vector<8x64xf32>
    %cst_36 = arith.constant 0.353553385 : f32
    %47 = vector.broadcast %cst_36 : f32 to vector<8x64xf32>
    %48 = arith.mulf %46, %47 : vector<8x64xf32>
    %cst_37 = arith.constant dense<0xFF800000> : vector<8xf32>
    %49 = vector.multi_reduction <maximumf>, %48, %cst_37 [1] : vector<8x64xf32> to vector<8xf32>
    %50 = vector.shape_cast %49 : vector<8xf32> to vector<8x1xf32>
    %51 = vector.broadcast %50 : vector<8x1xf32> to vector<8x64xf32>
    %52 = arith.subf %48, %51 : vector<8x64xf32>
    %53 = math.exp %52 : vector<8x64xf32>
    %54 = arith.truncf %53 : vector<8x64xf32> to vector<8x64xbf16>
    %cst_38 = arith.constant dense<0.000000e+00> : vector<8x64xf32>
    %55 = tpu.matmul %54, %44, %cst_38 {dimension_numbers = #tpu.dot_dimension_numbers<[1], [0], [0], [1], [0, 0, 1, 1], [], []>} : vector<8x64xbf16>, vector<64x64xbf16>, vector<8x64xf32> -> vector<8x64xf32>
    %cst_39 = arith.constant dense<0.000000e+00> : vector<8x64xf32>
    %56 = tpu.matmul %54, %0, %cst_39 {dimension_numbers = #tpu.dot_dimension_numbers<[1], [0], [0], [1], [0, 0, 1, 1], [], []>} : vector<8x64xbf16>, vector<64x64xbf16>, vector<8x64xf32> -> vector<8x64xf32>
    %cst_40 = arith.constant 9.99999968E-21 : f32
    %57 = vector.broadcast %cst_40 : f32 to vector<8x64xf32>
    %58 = arith.maximumf %56, %57 : vector<8x64xf32>
    %59 = tpu.reciprocal %58 {approx = true} : vector<8x64xf32> -> vector<8x64xf32>
    %60 = arith.mulf %55, %59 : vector<8x64xf32>
    %61 = arith.truncf %60 : vector<8x64xf32> to vector<8x64xbf16>
    %cst_41 = arith.constant dense<0.000000e+00> : vector<8x64xf32>
    %62 = tpu.matmul %61, %36, %cst_41 {dimension_numbers = #tpu.dot_dimension_numbers<[1], [0], [0], [1], [0, 0, 1, 1], [], []>} : vector<8x64xbf16>, vector<64x64xbf16>, vector<8x64xf32> -> vector<8x64xf32>
    %63 = vector.broadcast %38 : vector<1x64xf32> to vector<8x64xf32>
    %64 = arith.addf %62, %63 : vector<8x64xf32>
    %65 = arith.addf %8, %64 : vector<8x64xf32>
    %cst_42 = arith.constant dense<0.000000e+00> : vector<8xf32>
    %66 = vector.multi_reduction <add>, %65, %cst_42 [1] : vector<8x64xf32> to vector<8xf32>
    %67 = vector.shape_cast %66 : vector<8xf32> to vector<8x1xf32>
    %cst_43 = arith.constant 6.400000e+01 : f32
    %68 = vector.broadcast %cst_43 : f32 to vector<8x1xf32>
    %69 = arith.divf %67, %68 : vector<8x1xf32>
    %70 = vector.broadcast %69 : vector<8x1xf32> to vector<8x64xf32>
    %71 = arith.subf %65, %70 : vector<8x64xf32>
    %72 = arith.mulf %71, %71 : vector<8x64xf32>
    %cst_44 = arith.constant dense<0.000000e+00> : vector<8xf32>
    %73 = vector.multi_reduction <add>, %72, %cst_44 [1] : vector<8x64xf32> to vector<8xf32>
    %74 = vector.shape_cast %73 : vector<8xf32> to vector<8x1xf32>
    %cst_45 = arith.constant 6.400000e+01 : f32
    %75 = vector.broadcast %cst_45 : f32 to vector<8x1xf32>
    %76 = arith.divf %74, %75 : vector<8x1xf32>
    %cst_46 = arith.constant 9.99999974E-6 : f32
    %77 = vector.broadcast %cst_46 : f32 to vector<8x1xf32>
    %78 = arith.addf %76, %77 : vector<8x1xf32>
    %79 = math.rsqrt %78 : vector<8x1xf32>
    %80 = vector.broadcast %79 : vector<8x1xf32> to vector<8x64xf32>
    %81 = arith.mulf %71, %80 : vector<8x64xf32>
    %82 = arith.mulf %81, %19 : vector<8x64xf32>
    %83 = arith.addf %82, %23 : vector<8x64xf32>
    %84 = arith.truncf %83 : vector<8x64xf32> to vector<8x64xbf16>
    %c0_47 = arith.constant 0 : index
    %c0_48 = arith.constant 0 : index
    %c0_49 = arith.constant 0 : index
    %85 = vector.load %arg10[%c0_47, %c0_48, %c0_49] : memref<3x64x64xbf16, #tpu.memory_space<vmem>>, vector<1x64x64xbf16>
    %86 = vector.shape_cast %85 : vector<1x64x64xbf16> to vector<64x64xbf16>
    %cst_50 = arith.constant dense<0.000000e+00> : vector<8x64xf32>
    %87 = tpu.matmul %84, %86, %cst_50 {dimension_numbers = #tpu.dot_dimension_numbers<[1], [0], [0], [1], [0, 0, 1, 1], [], []>} : vector<8x64xbf16>, vector<64x64xbf16>, vector<8x64xf32> -> vector<8x64xf32>
    %c0_51 = arith.constant 0 : index
    %c0_52 = arith.constant 0 : index
    %c0_53 = arith.constant 0 : index
    %88 = vector.load %arg11[%c0_51, %c0_52, %c0_53] : memref<3x1x64xf32, #tpu.memory_space<vmem>>, vector<1x1x64xf32>
    %89 = vector.shape_cast %88 : vector<1x1x64xf32> to vector<1x64xf32>
    %90 = vector.broadcast %89 : vector<1x64xf32> to vector<8x64xf32>
    %91 = arith.addf %87, %90 : vector<8x64xf32>
    %92 = vector.extract_strided_slice %15 {offsets = [0, 0], sizes = [16, 64], strides = [1, 1]} : vector<16x384xf32> to vector<16x64xf32>
    %93 = vector.extract_strided_slice %15 {offsets = [0, 64], sizes = [16, 64], strides = [1, 1]} : vector<16x384xf32> to vector<16x64xf32>
    %c0_54 = arith.constant 0 : index
    %c0_55 = arith.constant 0 : index
    %c0_56 = arith.constant 0 : index
    %94 = vector.load %arg14[%c0_54, %c0_55, %c0_56] : memref<3x64x64xbf16, #tpu.memory_space<vmem>>, vector<1x64x64xbf16>
    %95 = vector.shape_cast %94 : vector<1x64x64xbf16> to vector<64x64xbf16>
    %c0_57 = arith.constant 0 : index
    %c0_58 = arith.constant 0 : index
    %c0_59 = arith.constant 0 : index
    %96 = vector.load %arg15[%c0_57, %c0_58, %c0_59] : memref<3x1x64xf32, #tpu.memory_space<vmem>>, vector<1x1x64xf32>
    %97 = vector.shape_cast %96 : vector<1x1x64xf32> to vector<1x64xf32>
    %98 = arith.truncf %92 : vector<16x64xf32> to vector<16x64xbf16>
    %99 = tpu.concatenate %98, %98, %98, %98, %98, %98, %98, %98 in 0 : vector<16x64xbf16>, vector<16x64xbf16>, vector<16x64xbf16>, vector<16x64xbf16>, vector<16x64xbf16>, vector<16x64xbf16>, vector<16x64xbf16>, vector<16x64xbf16> -> vector<128x64xbf16>
    %100 = arith.mulf %99, %1 : vector<128x64xbf16>
    %101 = arith.truncf %93 : vector<16x64xf32> to vector<16x64xbf16>
    %102 = tpu.concatenate %101, %101, %101, %101, %101, %101, %101, %101 in 0 : vector<16x64xbf16>, vector<16x64xbf16>, vector<16x64xbf16>, vector<16x64xbf16>, vector<16x64xbf16>, vector<16x64xbf16>, vector<16x64xbf16>, vector<16x64xbf16> -> vector<128x64xbf16>
    %103 = arith.mulf %102, %1 : vector<128x64xbf16>
    %104 = arith.truncf %91 : vector<8x64xf32> to vector<8x64xbf16>
    %cst_60 = arith.constant dense<0.000000e+00> : vector<8x128xf32>
    %105 = tpu.matmul %104, %100, %cst_60 {dimension_numbers = #tpu.dot_dimension_numbers<[1], [1], [0], [0], [0, 0, 1, 0], [], []>} : vector<8x64xbf16>, vector<128x64xbf16>, vector<8x128xf32> -> vector<8x128xf32>
    %cst_61 = arith.constant 0.353553385 : f32
    %106 = vector.broadcast %cst_61 : f32 to vector<8x128xf32>
    %107 = arith.mulf %105, %106 : vector<8x128xf32>
    %cst_62 = arith.constant dense<0xFF800000> : vector<8xf32>
    %108 = vector.multi_reduction <maximumf>, %107, %cst_62 [1] : vector<8x128xf32> to vector<8xf32>
    %109 = vector.shape_cast %108 : vector<8xf32> to vector<8x1xf32>
    %110 = vector.broadcast %109 : vector<8x1xf32> to vector<8x128xf32>
    %111 = arith.subf %107, %110 : vector<8x128xf32>
    %112 = math.exp %111 : vector<8x128xf32>
    %113 = arith.truncf %112 : vector<8x128xf32> to vector<8x128xbf16>
    %cst_63 = arith.constant dense<0.000000e+00> : vector<8x64xf32>
    %114 = tpu.matmul %113, %103, %cst_63 {dimension_numbers = #tpu.dot_dimension_numbers<[1], [0], [0], [1], [0, 0, 1, 1], [], []>} : vector<8x128xbf16>, vector<128x64xbf16>, vector<8x64xf32> -> vector<8x64xf32>
    %cst_64 = arith.constant dense<0.000000e+00> : vector<8x64xf32>
    %115 = tpu.matmul %113, %1, %cst_64 {dimension_numbers = #tpu.dot_dimension_numbers<[1], [0], [0], [1], [0, 0, 1, 1], [], []>} : vector<8x128xbf16>, vector<128x64xbf16>, vector<8x64xf32> -> vector<8x64xf32>
    %cst_65 = arith.constant 9.99999968E-21 : f32
    %116 = vector.broadcast %cst_65 : f32 to vector<8x64xf32>
    %117 = arith.maximumf %115, %116 : vector<8x64xf32>
    %118 = tpu.reciprocal %117 {approx = true} : vector<8x64xf32> -> vector<8x64xf32>
    %119 = arith.mulf %114, %118 : vector<8x64xf32>
    %120 = arith.truncf %119 : vector<8x64xf32> to vector<8x64xbf16>
    %cst_66 = arith.constant dense<0.000000e+00> : vector<8x64xf32>
    %121 = tpu.matmul %120, %95, %cst_66 {dimension_numbers = #tpu.dot_dimension_numbers<[1], [0], [0], [1], [0, 0, 1, 1], [], []>} : vector<8x64xbf16>, vector<64x64xbf16>, vector<8x64xf32> -> vector<8x64xf32>
    %122 = vector.broadcast %97 : vector<1x64xf32> to vector<8x64xf32>
    %123 = arith.addf %121, %122 : vector<8x64xf32>
    %124 = arith.addf %83, %123 : vector<8x64xf32>
    %cst_67 = arith.constant dense<0.000000e+00> : vector<8xf32>
    %125 = vector.multi_reduction <add>, %124, %cst_67 [1] : vector<8x64xf32> to vector<8xf32>
    %126 = vector.shape_cast %125 : vector<8xf32> to vector<8x1xf32>
    %cst_68 = arith.constant 6.400000e+01 : f32
    %127 = vector.broadcast %cst_68 : f32 to vector<8x1xf32>
    %128 = arith.divf %126, %127 : vector<8x1xf32>
    %129 = vector.broadcast %128 : vector<8x1xf32> to vector<8x64xf32>
    %130 = arith.subf %124, %129 : vector<8x64xf32>
    %131 = arith.mulf %130, %130 : vector<8x64xf32>
    %cst_69 = arith.constant dense<0.000000e+00> : vector<8xf32>
    %132 = vector.multi_reduction <add>, %131, %cst_69 [1] : vector<8x64xf32> to vector<8xf32>
    %133 = vector.shape_cast %132 : vector<8xf32> to vector<8x1xf32>
    %cst_70 = arith.constant 6.400000e+01 : f32
    %134 = vector.broadcast %cst_70 : f32 to vector<8x1xf32>
    %135 = arith.divf %133, %134 : vector<8x1xf32>
    %cst_71 = arith.constant 9.99999974E-6 : f32
    %136 = vector.broadcast %cst_71 : f32 to vector<8x1xf32>
    %137 = arith.addf %135, %136 : vector<8x1xf32>
    %138 = math.rsqrt %137 : vector<8x1xf32>
    %139 = vector.broadcast %138 : vector<8x1xf32> to vector<8x64xf32>
    %140 = arith.mulf %130, %139 : vector<8x64xf32>
    %141 = arith.mulf %140, %19 : vector<8x64xf32>
    %142 = arith.addf %141, %23 : vector<8x64xf32>
    %143 = arith.truncf %142 : vector<8x64xf32> to vector<8x64xbf16>
    %c0_72 = arith.constant 0 : index
    %c0_73 = arith.constant 0 : index
    %c0_74 = arith.constant 0 : index
    %144 = vector.load %arg16[%c0_72, %c0_73, %c0_74] : memref<3x64x256xbf16, #tpu.memory_space<vmem>>, vector<1x64x256xbf16>
    %145 = vector.shape_cast %144 : vector<1x64x256xbf16> to vector<64x256xbf16>
    %cst_75 = arith.constant dense<0.000000e+00> : vector<8x256xf32>
    %146 = tpu.matmul %143, %145, %cst_75 {dimension_numbers = #tpu.dot_dimension_numbers<[1], [0], [0], [1], [0, 0, 1, 1], [], []>} : vector<8x64xbf16>, vector<64x256xbf16>, vector<8x256xf32> -> vector<8x256xf32>
    %c0_76 = arith.constant 0 : index
    %c0_77 = arith.constant 0 : index
    %c0_78 = arith.constant 0 : index
    %147 = vector.load %arg17[%c0_76, %c0_77, %c0_78] : memref<3x1x256xf32, #tpu.memory_space<vmem>>, vector<1x1x256xf32>
    %148 = vector.shape_cast %147 : vector<1x1x256xf32> to vector<1x256xf32>
    %149 = vector.broadcast %148 : vector<1x256xf32> to vector<8x256xf32>
    %150 = arith.addf %146, %149 : vector<8x256xf32>
    %cst_79 = arith.constant 0.000000e+00 : f32
    %151 = vector.broadcast %cst_79 : f32 to vector<8x256xf32>
    %152 = arith.maximumf %150, %151 : vector<8x256xf32>
    %153 = arith.truncf %152 : vector<8x256xf32> to vector<8x256xbf16>
    %c0_80 = arith.constant 0 : index
    %c0_81 = arith.constant 0 : index
    %c0_82 = arith.constant 0 : index
    %154 = vector.load %arg18[%c0_80, %c0_81, %c0_82] : memref<3x256x64xbf16, #tpu.memory_space<vmem>>, vector<1x256x64xbf16>
    %155 = vector.shape_cast %154 : vector<1x256x64xbf16> to vector<256x64xbf16>
    %cst_83 = arith.constant dense<0.000000e+00> : vector<8x64xf32>
    %156 = tpu.matmul %153, %155, %cst_83 {dimension_numbers = #tpu.dot_dimension_numbers<[1], [0], [0], [1], [0, 0, 1, 1], [], []>} : vector<8x256xbf16>, vector<256x64xbf16>, vector<8x64xf32> -> vector<8x64xf32>
    %c0_84 = arith.constant 0 : index
    %c0_85 = arith.constant 0 : index
    %c0_86 = arith.constant 0 : index
    %157 = vector.load %arg19[%c0_84, %c0_85, %c0_86] : memref<3x1x64xf32, #tpu.memory_space<vmem>>, vector<1x1x64xf32>
    %158 = vector.shape_cast %157 : vector<1x1x64xf32> to vector<1x64xf32>
    %159 = vector.broadcast %158 : vector<1x64xf32> to vector<8x64xf32>
    %160 = arith.addf %156, %159 : vector<8x64xf32>
    %161 = arith.addf %142, %160 : vector<8x64xf32>
    %cst_87 = arith.constant dense<0.000000e+00> : vector<8xf32>
    %162 = vector.multi_reduction <add>, %161, %cst_87 [1] : vector<8x64xf32> to vector<8xf32>
    %163 = vector.shape_cast %162 : vector<8xf32> to vector<8x1xf32>
    %cst_88 = arith.constant 6.400000e+01 : f32
    %164 = vector.broadcast %cst_88 : f32 to vector<8x1xf32>
    %165 = arith.divf %163, %164 : vector<8x1xf32>
    %166 = vector.broadcast %165 : vector<8x1xf32> to vector<8x64xf32>
    %167 = arith.subf %161, %166 : vector<8x64xf32>
    %168 = arith.mulf %167, %167 : vector<8x64xf32>
    %cst_89 = arith.constant dense<0.000000e+00> : vector<8xf32>
    %169 = vector.multi_reduction <add>, %168, %cst_89 [1] : vector<8x64xf32> to vector<8xf32>
    %170 = vector.shape_cast %169 : vector<8xf32> to vector<8x1xf32>
    %cst_90 = arith.constant 6.400000e+01 : f32
    %171 = vector.broadcast %cst_90 : f32 to vector<8x1xf32>
    %172 = arith.divf %170, %171 : vector<8x1xf32>
    %cst_91 = arith.constant 9.99999974E-6 : f32
    %173 = vector.broadcast %cst_91 : f32 to vector<8x1xf32>
    %174 = arith.addf %172, %173 : vector<8x1xf32>
    %175 = math.rsqrt %174 : vector<8x1xf32>
    %176 = vector.broadcast %175 : vector<8x1xf32> to vector<8x64xf32>
    %177 = arith.mulf %167, %176 : vector<8x64xf32>
    %178 = arith.mulf %177, %19 : vector<8x64xf32>
    %179 = arith.addf %178, %23 : vector<8x64xf32>
    %c1 = arith.constant 1 : index
    %c0_92 = arith.constant 0 : index
    %c0_93 = arith.constant 0 : index
    %180 = vector.load %arg20[%c1, %c0_92, %c0_93] : memref<3x1x64xf32, #tpu.memory_space<vmem>>, vector<1x1x64xf32>
    %181 = vector.shape_cast %180 : vector<1x1x64xf32> to vector<1x64xf32>
    %182 = vector.shape_cast %181 : vector<1x64xf32> to vector<1x64xf32>
    %183 = vector.broadcast %182 : vector<1x64xf32> to vector<8x64xf32>
    %c1_94 = arith.constant 1 : index
    %c0_95 = arith.constant 0 : index
    %c0_96 = arith.constant 0 : index
    %184 = vector.load %arg21[%c1_94, %c0_95, %c0_96] : memref<3x1x64xf32, #tpu.memory_space<vmem>>, vector<1x1x64xf32>
    %185 = vector.shape_cast %184 : vector<1x1x64xf32> to vector<1x64xf32>
    %186 = vector.shape_cast %185 : vector<1x64xf32> to vector<1x64xf32>
    %187 = vector.broadcast %186 : vector<1x64xf32> to vector<8x64xf32>
    %188 = arith.truncf %179 : vector<8x64xf32> to vector<8x64xbf16>
    %c1_97 = arith.constant 1 : index
    %c0_98 = arith.constant 0 : index
    %c0_99 = arith.constant 0 : index
    %189 = vector.load %arg6[%c1_97, %c0_98, %c0_99] : memref<3x64x192xbf16, #tpu.memory_space<vmem>>, vector<1x64x192xbf16>
    %190 = vector.shape_cast %189 : vector<1x64x192xbf16> to vector<64x192xbf16>
    %cst_100 = arith.constant dense<0.000000e+00> : vector<8x192xf32>
    %191 = tpu.matmul %188, %190, %cst_100 {dimension_numbers = #tpu.dot_dimension_numbers<[1], [0], [0], [1], [0, 0, 1, 1], [], []>} : vector<8x64xbf16>, vector<64x192xbf16>, vector<8x192xf32> -> vector<8x192xf32>
    %c1_101 = arith.constant 1 : index
    %c0_102 = arith.constant 0 : index
    %c0_103 = arith.constant 0 : index
    %192 = vector.load %arg7[%c1_101, %c0_102, %c0_103] : memref<3x1x192xf32, #tpu.memory_space<vmem>>, vector<1x1x192xf32>
    %193 = vector.shape_cast %192 : vector<1x1x192xf32> to vector<1x192xf32>
    %194 = vector.broadcast %193 : vector<1x192xf32> to vector<8x192xf32>
    %195 = arith.addf %191, %194 : vector<8x192xf32>
    %196 = vector.extract_strided_slice %195 {offsets = [0, 0], sizes = [8, 64], strides = [1, 1]} : vector<8x192xf32> to vector<8x64xf32>
    %197 = vector.extract_strided_slice %195 {offsets = [0, 64], sizes = [8, 64], strides = [1, 1]} : vector<8x192xf32> to vector<8x64xf32>
    %198 = vector.extract_strided_slice %195 {offsets = [0, 128], sizes = [8, 64], strides = [1, 1]} : vector<8x192xf32> to vector<8x64xf32>
    %c1_104 = arith.constant 1 : index
    %c0_105 = arith.constant 0 : index
    %c0_106 = arith.constant 0 : index
    %199 = vector.load %arg8[%c1_104, %c0_105, %c0_106] : memref<3x64x64xbf16, #tpu.memory_space<vmem>>, vector<1x64x64xbf16>
    %200 = vector.shape_cast %199 : vector<1x64x64xbf16> to vector<64x64xbf16>
    %c1_107 = arith.constant 1 : index
    %c0_108 = arith.constant 0 : index
    %c0_109 = arith.constant 0 : index
    %201 = vector.load %arg9[%c1_107, %c0_108, %c0_109] : memref<3x1x64xf32, #tpu.memory_space<vmem>>, vector<1x1x64xf32>
    %202 = vector.shape_cast %201 : vector<1x1x64xf32> to vector<1x64xf32>
    %203 = arith.truncf %197 : vector<8x64xf32> to vector<8x64xbf16>
    %204 = tpu.concatenate %203, %203, %203, %203, %203, %203, %203, %203 in 0 : vector<8x64xbf16>, vector<8x64xbf16>, vector<8x64xbf16>, vector<8x64xbf16>, vector<8x64xbf16>, vector<8x64xbf16>, vector<8x64xbf16>, vector<8x64xbf16> -> vector<64x64xbf16>
    %205 = arith.mulf %204, %0 : vector<64x64xbf16>
    %206 = arith.truncf %198 : vector<8x64xf32> to vector<8x64xbf16>
    %207 = tpu.concatenate %206, %206, %206, %206, %206, %206, %206, %206 in 0 : vector<8x64xbf16>, vector<8x64xbf16>, vector<8x64xbf16>, vector<8x64xbf16>, vector<8x64xbf16>, vector<8x64xbf16>, vector<8x64xbf16>, vector<8x64xbf16> -> vector<64x64xbf16>
    %208 = arith.mulf %207, %0 : vector<64x64xbf16>
    %209 = arith.truncf %196 : vector<8x64xf32> to vector<8x64xbf16>
    %cst_110 = arith.constant dense<0.000000e+00> : vector<8x64xf32>
    %210 = tpu.matmul %209, %205, %cst_110 {dimension_numbers = #tpu.dot_dimension_numbers<[1], [1], [0], [0], [0, 0, 1, 0], [], []>} : vector<8x64xbf16>, vector<64x64xbf16>, vector<8x64xf32> -> vector<8x64xf32>
    %cst_111 = arith.constant 0.353553385 : f32
    %211 = vector.broadcast %cst_111 : f32 to vector<8x64xf32>
    %212 = arith.mulf %210, %211 : vector<8x64xf32>
    %cst_112 = arith.constant dense<0xFF800000> : vector<8xf32>
    %213 = vector.multi_reduction <maximumf>, %212, %cst_112 [1] : vector<8x64xf32> to vector<8xf32>
    %214 = vector.shape_cast %213 : vector<8xf32> to vector<8x1xf32>
    %215 = vector.broadcast %214 : vector<8x1xf32> to vector<8x64xf32>
    %216 = arith.subf %212, %215 : vector<8x64xf32>
    %217 = math.exp %216 : vector<8x64xf32>
    %218 = arith.truncf %217 : vector<8x64xf32> to vector<8x64xbf16>
    %cst_113 = arith.constant dense<0.000000e+00> : vector<8x64xf32>
    %219 = tpu.matmul %218, %208, %cst_113 {dimension_numbers = #tpu.dot_dimension_numbers<[1], [0], [0], [1], [0, 0, 1, 1], [], []>} : vector<8x64xbf16>, vector<64x64xbf16>, vector<8x64xf32> -> vector<8x64xf32>
    %cst_114 = arith.constant dense<0.000000e+00> : vector<8x64xf32>
    %220 = tpu.matmul %218, %0, %cst_114 {dimension_numbers = #tpu.dot_dimension_numbers<[1], [0], [0], [1], [0, 0, 1, 1], [], []>} : vector<8x64xbf16>, vector<64x64xbf16>, vector<8x64xf32> -> vector<8x64xf32>
    %cst_115 = arith.constant 9.99999968E-21 : f32
    %221 = vector.broadcast %cst_115 : f32 to vector<8x64xf32>
    %222 = arith.maximumf %220, %221 : vector<8x64xf32>
    %223 = tpu.reciprocal %222 {approx = true} : vector<8x64xf32> -> vector<8x64xf32>
    %224 = arith.mulf %219, %223 : vector<8x64xf32>
    %225 = arith.truncf %224 : vector<8x64xf32> to vector<8x64xbf16>
    %cst_116 = arith.constant dense<0.000000e+00> : vector<8x64xf32>
    %226 = tpu.matmul %225, %200, %cst_116 {dimension_numbers = #tpu.dot_dimension_numbers<[1], [0], [0], [1], [0, 0, 1, 1], [], []>} : vector<8x64xbf16>, vector<64x64xbf16>, vector<8x64xf32> -> vector<8x64xf32>
    %227 = vector.broadcast %202 : vector<1x64xf32> to vector<8x64xf32>
    %228 = arith.addf %226, %227 : vector<8x64xf32>
    %229 = arith.addf %179, %228 : vector<8x64xf32>
    %cst_117 = arith.constant dense<0.000000e+00> : vector<8xf32>
    %230 = vector.multi_reduction <add>, %229, %cst_117 [1] : vector<8x64xf32> to vector<8xf32>
    %231 = vector.shape_cast %230 : vector<8xf32> to vector<8x1xf32>
    %cst_118 = arith.constant 6.400000e+01 : f32
    %232 = vector.broadcast %cst_118 : f32 to vector<8x1xf32>
    %233 = arith.divf %231, %232 : vector<8x1xf32>
    %234 = vector.broadcast %233 : vector<8x1xf32> to vector<8x64xf32>
    %235 = arith.subf %229, %234 : vector<8x64xf32>
    %236 = arith.mulf %235, %235 : vector<8x64xf32>
    %cst_119 = arith.constant dense<0.000000e+00> : vector<8xf32>
    %237 = vector.multi_reduction <add>, %236, %cst_119 [1] : vector<8x64xf32> to vector<8xf32>
    %238 = vector.shape_cast %237 : vector<8xf32> to vector<8x1xf32>
    %cst_120 = arith.constant 6.400000e+01 : f32
    %239 = vector.broadcast %cst_120 : f32 to vector<8x1xf32>
    %240 = arith.divf %238, %239 : vector<8x1xf32>
    %cst_121 = arith.constant 9.99999974E-6 : f32
    %241 = vector.broadcast %cst_121 : f32 to vector<8x1xf32>
    %242 = arith.addf %240, %241 : vector<8x1xf32>
    %243 = math.rsqrt %242 : vector<8x1xf32>
    %244 = vector.broadcast %243 : vector<8x1xf32> to vector<8x64xf32>
    %245 = arith.mulf %235, %244 : vector<8x64xf32>
    %246 = arith.mulf %245, %183 : vector<8x64xf32>
    %247 = arith.addf %246, %187 : vector<8x64xf32>
    %248 = arith.truncf %247 : vector<8x64xf32> to vector<8x64xbf16>
    %c1_122 = arith.constant 1 : index
    %c0_123 = arith.constant 0 : index
    %c0_124 = arith.constant 0 : index
    %249 = vector.load %arg10[%c1_122, %c0_123, %c0_124] : memref<3x64x64xbf16, #tpu.memory_space<vmem>>, vector<1x64x64xbf16>
    %250 = vector.shape_cast %249 : vector<1x64x64xbf16> to vector<64x64xbf16>
    %cst_125 = arith.constant dense<0.000000e+00> : vector<8x64xf32>
    %251 = tpu.matmul %248, %250, %cst_125 {dimension_numbers = #tpu.dot_dimension_numbers<[1], [0], [0], [1], [0, 0, 1, 1], [], []>} : vector<8x64xbf16>, vector<64x64xbf16>, vector<8x64xf32> -> vector<8x64xf32>
    %c1_126 = arith.constant 1 : index
    %c0_127 = arith.constant 0 : index
    %c0_128 = arith.constant 0 : index
    %252 = vector.load %arg11[%c1_126, %c0_127, %c0_128] : memref<3x1x64xf32, #tpu.memory_space<vmem>>, vector<1x1x64xf32>
    %253 = vector.shape_cast %252 : vector<1x1x64xf32> to vector<1x64xf32>
    %254 = vector.broadcast %253 : vector<1x64xf32> to vector<8x64xf32>
    %255 = arith.addf %251, %254 : vector<8x64xf32>
    %256 = vector.extract_strided_slice %15 {offsets = [0, 128], sizes = [16, 64], strides = [1, 1]} : vector<16x384xf32> to vector<16x64xf32>
    %257 = vector.extract_strided_slice %15 {offsets = [0, 192], sizes = [16, 64], strides = [1, 1]} : vector<16x384xf32> to vector<16x64xf32>
    %c1_129 = arith.constant 1 : index
    %c0_130 = arith.constant 0 : index
    %c0_131 = arith.constant 0 : index
    %258 = vector.load %arg14[%c1_129, %c0_130, %c0_131] : memref<3x64x64xbf16, #tpu.memory_space<vmem>>, vector<1x64x64xbf16>
    %259 = vector.shape_cast %258 : vector<1x64x64xbf16> to vector<64x64xbf16>
    %c1_132 = arith.constant 1 : index
    %c0_133 = arith.constant 0 : index
    %c0_134 = arith.constant 0 : index
    %260 = vector.load %arg15[%c1_132, %c0_133, %c0_134] : memref<3x1x64xf32, #tpu.memory_space<vmem>>, vector<1x1x64xf32>
    %261 = vector.shape_cast %260 : vector<1x1x64xf32> to vector<1x64xf32>
    %262 = arith.truncf %256 : vector<16x64xf32> to vector<16x64xbf16>
    %263 = tpu.concatenate %262, %262, %262, %262, %262, %262, %262, %262 in 0 : vector<16x64xbf16>, vector<16x64xbf16>, vector<16x64xbf16>, vector<16x64xbf16>, vector<16x64xbf16>, vector<16x64xbf16>, vector<16x64xbf16>, vector<16x64xbf16> -> vector<128x64xbf16>
    %264 = arith.mulf %263, %1 : vector<128x64xbf16>
    %265 = arith.truncf %257 : vector<16x64xf32> to vector<16x64xbf16>
    %266 = tpu.concatenate %265, %265, %265, %265, %265, %265, %265, %265 in 0 : vector<16x64xbf16>, vector<16x64xbf16>, vector<16x64xbf16>, vector<16x64xbf16>, vector<16x64xbf16>, vector<16x64xbf16>, vector<16x64xbf16>, vector<16x64xbf16> -> vector<128x64xbf16>
    %267 = arith.mulf %266, %1 : vector<128x64xbf16>
    %268 = arith.truncf %255 : vector<8x64xf32> to vector<8x64xbf16>
    %cst_135 = arith.constant dense<0.000000e+00> : vector<8x128xf32>
    %269 = tpu.matmul %268, %264, %cst_135 {dimension_numbers = #tpu.dot_dimension_numbers<[1], [1], [0], [0], [0, 0, 1, 0], [], []>} : vector<8x64xbf16>, vector<128x64xbf16>, vector<8x128xf32> -> vector<8x128xf32>
    %cst_136 = arith.constant 0.353553385 : f32
    %270 = vector.broadcast %cst_136 : f32 to vector<8x128xf32>
    %271 = arith.mulf %269, %270 : vector<8x128xf32>
    %cst_137 = arith.constant dense<0xFF800000> : vector<8xf32>
    %272 = vector.multi_reduction <maximumf>, %271, %cst_137 [1] : vector<8x128xf32> to vector<8xf32>
    %273 = vector.shape_cast %272 : vector<8xf32> to vector<8x1xf32>
    %274 = vector.broadcast %273 : vector<8x1xf32> to vector<8x128xf32>
    %275 = arith.subf %271, %274 : vector<8x128xf32>
    %276 = math.exp %275 : vector<8x128xf32>
    %277 = arith.truncf %276 : vector<8x128xf32> to vector<8x128xbf16>
    %cst_138 = arith.constant dense<0.000000e+00> : vector<8x64xf32>
    %278 = tpu.matmul %277, %267, %cst_138 {dimension_numbers = #tpu.dot_dimension_numbers<[1], [0], [0], [1], [0, 0, 1, 1], [], []>} : vector<8x128xbf16>, vector<128x64xbf16>, vector<8x64xf32> -> vector<8x64xf32>
    %cst_139 = arith.constant dense<0.000000e+00> : vector<8x64xf32>
    %279 = tpu.matmul %277, %1, %cst_139 {dimension_numbers = #tpu.dot_dimension_numbers<[1], [0], [0], [1], [0, 0, 1, 1], [], []>} : vector<8x128xbf16>, vector<128x64xbf16>, vector<8x64xf32> -> vector<8x64xf32>
    %cst_140 = arith.constant 9.99999968E-21 : f32
    %280 = vector.broadcast %cst_140 : f32 to vector<8x64xf32>
    %281 = arith.maximumf %279, %280 : vector<8x64xf32>
    %282 = tpu.reciprocal %281 {approx = true} : vector<8x64xf32> -> vector<8x64xf32>
    %283 = arith.mulf %278, %282 : vector<8x64xf32>
    %284 = arith.truncf %283 : vector<8x64xf32> to vector<8x64xbf16>
    %cst_141 = arith.constant dense<0.000000e+00> : vector<8x64xf32>
    %285 = tpu.matmul %284, %259, %cst_141 {dimension_numbers = #tpu.dot_dimension_numbers<[1], [0], [0], [1], [0, 0, 1, 1], [], []>} : vector<8x64xbf16>, vector<64x64xbf16>, vector<8x64xf32> -> vector<8x64xf32>
    %286 = vector.broadcast %261 : vector<1x64xf32> to vector<8x64xf32>
    %287 = arith.addf %285, %286 : vector<8x64xf32>
    %288 = arith.addf %247, %287 : vector<8x64xf32>
    %cst_142 = arith.constant dense<0.000000e+00> : vector<8xf32>
    %289 = vector.multi_reduction <add>, %288, %cst_142 [1] : vector<8x64xf32> to vector<8xf32>
    %290 = vector.shape_cast %289 : vector<8xf32> to vector<8x1xf32>
    %cst_143 = arith.constant 6.400000e+01 : f32
    %291 = vector.broadcast %cst_143 : f32 to vector<8x1xf32>
    %292 = arith.divf %290, %291 : vector<8x1xf32>
    %293 = vector.broadcast %292 : vector<8x1xf32> to vector<8x64xf32>
    %294 = arith.subf %288, %293 : vector<8x64xf32>
    %295 = arith.mulf %294, %294 : vector<8x64xf32>
    %cst_144 = arith.constant dense<0.000000e+00> : vector<8xf32>
    %296 = vector.multi_reduction <add>, %295, %cst_144 [1] : vector<8x64xf32> to vector<8xf32>
    %297 = vector.shape_cast %296 : vector<8xf32> to vector<8x1xf32>
    %cst_145 = arith.constant 6.400000e+01 : f32
    %298 = vector.broadcast %cst_145 : f32 to vector<8x1xf32>
    %299 = arith.divf %297, %298 : vector<8x1xf32>
    %cst_146 = arith.constant 9.99999974E-6 : f32
    %300 = vector.broadcast %cst_146 : f32 to vector<8x1xf32>
    %301 = arith.addf %299, %300 : vector<8x1xf32>
    %302 = math.rsqrt %301 : vector<8x1xf32>
    %303 = vector.broadcast %302 : vector<8x1xf32> to vector<8x64xf32>
    %304 = arith.mulf %294, %303 : vector<8x64xf32>
    %305 = arith.mulf %304, %183 : vector<8x64xf32>
    %306 = arith.addf %305, %187 : vector<8x64xf32>
    %307 = arith.truncf %306 : vector<8x64xf32> to vector<8x64xbf16>
    %c1_147 = arith.constant 1 : index
    %c0_148 = arith.constant 0 : index
    %c0_149 = arith.constant 0 : index
    %308 = vector.load %arg16[%c1_147, %c0_148, %c0_149] : memref<3x64x256xbf16, #tpu.memory_space<vmem>>, vector<1x64x256xbf16>
    %309 = vector.shape_cast %308 : vector<1x64x256xbf16> to vector<64x256xbf16>
    %cst_150 = arith.constant dense<0.000000e+00> : vector<8x256xf32>
    %310 = tpu.matmul %307, %309, %cst_150 {dimension_numbers = #tpu.dot_dimension_numbers<[1], [0], [0], [1], [0, 0, 1, 1], [], []>} : vector<8x64xbf16>, vector<64x256xbf16>, vector<8x256xf32> -> vector<8x256xf32>
    %c1_151 = arith.constant 1 : index
    %c0_152 = arith.constant 0 : index
    %c0_153 = arith.constant 0 : index
    %311 = vector.load %arg17[%c1_151, %c0_152, %c0_153] : memref<3x1x256xf32, #tpu.memory_space<vmem>>, vector<1x1x256xf32>
    %312 = vector.shape_cast %311 : vector<1x1x256xf32> to vector<1x256xf32>
    %313 = vector.broadcast %312 : vector<1x256xf32> to vector<8x256xf32>
    %314 = arith.addf %310, %313 : vector<8x256xf32>
    %cst_154 = arith.constant 0.000000e+00 : f32
    %315 = vector.broadcast %cst_154 : f32 to vector<8x256xf32>
    %316 = arith.maximumf %314, %315 : vector<8x256xf32>
    %317 = arith.truncf %316 : vector<8x256xf32> to vector<8x256xbf16>
    %c1_155 = arith.constant 1 : index
    %c0_156 = arith.constant 0 : index
    %c0_157 = arith.constant 0 : index
    %318 = vector.load %arg18[%c1_155, %c0_156, %c0_157] : memref<3x256x64xbf16, #tpu.memory_space<vmem>>, vector<1x256x64xbf16>
    %319 = vector.shape_cast %318 : vector<1x256x64xbf16> to vector<256x64xbf16>
    %cst_158 = arith.constant dense<0.000000e+00> : vector<8x64xf32>
    %320 = tpu.matmul %317, %319, %cst_158 {dimension_numbers = #tpu.dot_dimension_numbers<[1], [0], [0], [1], [0, 0, 1, 1], [], []>} : vector<8x256xbf16>, vector<256x64xbf16>, vector<8x64xf32> -> vector<8x64xf32>
    %c1_159 = arith.constant 1 : index
    %c0_160 = arith.constant 0 : index
    %c0_161 = arith.constant 0 : index
    %321 = vector.load %arg19[%c1_159, %c0_160, %c0_161] : memref<3x1x64xf32, #tpu.memory_space<vmem>>, vector<1x1x64xf32>
    %322 = vector.shape_cast %321 : vector<1x1x64xf32> to vector<1x64xf32>
    %323 = vector.broadcast %322 : vector<1x64xf32> to vector<8x64xf32>
    %324 = arith.addf %320, %323 : vector<8x64xf32>
    %325 = arith.addf %306, %324 : vector<8x64xf32>
    %cst_162 = arith.constant dense<0.000000e+00> : vector<8xf32>
    %326 = vector.multi_reduction <add>, %325, %cst_162 [1] : vector<8x64xf32> to vector<8xf32>
    %327 = vector.shape_cast %326 : vector<8xf32> to vector<8x1xf32>
    %cst_163 = arith.constant 6.400000e+01 : f32
    %328 = vector.broadcast %cst_163 : f32 to vector<8x1xf32>
    %329 = arith.divf %327, %328 : vector<8x1xf32>
    %330 = vector.broadcast %329 : vector<8x1xf32> to vector<8x64xf32>
    %331 = arith.subf %325, %330 : vector<8x64xf32>
    %332 = arith.mulf %331, %331 : vector<8x64xf32>
    %cst_164 = arith.constant dense<0.000000e+00> : vector<8xf32>
    %333 = vector.multi_reduction <add>, %332, %cst_164 [1] : vector<8x64xf32> to vector<8xf32>
    %334 = vector.shape_cast %333 : vector<8xf32> to vector<8x1xf32>
    %cst_165 = arith.constant 6.400000e+01 : f32
    %335 = vector.broadcast %cst_165 : f32 to vector<8x1xf32>
    %336 = arith.divf %334, %335 : vector<8x1xf32>
    %cst_166 = arith.constant 9.99999974E-6 : f32
    %337 = vector.broadcast %cst_166 : f32 to vector<8x1xf32>
    %338 = arith.addf %336, %337 : vector<8x1xf32>
    %339 = math.rsqrt %338 : vector<8x1xf32>
    %340 = vector.broadcast %339 : vector<8x1xf32> to vector<8x64xf32>
    %341 = arith.mulf %331, %340 : vector<8x64xf32>
    %342 = arith.mulf %341, %183 : vector<8x64xf32>
    %343 = arith.addf %342, %187 : vector<8x64xf32>
    %c2 = arith.constant 2 : index
    %c0_167 = arith.constant 0 : index
    %c0_168 = arith.constant 0 : index
    %344 = vector.load %arg20[%c2, %c0_167, %c0_168] : memref<3x1x64xf32, #tpu.memory_space<vmem>>, vector<1x1x64xf32>
    %345 = vector.shape_cast %344 : vector<1x1x64xf32> to vector<1x64xf32>
    %346 = vector.shape_cast %345 : vector<1x64xf32> to vector<1x64xf32>
    %347 = vector.broadcast %346 : vector<1x64xf32> to vector<8x64xf32>
    %c2_169 = arith.constant 2 : index
    %c0_170 = arith.constant 0 : index
    %c0_171 = arith.constant 0 : index
    %348 = vector.load %arg21[%c2_169, %c0_170, %c0_171] : memref<3x1x64xf32, #tpu.memory_space<vmem>>, vector<1x1x64xf32>
    %349 = vector.shape_cast %348 : vector<1x1x64xf32> to vector<1x64xf32>
    %350 = vector.shape_cast %349 : vector<1x64xf32> to vector<1x64xf32>
    %351 = vector.broadcast %350 : vector<1x64xf32> to vector<8x64xf32>
    %352 = arith.truncf %343 : vector<8x64xf32> to vector<8x64xbf16>
    %c2_172 = arith.constant 2 : index
    %c0_173 = arith.constant 0 : index
    %c0_174 = arith.constant 0 : index
    %353 = vector.load %arg6[%c2_172, %c0_173, %c0_174] : memref<3x64x192xbf16, #tpu.memory_space<vmem>>, vector<1x64x192xbf16>
    %354 = vector.shape_cast %353 : vector<1x64x192xbf16> to vector<64x192xbf16>
    %cst_175 = arith.constant dense<0.000000e+00> : vector<8x192xf32>
    %355 = tpu.matmul %352, %354, %cst_175 {dimension_numbers = #tpu.dot_dimension_numbers<[1], [0], [0], [1], [0, 0, 1, 1], [], []>} : vector<8x64xbf16>, vector<64x192xbf16>, vector<8x192xf32> -> vector<8x192xf32>
    %c2_176 = arith.constant 2 : index
    %c0_177 = arith.constant 0 : index
    %c0_178 = arith.constant 0 : index
    %356 = vector.load %arg7[%c2_176, %c0_177, %c0_178] : memref<3x1x192xf32, #tpu.memory_space<vmem>>, vector<1x1x192xf32>
    %357 = vector.shape_cast %356 : vector<1x1x192xf32> to vector<1x192xf32>
    %358 = vector.broadcast %357 : vector<1x192xf32> to vector<8x192xf32>
    %359 = arith.addf %355, %358 : vector<8x192xf32>
    %360 = vector.extract_strided_slice %359 {offsets = [0, 0], sizes = [8, 64], strides = [1, 1]} : vector<8x192xf32> to vector<8x64xf32>
    %361 = vector.extract_strided_slice %359 {offsets = [0, 64], sizes = [8, 64], strides = [1, 1]} : vector<8x192xf32> to vector<8x64xf32>
    %362 = vector.extract_strided_slice %359 {offsets = [0, 128], sizes = [8, 64], strides = [1, 1]} : vector<8x192xf32> to vector<8x64xf32>
    %c2_179 = arith.constant 2 : index
    %c0_180 = arith.constant 0 : index
    %c0_181 = arith.constant 0 : index
    %363 = vector.load %arg8[%c2_179, %c0_180, %c0_181] : memref<3x64x64xbf16, #tpu.memory_space<vmem>>, vector<1x64x64xbf16>
    %364 = vector.shape_cast %363 : vector<1x64x64xbf16> to vector<64x64xbf16>
    %c2_182 = arith.constant 2 : index
    %c0_183 = arith.constant 0 : index
    %c0_184 = arith.constant 0 : index
    %365 = vector.load %arg9[%c2_182, %c0_183, %c0_184] : memref<3x1x64xf32, #tpu.memory_space<vmem>>, vector<1x1x64xf32>
    %366 = vector.shape_cast %365 : vector<1x1x64xf32> to vector<1x64xf32>
    %367 = arith.truncf %361 : vector<8x64xf32> to vector<8x64xbf16>
    %368 = tpu.concatenate %367, %367, %367, %367, %367, %367, %367, %367 in 0 : vector<8x64xbf16>, vector<8x64xbf16>, vector<8x64xbf16>, vector<8x64xbf16>, vector<8x64xbf16>, vector<8x64xbf16>, vector<8x64xbf16>, vector<8x64xbf16> -> vector<64x64xbf16>
    %369 = arith.mulf %368, %0 : vector<64x64xbf16>
    %370 = arith.truncf %362 : vector<8x64xf32> to vector<8x64xbf16>
    %371 = tpu.concatenate %370, %370, %370, %370, %370, %370, %370, %370 in 0 : vector<8x64xbf16>, vector<8x64xbf16>, vector<8x64xbf16>, vector<8x64xbf16>, vector<8x64xbf16>, vector<8x64xbf16>, vector<8x64xbf16>, vector<8x64xbf16> -> vector<64x64xbf16>
    %372 = arith.mulf %371, %0 : vector<64x64xbf16>
    %373 = arith.truncf %360 : vector<8x64xf32> to vector<8x64xbf16>
    %cst_185 = arith.constant dense<0.000000e+00> : vector<8x64xf32>
    %374 = tpu.matmul %373, %369, %cst_185 {dimension_numbers = #tpu.dot_dimension_numbers<[1], [1], [0], [0], [0, 0, 1, 0], [], []>} : vector<8x64xbf16>, vector<64x64xbf16>, vector<8x64xf32> -> vector<8x64xf32>
    %cst_186 = arith.constant 0.353553385 : f32
    %375 = vector.broadcast %cst_186 : f32 to vector<8x64xf32>
    %376 = arith.mulf %374, %375 : vector<8x64xf32>
    %cst_187 = arith.constant dense<0xFF800000> : vector<8xf32>
    %377 = vector.multi_reduction <maximumf>, %376, %cst_187 [1] : vector<8x64xf32> to vector<8xf32>
    %378 = vector.shape_cast %377 : vector<8xf32> to vector<8x1xf32>
    %379 = vector.broadcast %378 : vector<8x1xf32> to vector<8x64xf32>
    %380 = arith.subf %376, %379 : vector<8x64xf32>
    %381 = math.exp %380 : vector<8x64xf32>
    %382 = arith.truncf %381 : vector<8x64xf32> to vector<8x64xbf16>
    %cst_188 = arith.constant dense<0.000000e+00> : vector<8x64xf32>
    %383 = tpu.matmul %382, %372, %cst_188 {dimension_numbers = #tpu.dot_dimension_numbers<[1], [0], [0], [1], [0, 0, 1, 1], [], []>} : vector<8x64xbf16>, vector<64x64xbf16>, vector<8x64xf32> -> vector<8x64xf32>
    %cst_189 = arith.constant dense<0.000000e+00> : vector<8x64xf32>
    %384 = tpu.matmul %382, %0, %cst_189 {dimension_numbers = #tpu.dot_dimension_numbers<[1], [0], [0], [1], [0, 0, 1, 1], [], []>} : vector<8x64xbf16>, vector<64x64xbf16>, vector<8x64xf32> -> vector<8x64xf32>
    %cst_190 = arith.constant 9.99999968E-21 : f32
    %385 = vector.broadcast %cst_190 : f32 to vector<8x64xf32>
    %386 = arith.maximumf %384, %385 : vector<8x64xf32>
    %387 = tpu.reciprocal %386 {approx = true} : vector<8x64xf32> -> vector<8x64xf32>
    %388 = arith.mulf %383, %387 : vector<8x64xf32>
    %389 = arith.truncf %388 : vector<8x64xf32> to vector<8x64xbf16>
    %cst_191 = arith.constant dense<0.000000e+00> : vector<8x64xf32>
    %390 = tpu.matmul %389, %364, %cst_191 {dimension_numbers = #tpu.dot_dimension_numbers<[1], [0], [0], [1], [0, 0, 1, 1], [], []>} : vector<8x64xbf16>, vector<64x64xbf16>, vector<8x64xf32> -> vector<8x64xf32>
    %391 = vector.broadcast %366 : vector<1x64xf32> to vector<8x64xf32>
    %392 = arith.addf %390, %391 : vector<8x64xf32>
    %393 = arith.addf %343, %392 : vector<8x64xf32>
    %cst_192 = arith.constant dense<0.000000e+00> : vector<8xf32>
    %394 = vector.multi_reduction <add>, %393, %cst_192 [1] : vector<8x64xf32> to vector<8xf32>
    %395 = vector.shape_cast %394 : vector<8xf32> to vector<8x1xf32>
    %cst_193 = arith.constant 6.400000e+01 : f32
    %396 = vector.broadcast %cst_193 : f32 to vector<8x1xf32>
    %397 = arith.divf %395, %396 : vector<8x1xf32>
    %398 = vector.broadcast %397 : vector<8x1xf32> to vector<8x64xf32>
    %399 = arith.subf %393, %398 : vector<8x64xf32>
    %400 = arith.mulf %399, %399 : vector<8x64xf32>
    %cst_194 = arith.constant dense<0.000000e+00> : vector<8xf32>
    %401 = vector.multi_reduction <add>, %400, %cst_194 [1] : vector<8x64xf32> to vector<8xf32>
    %402 = vector.shape_cast %401 : vector<8xf32> to vector<8x1xf32>
    %cst_195 = arith.constant 6.400000e+01 : f32
    %403 = vector.broadcast %cst_195 : f32 to vector<8x1xf32>
    %404 = arith.divf %402, %403 : vector<8x1xf32>
    %cst_196 = arith.constant 9.99999974E-6 : f32
    %405 = vector.broadcast %cst_196 : f32 to vector<8x1xf32>
    %406 = arith.addf %404, %405 : vector<8x1xf32>
    %407 = math.rsqrt %406 : vector<8x1xf32>
    %408 = vector.broadcast %407 : vector<8x1xf32> to vector<8x64xf32>
    %409 = arith.mulf %399, %408 : vector<8x64xf32>
    %410 = arith.mulf %409, %347 : vector<8x64xf32>
    %411 = arith.addf %410, %351 : vector<8x64xf32>
    %412 = arith.truncf %411 : vector<8x64xf32> to vector<8x64xbf16>
    %c2_197 = arith.constant 2 : index
    %c0_198 = arith.constant 0 : index
    %c0_199 = arith.constant 0 : index
    %413 = vector.load %arg10[%c2_197, %c0_198, %c0_199] : memref<3x64x64xbf16, #tpu.memory_space<vmem>>, vector<1x64x64xbf16>
    %414 = vector.shape_cast %413 : vector<1x64x64xbf16> to vector<64x64xbf16>
    %cst_200 = arith.constant dense<0.000000e+00> : vector<8x64xf32>
    %415 = tpu.matmul %412, %414, %cst_200 {dimension_numbers = #tpu.dot_dimension_numbers<[1], [0], [0], [1], [0, 0, 1, 1], [], []>} : vector<8x64xbf16>, vector<64x64xbf16>, vector<8x64xf32> -> vector<8x64xf32>
    %c2_201 = arith.constant 2 : index
    %c0_202 = arith.constant 0 : index
    %c0_203 = arith.constant 0 : index
    %416 = vector.load %arg11[%c2_201, %c0_202, %c0_203] : memref<3x1x64xf32, #tpu.memory_space<vmem>>, vector<1x1x64xf32>
    %417 = vector.shape_cast %416 : vector<1x1x64xf32> to vector<1x64xf32>
    %418 = vector.broadcast %417 : vector<1x64xf32> to vector<8x64xf32>
    %419 = arith.addf %415, %418 : vector<8x64xf32>
    %420 = vector.extract_strided_slice %15 {offsets = [0, 256], sizes = [16, 64], strides = [1, 1]} : vector<16x384xf32> to vector<16x64xf32>
    %421 = vector.extract_strided_slice %15 {offsets = [0, 320], sizes = [16, 64], strides = [1, 1]} : vector<16x384xf32> to vector<16x64xf32>
    %c2_204 = arith.constant 2 : index
    %c0_205 = arith.constant 0 : index
    %c0_206 = arith.constant 0 : index
    %422 = vector.load %arg14[%c2_204, %c0_205, %c0_206] : memref<3x64x64xbf16, #tpu.memory_space<vmem>>, vector<1x64x64xbf16>
    %423 = vector.shape_cast %422 : vector<1x64x64xbf16> to vector<64x64xbf16>
    %c2_207 = arith.constant 2 : index
    %c0_208 = arith.constant 0 : index
    %c0_209 = arith.constant 0 : index
    %424 = vector.load %arg15[%c2_207, %c0_208, %c0_209] : memref<3x1x64xf32, #tpu.memory_space<vmem>>, vector<1x1x64xf32>
    %425 = vector.shape_cast %424 : vector<1x1x64xf32> to vector<1x64xf32>
    %426 = arith.truncf %420 : vector<16x64xf32> to vector<16x64xbf16>
    %427 = tpu.concatenate %426, %426, %426, %426, %426, %426, %426, %426 in 0 : vector<16x64xbf16>, vector<16x64xbf16>, vector<16x64xbf16>, vector<16x64xbf16>, vector<16x64xbf16>, vector<16x64xbf16>, vector<16x64xbf16>, vector<16x64xbf16> -> vector<128x64xbf16>
    %428 = arith.mulf %427, %1 : vector<128x64xbf16>
    %429 = arith.truncf %421 : vector<16x64xf32> to vector<16x64xbf16>
    %430 = tpu.concatenate %429, %429, %429, %429, %429, %429, %429, %429 in 0 : vector<16x64xbf16>, vector<16x64xbf16>, vector<16x64xbf16>, vector<16x64xbf16>, vector<16x64xbf16>, vector<16x64xbf16>, vector<16x64xbf16>, vector<16x64xbf16> -> vector<128x64xbf16>
    %431 = arith.mulf %430, %1 : vector<128x64xbf16>
    %432 = arith.truncf %419 : vector<8x64xf32> to vector<8x64xbf16>
    %cst_210 = arith.constant dense<0.000000e+00> : vector<8x128xf32>
    %433 = tpu.matmul %432, %428, %cst_210 {dimension_numbers = #tpu.dot_dimension_numbers<[1], [1], [0], [0], [0, 0, 1, 0], [], []>} : vector<8x64xbf16>, vector<128x64xbf16>, vector<8x128xf32> -> vector<8x128xf32>
    %cst_211 = arith.constant 0.353553385 : f32
    %434 = vector.broadcast %cst_211 : f32 to vector<8x128xf32>
    %435 = arith.mulf %433, %434 : vector<8x128xf32>
    %cst_212 = arith.constant dense<0xFF800000> : vector<8xf32>
    %436 = vector.multi_reduction <maximumf>, %435, %cst_212 [1] : vector<8x128xf32> to vector<8xf32>
    %437 = vector.shape_cast %436 : vector<8xf32> to vector<8x1xf32>
    %438 = vector.broadcast %437 : vector<8x1xf32> to vector<8x128xf32>
    %439 = arith.subf %435, %438 : vector<8x128xf32>
    %440 = math.exp %439 : vector<8x128xf32>
    %441 = arith.truncf %440 : vector<8x128xf32> to vector<8x128xbf16>
    %cst_213 = arith.constant dense<0.000000e+00> : vector<8x64xf32>
    %442 = tpu.matmul %441, %431, %cst_213 {dimension_numbers = #tpu.dot_dimension_numbers<[1], [0], [0], [1], [0, 0, 1, 1], [], []>} : vector<8x128xbf16>, vector<128x64xbf16>, vector<8x64xf32> -> vector<8x64xf32>
    %cst_214 = arith.constant dense<0.000000e+00> : vector<8x64xf32>
    %443 = tpu.matmul %441, %1, %cst_214 {dimension_numbers = #tpu.dot_dimension_numbers<[1], [0], [0], [1], [0, 0, 1, 1], [], []>} : vector<8x128xbf16>, vector<128x64xbf16>, vector<8x64xf32> -> vector<8x64xf32>
    %cst_215 = arith.constant 9.99999968E-21 : f32
    %444 = vector.broadcast %cst_215 : f32 to vector<8x64xf32>
    %445 = arith.maximumf %443, %444 : vector<8x64xf32>
    %446 = tpu.reciprocal %445 {approx = true} : vector<8x64xf32> -> vector<8x64xf32>
    %447 = arith.mulf %442, %446 : vector<8x64xf32>
    %448 = arith.truncf %447 : vector<8x64xf32> to vector<8x64xbf16>
    %cst_216 = arith.constant dense<0.000000e+00> : vector<8x64xf32>
    %449 = tpu.matmul %448, %423, %cst_216 {dimension_numbers = #tpu.dot_dimension_numbers<[1], [0], [0], [1], [0, 0, 1, 1], [], []>} : vector<8x64xbf16>, vector<64x64xbf16>, vector<8x64xf32> -> vector<8x64xf32>
    %450 = vector.broadcast %425 : vector<1x64xf32> to vector<8x64xf32>
    %451 = arith.addf %449, %450 : vector<8x64xf32>
    %452 = arith.addf %411, %451 : vector<8x64xf32>
    %cst_217 = arith.constant dense<0.000000e+00> : vector<8xf32>
    %453 = vector.multi_reduction <add>, %452, %cst_217 [1] : vector<8x64xf32> to vector<8xf32>
    %454 = vector.shape_cast %453 : vector<8xf32> to vector<8x1xf32>
    %cst_218 = arith.constant 6.400000e+01 : f32
    %455 = vector.broadcast %cst_218 : f32 to vector<8x1xf32>
    %456 = arith.divf %454, %455 : vector<8x1xf32>
    %457 = vector.broadcast %456 : vector<8x1xf32> to vector<8x64xf32>
    %458 = arith.subf %452, %457 : vector<8x64xf32>
    %459 = arith.mulf %458, %458 : vector<8x64xf32>
    %cst_219 = arith.constant dense<0.000000e+00> : vector<8xf32>
    %460 = vector.multi_reduction <add>, %459, %cst_219 [1] : vector<8x64xf32> to vector<8xf32>
    %461 = vector.shape_cast %460 : vector<8xf32> to vector<8x1xf32>
    %cst_220 = arith.constant 6.400000e+01 : f32
    %462 = vector.broadcast %cst_220 : f32 to vector<8x1xf32>
    %463 = arith.divf %461, %462 : vector<8x1xf32>
    %cst_221 = arith.constant 9.99999974E-6 : f32
    %464 = vector.broadcast %cst_221 : f32 to vector<8x1xf32>
    %465 = arith.addf %463, %464 : vector<8x1xf32>
    %466 = math.rsqrt %465 : vector<8x1xf32>
    %467 = vector.broadcast %466 : vector<8x1xf32> to vector<8x64xf32>
    %468 = arith.mulf %458, %467 : vector<8x64xf32>
    %469 = arith.mulf %468, %347 : vector<8x64xf32>
    %470 = arith.addf %469, %351 : vector<8x64xf32>
    %471 = arith.truncf %470 : vector<8x64xf32> to vector<8x64xbf16>
    %c2_222 = arith.constant 2 : index
    %c0_223 = arith.constant 0 : index
    %c0_224 = arith.constant 0 : index
    %472 = vector.load %arg16[%c2_222, %c0_223, %c0_224] : memref<3x64x256xbf16, #tpu.memory_space<vmem>>, vector<1x64x256xbf16>
    %473 = vector.shape_cast %472 : vector<1x64x256xbf16> to vector<64x256xbf16>
    %cst_225 = arith.constant dense<0.000000e+00> : vector<8x256xf32>
    %474 = tpu.matmul %471, %473, %cst_225 {dimension_numbers = #tpu.dot_dimension_numbers<[1], [0], [0], [1], [0, 0, 1, 1], [], []>} : vector<8x64xbf16>, vector<64x256xbf16>, vector<8x256xf32> -> vector<8x256xf32>
    %c2_226 = arith.constant 2 : index
    %c0_227 = arith.constant 0 : index
    %c0_228 = arith.constant 0 : index
    %475 = vector.load %arg17[%c2_226, %c0_227, %c0_228] : memref<3x1x256xf32, #tpu.memory_space<vmem>>, vector<1x1x256xf32>
    %476 = vector.shape_cast %475 : vector<1x1x256xf32> to vector<1x256xf32>
    %477 = vector.broadcast %476 : vector<1x256xf32> to vector<8x256xf32>
    %478 = arith.addf %474, %477 : vector<8x256xf32>
    %cst_229 = arith.constant 0.000000e+00 : f32
    %479 = vector.broadcast %cst_229 : f32 to vector<8x256xf32>
    %480 = arith.maximumf %478, %479 : vector<8x256xf32>
    %481 = arith.truncf %480 : vector<8x256xf32> to vector<8x256xbf16>
    %c2_230 = arith.constant 2 : index
    %c0_231 = arith.constant 0 : index
    %c0_232 = arith.constant 0 : index
    %482 = vector.load %arg18[%c2_230, %c0_231, %c0_232] : memref<3x256x64xbf16, #tpu.memory_space<vmem>>, vector<1x256x64xbf16>
    %483 = vector.shape_cast %482 : vector<1x256x64xbf16> to vector<256x64xbf16>
    %cst_233 = arith.constant dense<0.000000e+00> : vector<8x64xf32>
    %484 = tpu.matmul %481, %483, %cst_233 {dimension_numbers = #tpu.dot_dimension_numbers<[1], [0], [0], [1], [0, 0, 1, 1], [], []>} : vector<8x256xbf16>, vector<256x64xbf16>, vector<8x64xf32> -> vector<8x64xf32>
    %c2_234 = arith.constant 2 : index
    %c0_235 = arith.constant 0 : index
    %c0_236 = arith.constant 0 : index
    %485 = vector.load %arg19[%c2_234, %c0_235, %c0_236] : memref<3x1x64xf32, #tpu.memory_space<vmem>>, vector<1x1x64xf32>
    %486 = vector.shape_cast %485 : vector<1x1x64xf32> to vector<1x64xf32>
    %487 = vector.broadcast %486 : vector<1x64xf32> to vector<8x64xf32>
    %488 = arith.addf %484, %487 : vector<8x64xf32>
    %489 = arith.addf %470, %488 : vector<8x64xf32>
    %cst_237 = arith.constant dense<0.000000e+00> : vector<8xf32>
    %490 = vector.multi_reduction <add>, %489, %cst_237 [1] : vector<8x64xf32> to vector<8xf32>
    %491 = vector.shape_cast %490 : vector<8xf32> to vector<8x1xf32>
    %cst_238 = arith.constant 6.400000e+01 : f32
    %492 = vector.broadcast %cst_238 : f32 to vector<8x1xf32>
    %493 = arith.divf %491, %492 : vector<8x1xf32>
    %494 = vector.broadcast %493 : vector<8x1xf32> to vector<8x64xf32>
    %495 = arith.subf %489, %494 : vector<8x64xf32>
    %496 = arith.mulf %495, %495 : vector<8x64xf32>
    %cst_239 = arith.constant dense<0.000000e+00> : vector<8xf32>
    %497 = vector.multi_reduction <add>, %496, %cst_239 [1] : vector<8x64xf32> to vector<8xf32>
    %498 = vector.shape_cast %497 : vector<8xf32> to vector<8x1xf32>
    %cst_240 = arith.constant 6.400000e+01 : f32
    %499 = vector.broadcast %cst_240 : f32 to vector<8x1xf32>
    %500 = arith.divf %498, %499 : vector<8x1xf32>
    %cst_241 = arith.constant 9.99999974E-6 : f32
    %501 = vector.broadcast %cst_241 : f32 to vector<8x1xf32>
    %502 = arith.addf %500, %501 : vector<8x1xf32>
    %503 = math.rsqrt %502 : vector<8x1xf32>
    %504 = vector.broadcast %503 : vector<8x1xf32> to vector<8x64xf32>
    %505 = arith.mulf %495, %504 : vector<8x64xf32>
    %506 = arith.mulf %505, %347 : vector<8x64xf32>
    %507 = arith.addf %506, %351 : vector<8x64xf32>
    %508 = arith.mulf %507, %507 : vector<8x64xf32>
    %cst_242 = arith.constant dense<0.000000e+00> : vector<8xf32>
    %509 = vector.multi_reduction <add>, %508, %cst_242 [1] : vector<8x64xf32> to vector<8xf32>
    %510 = vector.shape_cast %509 : vector<8xf32> to vector<8x1xf32>
    %511 = math.sqrt %510 : vector<8x1xf32>
    %cst_243 = arith.constant dense<0xFF800000> : vector<1xf32>
    %512 = vector.multi_reduction <maximumf>, %511, %cst_243 [0] : vector<8x1xf32> to vector<1xf32>
    %513 = vector.shape_cast %512 : vector<1xf32> to vector<1x1xf32>
    %514 = vector.broadcast %513 : vector<1x1xf32> to vector<8x1xf32>
    %515 = arith.subf %511, %514 : vector<8x1xf32>
    %516 = math.exp %515 : vector<8x1xf32>
    %cst_244 = arith.constant dense<0.000000e+00> : vector<1xf32>
    %517 = vector.multi_reduction <add>, %516, %cst_244 [0] : vector<8x1xf32> to vector<1xf32>
    %518 = vector.shape_cast %517 : vector<1xf32> to vector<1x1xf32>
    %519 = tpu.reciprocal %518 {approx = true} : vector<1x1xf32> -> vector<1x1xf32>
    %520 = vector.broadcast %519 : vector<1x1xf32> to vector<8x1xf32>
    %521 = arith.mulf %516, %520 : vector<8x1xf32>
    %522 = vector.broadcast %521 : vector<8x1xf32> to vector<8x64xf32>
    %523 = arith.mulf %522, %507 : vector<8x64xf32>
    %524 = arith.truncf %523 : vector<8x64xf32> to vector<8x64xbf16>
    %c0_245 = arith.constant 0 : index
    %c0_246 = arith.constant 0 : index
    %525 = vector.load %arg22[%c0_245, %c0_246] : memref<64x256xbf16, #tpu.memory_space<vmem>>, vector<64x256xbf16>
    %cst_247 = arith.constant dense<0.000000e+00> : vector<8x256xf32>
    %526 = tpu.matmul %524, %525, %cst_247 {dimension_numbers = #tpu.dot_dimension_numbers<[1], [0], [0], [1], [0, 0, 1, 1], [], []>} : vector<8x64xbf16>, vector<64x256xbf16>, vector<8x256xf32> -> vector<8x256xf32>
    %c0_248 = arith.constant 0 : index
    %c0_249 = arith.constant 0 : index
    %527 = vector.load %arg23[%c0_248, %c0_249] : memref<1x256xf32, #tpu.memory_space<vmem>>, vector<1x256xf32>
    %528 = vector.broadcast %527 : vector<1x256xf32> to vector<8x256xf32>
    %529 = arith.addf %526, %528 : vector<8x256xf32>
    %cst_250 = arith.constant 0.000000e+00 : f32
    %530 = vector.broadcast %cst_250 : f32 to vector<8x256xf32>
    %531 = arith.maximumf %529, %530 : vector<8x256xf32>
    %532 = arith.truncf %531 : vector<8x256xf32> to vector<8x256xbf16>
    %c0_251 = arith.constant 0 : index
    %c0_252 = arith.constant 0 : index
    %533 = vector.load %arg24[%c0_251, %c0_252] : memref<256x128xbf16, #tpu.memory_space<vmem>>, vector<256x128xbf16>
    %cst_253 = arith.constant dense<0.000000e+00> : vector<8x128xf32>
    %534 = tpu.matmul %532, %533, %cst_253 {dimension_numbers = #tpu.dot_dimension_numbers<[1], [0], [0], [1], [0, 0, 1, 1], [], []>} : vector<8x256xbf16>, vector<256x128xbf16>, vector<8x128xf32> -> vector<8x128xf32>
    %c0_254 = arith.constant 0 : index
    %c0_255 = arith.constant 0 : index
    %535 = vector.load %arg25[%c0_254, %c0_255] : memref<1x128xf32, #tpu.memory_space<vmem>>, vector<1x128xf32>
    %536 = vector.broadcast %535 : vector<1x128xf32> to vector<8x128xf32>
    %537 = arith.addf %534, %536 : vector<8x128xf32>
    %c0_256 = arith.constant 0 : index
    %c0_257 = arith.constant 0 : index
    %538 = vector.load %arg26[%c0_256, %c0_257] : memref<8x128xf32, #tpu.memory_space<vmem>>, vector<8x128xf32>
    tpu.vector_store %arg26[%c0_256, %c0_257], %537 {strides = array<i32>} : memref<8x128xf32, #tpu.memory_space<vmem>>, vector<8x128xf32>,
    return
  }
}

</mosaic_0001>

<bundles_post_ra>
// kernel: decoder_forward.1
= control target key start
LH: loop header
LB: loop body
LE: loop exit
PB: predicated region body
PF: predicated region fallthrough
CT: control target
= control target key end

     0   :  { %s7560_s0 = inlined_call_operand.vmem [shape: f32[8,64], index: 0, kind: input, shape index: {}]   ;;  %s7561_s1 = inlined_call_operand.hbm [shape: f32[16,64], index: 1, kind: input, shape index: {}]   ;;  %s7562_s2 = inlined_call_operand.vmem [shape: bf16[64,64], index: 2, kind: input, shape index: {}]   ;;  %s7563_s3 = inlined_call_operand.vmem [shape: bf16[128,64], index: 3, kind: input, shape index: {}]   ;;  %s7564_s4 = inlined_call_operand.hbm [shape: bf16[64,64], index: 4, kind: input, shape index: {}]   ;;  %s7565_s5 = inlined_call_operand.vmem [shape: f32[1,64], index: 5, kind: input, shape index: {}]   ;;  %s7566_s6 = inlined_call_operand.vmem [shape: bf16[3,64,192], index: 6, kind: input, shape index: {}]   ;;  %s7567_s7 = inlined_call_operand.hbm [shape: f32[3,1,192], index: 7, kind: input, shape index: {}]   ;;  %s7568_s8 = inlined_call_operand.hbm [shape: bf16[3,64,64], index: 8, kind: input, shape index: {}]   ;;  %s7569_s9 = inlined_call_operand.vmem [shape: f32[3,1,64], index: 9, kind: input, shape index: {}]   ;;  %s7570_s10 = inlined_call_operand.hbm [shape: bf16[3,64,64], index: 10, kind: input, shape index: {}]   ;;  %s7571_s11 = inlined_call_operand.hbm [shape: f32[3,1,64], index: 11, kind: input, shape index: {}]   ;;  %s7572_s12 = inlined_call_operand.hbm [shape: bf16[64,384], index: 12, kind: input, shape index: {}]   ;;  %s7573_s13 = inlined_call_operand.hbm [shape: f32[1,384], index: 13, kind: input, shape index: {}]   ;;  %s7574_s14 = inlined_call_operand.hbm [shape: bf16[3,64,64], index: 14, kind: input, shape index: {}]   ;;  %s7575_s15 = inlined_call_operand.hbm [shape: f32[3,1,64], index: 15, kind: input, shape index: {}]   ;;  %s7576_s16 = inlined_call_operand.vmem [shape: bf16[3,64,256], index: 16, kind: input, shape index: {}]   ;;  %s7577_s17 = inlined_call_operand.hbm [shape: f32[3,1,256], index: 17, kind: input, shape index: {}]   ;;  %s7578_s18 = inlined_call_operand.vmem [shape: bf16[3,256,64], index: 18, kind: input, shape index: {}]   ;;  %s7579_s19 = inlined_call_operand.hbm [shape: f32[3,1,64], index: 19, kind: input, shape index: {}]   ;;  %s7580_s20 = inlined_call_operand.hbm [shape: f32[3,1,64], index: 20, kind: input, shape index: {}]   ;;  %s7581_s21 = inlined_call_operand.hbm [shape: f32[3,1,64], index: 21, kind: input, shape index: {}]   ;;  %s7582_s22 = inlined_call_operand.vmem [shape: bf16[64,256], index: 22, kind: input, shape index: {}]   ;;  %s7583_s23 = inlined_call_operand.hbm [shape: f32[1,256], index: 23, kind: input, shape index: {}]   ;;  %s7584_s24 = inlined_call_operand.vmem [shape: bf16[256,128], index: 24, kind: input, shape index: {}]   ;;  %s7585_s25 = inlined_call_operand.hbm [shape: f32[1,128], index: 25, kind: input, shape index: {}]   ;;  %s7586_s26 = inlined_call_operand.vmem [shape: f32[8,128], index: 26, kind: output, shape index: {}]  }
   0x1   :  { %7598 = sst [smem:[#allocation36_spill]] %s7560_s0 }
   0x2   :  { %7599 = sst [smem:[#allocation37_spill]] %s7561_s1 }
   0x3   :  { %7600 = sst [smem:[#allocation38_spill]] %s7562_s2 }
   0x4   :  { %7601 = sst [smem:[#allocation39_spill]] %s7563_s3 }
   0x5   :  { %7602 = sst [smem:[#allocation40_spill]] %s7564_s4 }
   0x6   :  { %7603 = sst [smem:[#allocation41_spill]] %s7565_s5 }
   0x7   :  { %7604 = sst [smem:[#allocation42_spill]] %s7566_s6 }
   0x8   :  { %7605 = sst [smem:[#allocation43_spill]] %s7567_s7 }
   0x9   :  { %7606 = sst [smem:[#allocation44_spill]] %s7568_s8 }
   0xa   :  { %7607 = sst [smem:[#allocation45_spill]] %s7569_s9 }
   0xb   :  { %7608 = sst [smem:[#allocation46_spill]] %s7570_s10 }
   0xc   :  { %7609 = sst [smem:[#allocation47_spill]] %s7582_s22 }
   0xd   :  { %7610 = sst [smem:[#allocation48_spill]] %s7584_s24 }
   0xe   :  { %7611 = sst [smem:[#allocation49_spill]] %s7586_s26 }
   0xf   :  { %31 = vsyncpa [#allocation3], 0 }
  0x10   :  { %32 = vsyncpa [#allocation5], 0 }
  0x11   :  { %33 = vsyncpa [#allocation8], 0 }
  0x12   :  { %34 = vsyncpa [#allocation11], 0 }
  0x13   :  { %35 = vsyncpa [#allocation14], 0 }
  0x14   :  { %36 = vsyncpa [#allocation17], 0 }
  0x15   :  { %37 = vsyncpa [#allocation20], 0 }
  0x16   :  { %38 = vsyncpa [#allocation23], 0 }
  0x17   :  { %39 = vsyncpa [#allocation26], 0  ;;  %s6020_s27 = smov [#allocation4]   ;;  %s7612_s8 = sld [smem:[#allocation40_spill]] }
  0x18   :  { %s63_s3 = sshll.u32 %s6020_s27, 4  ;;  %s64_s3 = int_to_ptr.vmem [resolvable:$true] %s63_s3 }
  0x1d   :  { %s5650_s4 = scalar_lea.hbm %s7612_s8, 512 }
  0x1e   :  { %p5651_p0 = scmp.ne.s32.totalorder %s7612_s8, %s5650_s4  ;;  %p5654_p1 = scmp.lt.u32.totalorder %s5650_s4, %s7612_s8 }
  0x20   :  { %p5656_p2 = pnand %p5654_p1, %p5651_p0 }
  0x22   :  { %5659 = shalt.err (!%p5656_p2)
}
  0x23   :  { %s5660_s2 = scalar_lea.vmem %s64_s3, 512  ;;  %p5665_p4 = scmp.lt.s32.totalorder %s64_s3, %s64_s3 }
  0x24   :  { %p5661_p3 = scmp.ne.s32.totalorder %s64_s3, %s5660_s2  ;;  %p5666_p5 = scmp.lt.s32.totalorder %s5660_s2, %s5660_s2 }
  0x26   :  { %p5667_p6 = por %p5666_p5, %p5665_p4 }
  0x28   :  { %p5668_p7 = pnand %p5667_p6, %p5661_p3 }
  0x2a   :  { %5671 = shalt.err (!%p5668_p7)
}
  0x2b   :  { %s6021_s5 = smov 64   ;;  %s6022_s10 = smov 4  }
  0x2c   :  { %69 = dma.hbm_to_vmem [thread:$0]  %s7612_s8, 512, %s64_s3, [#allocation5], %s6021_s5, %s6021_s5, %s6022_s10  }
  0x2d   :  { %s6023_s27 = smov [#allocation7]   ;;  %s6024_s28 = smov [#allocation10]  }
  0x2e   :  { %s91_s7 = sshll.u32 %s6023_s27, 4  ;;  %s117_s4 = sshll.u32 %s6024_s28, 4  ;;  %s92_s7 = int_to_ptr.vmem [resolvable:$true] %s91_s7  ;;  %s118_s4 = int_to_ptr.vmem [resolvable:$true] %s117_s4 }
  0x2f   :  { %s7613_s9 = sld [smem:[#allocation44_spill]] }
  0x35   :  { %s5672_s30 = scalar_lea.hbm %s7613_s9, 1536 }
  0x36   :  { %p5673_p8 = scmp.ne.s32.totalorder %s7613_s9, %s5672_s30  ;;  %p5676_p9 = scmp.lt.u32.totalorder %s5672_s30, %s7613_s9 }
  0x38   :  { %p5678_p10 = pnand %p5676_p9, %p5673_p8 }
  0x3a   :  { %5681 = shalt.err (!%p5678_p10)
}
  0x3b   :  { %s5682_s3 = scalar_lea.vmem %s92_s7, 1536  ;;  %p5687_p12 = scmp.lt.s32.totalorder %s92_s7, %s92_s7 }
  0x3c   :  { %p5683_p11 = scmp.ne.s32.totalorder %s92_s7, %s5682_s3  ;;  %p5688_p13 = scmp.lt.s32.totalorder %s5682_s3, %s5682_s3 }
  0x3e   :  { %p5689_p0 = por %p5688_p13, %p5687_p12 }
  0x40   :  { %p5690_p1 = pnand %p5689_p0, %p5683_p11 }
  0x42   :  { %5693 = shalt.err (!%p5690_p1)
}
  0x43   :  { %97 = dma.hbm_to_vmem [thread:$0]  %s7613_s9, 1536, %s92_s7, [#allocation8], %s6021_s5, %s6021_s5, %s6022_s10  }
  0x44   :  { %s5694_s24 = scalar_lea.hbm %s7571_s11, 48 }
  0x45   :  { %p5695_p2 = scmp.ne.s32.totalorder %s7571_s11, %s5694_s24  ;;  %p5698_p3 = scmp.lt.u32.totalorder %s5694_s24, %s7571_s11 }
  0x47   :  { %p5700_p4 = pnand %p5698_p3, %p5695_p2 }
  0x49   :  { %5703 = shalt.err (!%p5700_p4)
}
  0x4a   :  { %s5704_s0 = scalar_lea.vmem %s118_s4, 48  ;;  %s5708_s30 = scalar_lea.vmem %s118_s4, 64 }
  0x4b   :  { %p5705_p5 = scmp.ne.s32.totalorder %s118_s4, %s5704_s0  ;;  %p5709_p6 = scmp.lt.s32.totalorder %s118_s4, %s118_s4 }
  0x4c   :  { %p5710_p7 = scmp.lt.s32.totalorder %s5708_s30, %s5704_s0 }
  0x4e   :  { %p5711_p8 = por %p5710_p7, %p5709_p6 }
  0x50   :  { %p5712_p9 = pnand %p5711_p8, %p5705_p5 }
  0x52   :  { %5715 = shalt.err (!%p5712_p9)
}
  0x53   :  { %s6025_s7 = smov 16   ;;  %s6026_s9 = smov 1  }
  0x54   :  { %123 = dma.hbm_to_vmem [thread:$0]  %s7571_s11, 48, %s118_s4, [#allocation11], %s6025_s7, %s6025_s7, %s6026_s9  }
  0x55   :  { %s6027_s8 = smov [#allocation13]   ;;  %s6028_s26 = smov [#allocation16]  }
  0x56   :  { %s142_s6 = sshll.u32 %s6027_s8, 4  ;;  %s163_s22 = sshll.u32 %s6028_s26, 4  ;;  %s143_s6 = int_to_ptr.vmem [resolvable:$true] %s142_s6  ;;  %s164_s22 = int_to_ptr.vmem [resolvable:$true] %s163_s22 }
  0x57   :  { %s5716_s27 = scalar_lea.hbm %s7573_s13, 48 }
  0x58   :  { %p5717_p10 = scmp.ne.s32.totalorder %s7573_s13, %s5716_s27  ;;  %p5720_p11 = scmp.lt.u32.totalorder %s5716_s27, %s7573_s13 }
  0x5a   :  { %p5722_p12 = pnand %p5720_p11, %p5717_p10 }
  0x5c   :  { %5725 = shalt.err (!%p5722_p12)
}
  0x5d   :  { %s5726_s11 = scalar_lea.vmem %s143_s6, 48  ;;  %s5730_s4 = scalar_lea.vmem %s143_s6, 64 }
  0x5e   :  { %p5727_p13 = scmp.ne.s32.totalorder %s143_s6, %s5726_s11  ;;  %p5731_p0 = scmp.lt.s32.totalorder %s143_s6, %s143_s6 }
  0x5f   :  { %p5732_p1 = scmp.lt.s32.totalorder %s5730_s4, %s5726_s11 }
  0x61   :  { %p5733_p2 = por %p5732_p1, %p5731_p0 }
  0x63   :  { %p5734_p3 = pnand %p5733_p2, %p5727_p13 }
  0x65   :  { %5737 = shalt.err (!%p5734_p3)
}
  0x66   :  { %145 = dma.hbm_to_vmem [thread:$0]  %s7573_s13, 48, %s143_s6, [#allocation14]  }
  0x67   :  { %s5738_s24 = scalar_lea.hbm %s7575_s15, 48 }
  0x68   :  { %p5739_p4 = scmp.ne.s32.totalorder %s7575_s15, %s5738_s24  ;;  %p5742_p5 = scmp.lt.u32.totalorder %s5738_s24, %s7575_s15 }
  0x6a   :  { %p5744_p6 = pnand %p5742_p5, %p5739_p4 }
  0x6c   :  { %5747 = shalt.err (!%p5744_p6)
}
  0x6d   :  { %s5748_s0 = scalar_lea.vmem %s164_s22, 48  ;;  %s5752_s30 = scalar_lea.vmem %s164_s22, 64 }
  0x6e   :  { %p5749_p7 = scmp.ne.s32.totalorder %s164_s22, %s5748_s0  ;;  %p5753_p8 = scmp.lt.s32.totalorder %s164_s22, %s164_s22 }
  0x6f   :  { %p5754_p9 = scmp.lt.s32.totalorder %s5752_s30, %s5748_s0 }
  0x71   :  { %p5755_p10 = por %p5754_p9, %p5753_p8 }
  0x73   :  { %p5756_p11 = pnand %p5755_p10, %p5749_p7 }
  0x75   :  { %5759 = shalt.err (!%p5756_p11)
}
  0x76   :  { %169 = dma.hbm_to_vmem [thread:$0]  %s7575_s15, 48, %s164_s22, [#allocation17], %s6025_s7, %s6025_s7, %s6026_s9  }
  0x77   :  { %s6029_s11 = smov [#allocation19]   ;;  %s6030_s2 = smov [#allocation22]  }
  0x78   :  { %s191_s4 = sshll.u32 %s6029_s11, 4  ;;  %s215_s3 = sshll.u32 %s6030_s2, 4  ;;  %s192_s4 = int_to_ptr.vmem [resolvable:$true] %s191_s4  ;;  %s216_s3 = int_to_ptr.vmem [resolvable:$true] %s215_s3 }
  0x79   :  { %s5760_s24 = scalar_lea.hbm %s7579_s19, 48 }
  0x7a   :  { %p5761_p12 = scmp.ne.s32.totalorder %s7579_s19, %s5760_s24  ;;  %p5764_p13 = scmp.lt.u32.totalorder %s5760_s24, %s7579_s19 }
  0x7c   :  { %p5766_p0 = pnand %p5764_p13, %p5761_p12 }
  0x7e   :  { %5769 = shalt.err (!%p5766_p0)
}
  0x7f   :  { %s5770_s15 = scalar_lea.vmem %s192_s4, 48  ;;  %s5774_s22 = scalar_lea.vmem %s192_s4, 64 }
  0x80   :  { %p5771_p1 = scmp.ne.s32.totalorder %s192_s4, %s5770_s15  ;;  %p5775_p2 = scmp.lt.s32.totalorder %s192_s4, %s192_s4 }
  0x81   :  { %p5776_p3 = scmp.lt.s32.totalorder %s5774_s22, %s5770_s15 }
  0x83   :  { %p5777_p4 = por %p5776_p3, %p5775_p2 }
  0x85   :  { %p5778_p5 = pnand %p5777_p4, %p5771_p1 }
  0x87   :  { %5781 = shalt.err (!%p5778_p5)
}
  0x88   :  { %197 = dma.hbm_to_vmem [thread:$0]  %s7579_s19, 48, %s192_s4, [#allocation20], %s6025_s7, %s6025_s7, %s6026_s9  }
  0x89   :  { %s5782_s11 = scalar_lea.hbm %s7581_s21, 48 }
  0x8a   :  { %p5783_p6 = scmp.ne.s32.totalorder %s7581_s21, %s5782_s11  ;;  %p5786_p7 = scmp.lt.u32.totalorder %s5782_s11, %s7581_s21 }
  0x8c   :  { %p5788_p8 = pnand %p5786_p7, %p5783_p6 }
  0x8e   :  { %5791 = shalt.err (!%p5788_p8)
}
  0x8f   :  { %s5792_s1 = scalar_lea.vmem %s216_s3, 48  ;;  %s5796_s27 = scalar_lea.vmem %s216_s3, 64 }
  0x90   :  { %p5793_p9 = scmp.ne.s32.totalorder %s216_s3, %s5792_s1  ;;  %p5797_p10 = scmp.lt.s32.totalorder %s216_s3, %s216_s3 }
  0x91   :  { %p5798_p11 = scmp.lt.s32.totalorder %s5796_s27, %s5792_s1 }
  0x93   :  { %p5799_p12 = por %p5798_p11, %p5797_p10 }
  0x95   :  { %p5800_p13 = pnand %p5799_p12, %p5793_p9 }
  0x97   :  { %5803 = shalt.err (!%p5800_p13)
}
  0x98   :  { %221 = dma.hbm_to_vmem [thread:$0]  %s7581_s21, 48, %s216_s3, [#allocation23], %s6025_s7, %s6025_s7, %s6026_s9  }
  0x99   :  { %s6031_s28 = smov [#allocation2]   ;;  %s7614_s0 = sld [smem:[#allocation37_spill]] }
  0x9a   :  { %s47_s29 = sshll.u32 %s6031_s28, 4  ;;  %s48_s29 = int_to_ptr.vmem [resolvable:$true] %s47_s29 }
  0x9f   :  { %s5804_s30 = scalar_lea.hbm %s7614_s0, 256 }
  0xa0   :  { %p5805_p0 = scmp.ne.s32.totalorder %s7614_s0, %s5804_s30  ;;  %p5808_p1 = scmp.lt.u32.totalorder %s5804_s30, %s7614_s0 }
  0xa2   :  { %p5810_p2 = pnand %p5808_p1, %p5805_p0 }
  0xa4   :  { %5813 = shalt.err (!%p5810_p2)
}
  0xa5   :  { %s5814_s8 = scalar_lea.vmem %s48_s29, 256  ;;  %p5819_p4 = scmp.lt.s32.totalorder %s48_s29, %s48_s29 }
  0xa6   :  { %p5815_p3 = scmp.ne.s32.totalorder %s48_s29, %s5814_s8  ;;  %p5820_p5 = scmp.lt.s32.totalorder %s5814_s8, %s5814_s8 }
  0xa8   :  { %p5821_p6 = por %p5820_p5, %p5819_p4 }
  0xaa   :  { %p5822_p7 = pnand %p5821_p6, %p5815_p3 }
  0xac   :  { %5825 = shalt.err (!%p5822_p7)
}
  0xad   :  { %s6032_s21 = smov 128   ;;  %s6033_s3 = smov 8  }
  0xae   :  { %53 = dma.hbm_to_vmem [thread:$0]  %s7614_s0, 256, %s48_s29, [#allocation3], %s6032_s21, %s6032_s21, %s6033_s3  }
  0xaf   :  { %s6034_s1 = smov [#allocation6]   ;;  %s7615_s28 = sld [smem:[#allocation43_spill]] }
  0xb0   :  { %s79_s27 = sshll.u32 %s6034_s1, 4  ;;  %s80_s27 = int_to_ptr.vmem [resolvable:$true] %s79_s27 }
  0xb5   :  { %s5826_s15 = scalar_lea.hbm %s7615_s28, 96 }
  0xb6   :  { %p5827_p8 = scmp.ne.s32.totalorder %s7615_s28, %s5826_s15  ;;  %p5830_p9 = scmp.lt.u32.totalorder %s5826_s15, %s7615_s28 }
  0xb8   :  { %p5832_p10 = pnand %p5830_p9, %p5827_p8 }
  0xba   :  { %5835 = shalt.err (!%p5832_p10)
}
  0xbb   :  { %s5836_s11 = scalar_lea.vmem %s80_s27, 96  ;;  %p5841_p12 = scmp.lt.s32.totalorder %s80_s27, %s80_s27 }
  0xbc   :  { %p5837_p11 = scmp.ne.s32.totalorder %s80_s27, %s5836_s11  ;;  %p5842_p13 = scmp.lt.s32.totalorder %s5836_s11, %s5836_s11 }
  0xbe   :  { %p5843_p0 = por %p5842_p13, %p5841_p12 }
  0xc0   :  { %p5844_p1 = pnand %p5843_p0, %p5837_p11 }
  0xc2   :  { %5847 = shalt.err (!%p5844_p1)
}
  0xc3   :  { %s6035_s29 = smov 32   ;;  %s6036_s0 = smov 2  }
  0xc4   :  { %85 = dma.hbm_to_vmem [thread:$0]  %s7615_s28, 96, %s80_s27, [#allocation5], %s6035_s29, %s6035_s29, %s6036_s0  }
  0xc5   :  { %s6037_s21 = smov [#allocation9]   ;;  %s6038_s26 = smov [#allocation12]  }
  0xc6   :  { %s105_s3 = sshll.u32 %s6037_s21, 4  ;;  %s129_s24 = sshll.u32 %s6038_s26, 4  ;;  %s106_s3 = int_to_ptr.vmem [resolvable:$true] %s105_s3  ;;  %s130_s24 = int_to_ptr.vmem [resolvable:$true] %s129_s24 }
  0xc7   :  { %s7616_s4 = sld [smem:[#allocation46_spill]] }
  0xcd   :  { %s5848_s15 = scalar_lea.hbm %s7616_s4, 1536 }
  0xce   :  { %p5849_p2 = scmp.ne.s32.totalorder %s7616_s4, %s5848_s15  ;;  %p5852_p3 = scmp.lt.u32.totalorder %s5848_s15, %s7616_s4 }
  0xd0   :  { %p5854_p4 = pnand %p5852_p3, %p5849_p2 }
  0xd2   :  { %5857 = shalt.err (!%p5854_p4)
}
  0xd3   :  { %s5858_s27 = scalar_lea.vmem %s106_s3, 1536  ;;  %p5863_p6 = scmp.lt.s32.totalorder %s106_s3, %s106_s3 }
  0xd4   :  { %p5859_p5 = scmp.ne.s32.totalorder %s106_s3, %s5858_s27  ;;  %p5864_p7 = scmp.lt.s32.totalorder %s5858_s27, %s5858_s27 }
  0xd6   :  { %p5865_p8 = por %p5864_p7, %p5863_p6 }
  0xd8   :  { %p5866_p9 = pnand %p5865_p8, %p5859_p5 }
  0xda   :  { %5869 = shalt.err (!%p5866_p9)
}
  0xdb   :  { %111 = dma.hbm_to_vmem [thread:$0]  %s7616_s4, 1536, %s106_s3, [#allocation8], %s6021_s5, %s6021_s5, %s6022_s10  }
  0xdc   :  { %s5870_s21 = scalar_lea.hbm %s7572_s12, 1536 }
  0xdd   :  { %p5871_p10 = scmp.ne.s32.totalorder %s7572_s12, %s5870_s21  ;;  %p5874_p11 = scmp.lt.u32.totalorder %s5870_s21, %s7572_s12 }
  0xdf   :  { %p5876_p12 = pnand %p5874_p11, %p5871_p10 }
  0xe1   :  { %5879 = shalt.err (!%p5876_p12)
}
  0xe2   :  { %s5880_s22 = scalar_lea.vmem %s130_s24, 1536  ;;  %p5885_p0 = scmp.lt.s32.totalorder %s130_s24, %s130_s24 }
  0xe3   :  { %p5881_p13 = scmp.ne.s32.totalorder %s130_s24, %s5880_s22  ;;  %p5886_p1 = scmp.lt.s32.totalorder %s5880_s22, %s5880_s22 }
  0xe5   :  { %p5887_p2 = por %p5886_p1, %p5885_p0 }
  0xe7   :  { %p5888_p3 = pnand %p5887_p2, %p5881_p13 }
  0xe9   :  { %5891 = shalt.err (!%p5888_p3)
}
  0xea   :  { %s6039_s3 = smov 192   ;;  %s6040_s4 = smov 12  }
  0xeb   :  { %135 = dma.hbm_to_vmem [thread:$0]  %s7572_s12, 1536, %s130_s24, [#allocation11], %s6039_s3, %s6039_s3, %s6040_s4  }
  0xec   :  { %s6041_s6 = smov [#allocation15]   ;;  %s6042_s28 = smov [#allocation18]  }
  0xed   :  { %s151_s27 = sshll.u32 %s6041_s6, 4  ;;  %s177_s11 = sshll.u32 %s6042_s28, 4  ;;  %s152_s27 = int_to_ptr.vmem [resolvable:$true] %s151_s27  ;;  %s178_s11 = int_to_ptr.vmem [resolvable:$true] %s177_s11 }
  0xee   :  { %s5892_s21 = scalar_lea.hbm %s7574_s14, 1536 }
  0xef   :  { %p5893_p4 = scmp.ne.s32.totalorder %s7574_s14, %s5892_s21  ;;  %p5896_p5 = scmp.lt.u32.totalorder %s5892_s21, %s7574_s14 }
  0xf1   :  { %p5898_p6 = pnand %p5896_p5, %p5893_p4 }
  0xf3   :  { %5901 = shalt.err (!%p5898_p6)
}
  0xf4   :  { %s5902_s12 = scalar_lea.vmem %s152_s27, 1536  ;;  %p5907_p8 = scmp.lt.s32.totalorder %s152_s27, %s152_s27 }
  0xf5   :  { %p5903_p7 = scmp.ne.s32.totalorder %s152_s27, %s5902_s12  ;;  %p5908_p9 = scmp.lt.s32.totalorder %s5902_s12, %s5902_s12 }
  0xf7   :  { %p5909_p10 = por %p5908_p9, %p5907_p8 }
  0xf9   :  { %p5910_p11 = pnand %p5909_p10, %p5903_p7 }
  0xfb   :  { %5913 = shalt.err (!%p5910_p11)
}
  0xfc   :  { %157 = dma.hbm_to_vmem [thread:$0]  %s7574_s14, 1536, %s152_s27, [#allocation14], %s6021_s5, %s6021_s5, %s6022_s10  }
  0xfd   :  { %s5914_s30 = scalar_lea.hbm %s7577_s17, 96 }
  0xfe   :  { %p5915_p12 = scmp.ne.s32.totalorder %s7577_s17, %s5914_s30  ;;  %p5918_p13 = scmp.lt.u32.totalorder %s5914_s30, %s7577_s17 }
 0x100   :  { %p5920_p0 = pnand %p5918_p13, %p5915_p12 }
 0x102   :  { %5923 = shalt.err (!%p5920_p0)
}
 0x103   :  { %s5924_s8 = scalar_lea.vmem %s178_s11, 96  ;;  %p5929_p2 = scmp.lt.s32.totalorder %s178_s11, %s178_s11 }
 0x104   :  { %p5925_p1 = scmp.ne.s32.totalorder %s178_s11, %s5924_s8  ;;  %p5930_p3 = scmp.lt.s32.totalorder %s5924_s8, %s5924_s8 }
 0x106   :  { %p5931_p4 = por %p5930_p3, %p5929_p2 }
 0x108   :  { %p5932_p5 = pnand %p5931_p4, %p5925_p1 }
 0x10a   :  { %5935 = shalt.err (!%p5932_p5)
}
 0x10b   :  { %183 = dma.hbm_to_vmem [thread:$0]  %s7577_s17, 96, %s178_s11, [#allocation17], %s6035_s29, %s6035_s29, %s6036_s0  }
 0x10c   :  { %s6043_s27 = smov [#allocation21]   ;;  %s6044_s26 = smov [#allocation24]  }
 0x10d   :  { %s203_s21 = sshll.u32 %s6043_s27, 4  ;;  %s230_s1 = sshll.u32 %s6044_s26, 4  ;;  %s204_s21 = int_to_ptr.vmem [resolvable:$true] %s203_s21  ;;  %s231_s1 = int_to_ptr.vmem [resolvable:$true] %s230_s1 }
 0x10e   :  { %s5936_s12 = scalar_lea.hbm %s7580_s20, 48 }
 0x10f   :  { %p5937_p6 = scmp.ne.s32.totalorder %s7580_s20, %s5936_s12  ;;  %p5940_p7 = scmp.lt.u32.totalorder %s5936_s12, %s7580_s20 }
 0x111   :  { %p5942_p8 = pnand %p5940_p7, %p5937_p6 }
 0x113   :  { %5945 = shalt.err (!%p5942_p8)
}
 0x114   :  { %s5946_s17 = scalar_lea.vmem %s204_s21, 48  ;;  %s5950_s29 = scalar_lea.vmem %s204_s21, 64 }
 0x115   :  { %p5947_p9 = scmp.ne.s32.totalorder %s204_s21, %s5946_s17  ;;  %p5951_p10 = scmp.lt.s32.totalorder %s204_s21, %s204_s21 }
 0x116   :  { %p5952_p11 = scmp.lt.s32.totalorder %s5950_s29, %s5946_s17 }
 0x118   :  { %p5953_p12 = por %p5952_p11, %p5951_p10 }
 0x11a   :  { %p5954_p13 = pnand %p5953_p12, %p5947_p9 }
 0x11c   :  { %5957 = shalt.err (!%p5954_p13)
}
 0x11d   :  { %209 = dma.hbm_to_vmem [thread:$0]  %s7580_s20, 48, %s204_s21, [#allocation20], %s6025_s7, %s6025_s7, %s6026_s9  }
 0x11e   :  { %s5958_s6 = scalar_lea.hbm %s7583_s23, 32 }
 0x11f   :  { %p5959_p0 = scmp.ne.s32.totalorder %s7583_s23, %s5958_s6  ;;  %p5962_p1 = scmp.lt.u32.totalorder %s5958_s6, %s7583_s23 }
 0x121   :  { %p5964_p2 = pnand %p5962_p1, %p5959_p0 }
 0x123   :  { %5967 = shalt.err (!%p5964_p2)
}
 0x124   :  { %s5968_s10 = scalar_lea.vmem %s231_s1, 32  ;;  %p5973_p4 = scmp.lt.s32.totalorder %s231_s1, %s231_s1 }
 0x125   :  { %p5969_p3 = scmp.ne.s32.totalorder %s231_s1, %s5968_s10  ;;  %p5974_p5 = scmp.lt.s32.totalorder %s5968_s10, %s5968_s10 }
 0x127   :  { %p5975_p6 = por %p5974_p5, %p5973_p4 }
 0x129   :  { %p5976_p7 = pnand %p5975_p6, %p5969_p3 }
 0x12b   :  { %5979 = shalt.err (!%p5976_p7)
}
 0x12c   :  { %233 = dma.hbm_to_vmem [thread:$0]  %s7583_s23, 32, %s231_s1, [#allocation23]  }
 0x12d   :  { %s6045_s9 = smov [#allocation25]   ;;  %s5980_s19 = scalar_lea.hbm %s7585_s25, 16 }
 0x12e   :  { %s242_s27 = sshll.u32 %s6045_s9, 4  ;;  %p5981_p8 = scmp.ne.s32.totalorder %s7585_s25, %s5980_s19  ;;  %s243_s27 = int_to_ptr.vmem [resolvable:$true] %s242_s27 }
 0x12f   :  { %p5984_p9 = scmp.lt.u32.totalorder %s5980_s19, %s7585_s25 }
 0x131   :  { %p5986_p10 = pnand %p5984_p9, %p5981_p8 }
 0x133   :  { %5989 = shalt.err (!%p5986_p10)
}
 0x134   :  { %s5990_s3 = scalar_lea.vmem %s243_s27, 16  ;;  %s5994_s23 = scalar_lea.vmem %s243_s27, 32 }
 0x135   :  { %p5991_p11 = scmp.ne.s32.totalorder %s243_s27, %s5990_s3  ;;  %p5995_p12 = scmp.lt.s32.totalorder %s243_s27, %s243_s27 }
 0x136   :  { %p5996_p13 = scmp.lt.s32.totalorder %s5994_s23, %s5990_s3 }
 0x138   :  { %p5997_p0 = por %p5996_p13, %p5995_p12 }
 0x13a   :  { %p5998_p1 = pnand %p5997_p0, %p5991_p11 }
 0x13c   :  { %6001 = shalt.err (!%p5998_p1)
}
 0x13d   :  { %245 = dma.hbm_to_vmem [thread:$0]  %s7585_s25, 16, %s243_s27, [#allocation26]  }
 0x13e   :  { %6002 = dma.done.wait [#allocation3], 256  }
 0x13f   :  { %6003 = vsyncadd [#allocation3], 4294967040 }
 0x140   :  { %6004 = dma.done.wait [#allocation5], 608  }
 0x141   :  { %6005 = vsyncadd [#allocation5], 4294966688 }
 0x142   :  { %6006 = dma.done.wait [#allocation8], 3072  }
 0x143   :  { %6007 = vsyncadd [#allocation8], 4294964224 }
 0x144   :  { %6008 = dma.done.wait [#allocation11], 1584  }
 0x145   :  { %6009 = vsyncadd [#allocation11], 4294965712 }
 0x146   :  { %6010 = dma.done.wait [#allocation14], 1584  }
 0x147   :  { %6011 = vsyncadd [#allocation14], 4294965712 }
 0x148   :  { %6012 = dma.done.wait [#allocation17], 144  }
 0x149   :  { %6013 = vsyncadd [#allocation17], 4294967152 }
 0x14a   :  { %6014 = dma.done.wait [#allocation20], 96  }
 0x14b   :  { %6015 = vsyncadd [#allocation20], 4294967200 }
 0x14c   :  { %6016 = dma.done.wait [#allocation23], 80  }
 0x14d   :  { %6017 = vsyncadd [#allocation23], 4294967216 }
 0x14e   :  { %6018 = dma.done.wait [#allocation26], 16  }
 0x14f   :  { %6019 = vsyncadd [#allocation26], 4294967280  ;;  %v6046_v0 = vmov 0.0   ;;  %vm6047_vm0 = vmmov 0   ;;  %v6048_v1 = vmov 0   ;;  %v5374_v2 = vld [vmem:[#allocation4] sm:$0xff]   ;;  %v425_v31 = vlaneseq }
 0x150   :  { %4925 = vmatprep.subr.bf16.mxu0 %v6046_v0  ;;  %4933 = vmatprep.mubr.msk.bf16.mxu0 %vm6047_vm0, %v6046_v0  ;;  %v5375_v3 = vld [vmem:[#allocation4 + $0x8] sm:$0xff]   ;;  %v5376_v6 = vld [vmem:[#allocation4 + $0x10] sm:$0xff]   ;;  %v5377_v9 = vld [vmem:[#allocation4 + $0x18] sm:$0xff]   ;;  %s7617_s29 = sld [smem:[#allocation36_spill]]  ;;  %vm360_vm1 = vcmask 523264   ;;  %s7618_s30 = sld [smem:[#allocation42_spill]] }
 0x151   :  { %539 = vmatprep.mubr.bf16.mxu1 %v6048_v1  ;;  %4926 = vmatpush3.bf16.msra.mxu0 %v5374_v2  ;;  %v5378_v4 = vld [vmem:[#allocation12 + $0x4] ss:$12 sps:$4 sm:$0xff]   ;;  %v5380_v5 = vld [vmem:[#allocation12] ss:$12 sps:$4 sm:$0xff]   ;;  %v5381_v7 = vld [vmem:[#allocation12 + $0x1c] ss:$12 sps:$4 sm:$0xff]  }
 0x152   :  { %4927 = vmatprep.subr.bf16.mxu0 %v6046_v0  ;;  %507 = vmatprep.subr.bf16.mxu1 %v5378_v4  ;;  %v5383_v8 = vld [vmem:[#allocation12 + $0x18] ss:$12 sps:$4 sm:$0xff]   ;;  %v5384_v10 = vld [vmem:[#allocation12 + $0x34] ss:$12 sps:$4 sm:$0xff]   ;;  %v5386_v12 = vld [vmem:[#allocation12 + $0x30] ss:$12 sps:$4 sm:$0xff]  }
 0x153   :  { %508 = vmatpush1.bf16.msra.mxu1 %v5380_v5  ;;  %v5387_v14 = vld [vmem:[#allocation12 + $0x4c] ss:$12 sps:$4 sm:$0xff]   ;;  %v5389_v15 = vld [vmem:[#allocation12 + $0x48] ss:$12 sps:$4 sm:$0xff]   ;;  %s7619_s24 = sld [smem:[#allocation38_spill]]  ;;  %v6481_v32 = vshrl.u32 %v425_v31, 7 }
 0x154   :  { %509 = vmatprep.subr.bf16.mxu1 %v5381_v7  ;;  %v404_v16 = vld [vmem:[#allocation2] sm:$0xff]  ;;  %v405_v17 = vld [vmem:[#allocation2 + $0x8] sm:$0xff]  ;;  %s7620_s0 = sld [smem:[#allocation41_spill]]  ;;  %v6489_v36 = vld [vmem:[#allocation13] sm:$0x7]  ;;  %vm722_vm2 = vcmask 1043456  }
 0x155   :  { %4928 = vmatpush3.bf16.msra.mxu0 %v5375_v3  ;;  %v6429_v20 = vpack.c.bf16 %v405_v17, %v404_v16  ;;  %v6487_v34 = vsub.s32 0, %v6481_v32  ;;  %v6492_v37 = vsub.s32 1, %v6481_v32  ;;  %v5406_v55 = vld [vmem:[#allocation12 + $0x8] ss:$12 sps:$4 sm:$0xff]   ;;  %v5407_v56 = vld [vmem:[#allocation12 + $0x20] ss:$12 sps:$4 sm:$0xff]  }
 0x156   :  { %4929 = vmatprep.subr.bf16.mxu0 %v6046_v0  ;;  %v319_v11 = vld [vmem:[%s7617_s29] sm:$0xff]  ;;  %v5395_v21 = vld [vmem:[%s7618_s30 + $0x14] ss:$8 sps:$4 sm:$0xff]   ;;  %v5393_v22 = vld [vmem:[%s7618_s30 + $0x10] ss:$8 sps:$4 sm:$0xff]   ;;  %s7621_s6 = sld [smem:[#allocation39_spill]] }
 0x157   :  { %510 = vmatpush1.bf16.msra.mxu1 %v5383_v8  ;;  %v320_v13 = vpack.c.bf16 %v319_v11, %v319_v11  ;;  %v5392_v18 = vld [vmem:[%s7618_s30 + $0x4] ss:$8 sps:$4 sm:$0xff]   ;;  %v5390_v19 = vld [vmem:[%s7618_s30] ss:$8 sps:$4 sm:$0xff]   ;;  %v5401_v25 = vld [vmem:[%s7618_s30 + $0x34] ss:$8 sps:$4 sm:$0xff]   ;;  %v428_v43 = vrot.slane %v6489_v36, %v6487_v34  ;;  %v432_v44 = vrot.slane %v6489_v36, %v6492_v37 }
 0x158   :  { %511 = vmatprep.subr.bf16.mxu1 %v5384_v10  ;;  %v5398_v23 = vld [vmem:[%s7618_s30 + $0x24] ss:$8 sps:$4 sm:$0xff]   ;;  %v5396_v24 = vld [vmem:[%s7618_s30 + $0x20] ss:$8 sps:$4 sm:$0xff]   ;;  %v5399_v26 = vld [vmem:[%s7618_s30 + $0x30] ss:$8 sps:$4 sm:$0xff]  }
 0x159   :  { %4930 = vmatpush3.bf16.msra.mxu0 %v5376_v6  ;;  %v6456_v27 = vld [vmem:[%s7619_s24 + $0x10] sm:$0xff]   ;;  %v6461_v28 = vld [vmem:[%s7619_s24] sm:$0xff]   ;;  %v6466_v29 = vld [vmem:[%s7619_s24 + $0x18] sm:$0xff]   ;;  %s7622_s23 = sld [smem:[#allocation45_spill]]  ;;  %s7623_s15 = sld [smem:[#allocation47_spill]] }
 0x15a   :  { %4931 = vmatprep.subr.bf16.mxu0 %v6046_v0  ;;  %v6471_v30 = vld [vmem:[%s7619_s24 + $0x8] sm:$0xff]   ;;  %751 = vrot.lane.b32.xlu1 %v6456_v27, %s6021_s5  ;;  %v4323_v33 = vld [vmem:[%s7620_s0] ss:$0 sm:$0xff]  ;;  %v614_v59 = vld [vmem:[#allocation6] sm:$0x3]  ;;  %s7624_s28 = sld [smem:[#allocation48_spill]] }
 0x15b   :  { %512 = vmatpush1.bf16.msra.mxu1 %v5386_v12  ;;  %747 = vrot.lane.b32.xlu0 %v6461_v28, %s6021_s5  ;;  %v5408_v57 = vld [vmem:[#allocation12 + $0x38] ss:$12 sps:$4 sm:$0xff]   ;;  %v5409_v58 = vld [vmem:[#allocation12 + $0x50] ss:$12 sps:$4 sm:$0xff]   ;;  %v619_v60 = vrot.slane %v614_v59, %v6487_v34  ;;  %v623_v61 = vrot.slane %v614_v59, %v6492_v37  ;;  %s7625_s8 = sld [smem:[#allocation49_spill]] }
 0x15c   :  { %513 = vmatprep.subr.bf16.mxu1 %v5387_v14 }
 0x15d   :  { %4932 = vmatpush3.bf16.msra.mxu0 %v5377_v9 }
 0x15e   :  { %4937 = vmatprep.subr.bf16.mxu0 %v6046_v0  ;;  %753 = vrot.lane.b32.xlu1 %v6466_v29, %s6021_s5 }
 0x15f   :  { %514 = vmatpush1.bf16.msra.mxu1 %v5389_v15  ;;  %749 = vrot.lane.b32.xlu0 %v6471_v30, %s6021_s5 }
 0x160   :  { %4934 = vmatmul.mubr.msk.bf16.vlgmr.msra.gmra.mrb[0].mxu0 %vm360_vm1, %v320_v13  ;;  %669 = vmatprep.subr.bf16.mxu1 %v5392_v18 }
 0x161   :  { %4945 = vmatprep.mubr.msk.bf16.mxu0 %vm6047_vm0, %v6046_v0  ;;  %4938 = vmatpush3.bf16.msra.mxu0 %v5406_v55 }
 0x162   :  { %4341 = vmatmul.mubr.msk.bf16.vlgmr.msra.gmra.mrb[0].mxu1 %vm360_vm1, %v6429_v20  ;;  %4939 = vmatprep.subr.bf16.mxu0 %v6046_v0 }
 0x163   :  { %670 = vmatpush1.bf16.msra.mxu1 %v5390_v19  ;;  %701 = vmatprep.mubr.bf16.mxu1 %v6048_v1 }
 0x164   :  { %671 = vmatprep.subr.bf16.mxu1 %v5395_v21 }
 0x165   :  { %4940 = vmatpush3.bf16.msra.mxu0 %v5407_v56 }
 0x166   :  { %4941 = vmatprep.subr.bf16.mxu0 %v6046_v0 }
 0x167   :  { %672 = vmatpush1.bf16.msra.mxu1 %v5393_v22 }
 0x168   :  { %673 = vmatprep.subr.bf16.mxu1 %v5398_v23 }
 0x169   :  { %4942 = vmatpush3.bf16.msra.mxu0 %v5408_v57 }
 0x16a   :  { %4943 = vmatprep.subr.bf16.mxu0 %v6046_v0 }
 0x16b   :  { %674 = vmatpush1.bf16.msra.mxu1 %v5396_v24  ;;  %v435_v24 = vsub.s32 2, %v6481_v32 }
 0x16c   :  { %675 = vmatprep.subr.bf16.mxu1 %v5401_v25 }
 0x16d   :  { %4944 = vmatpush3.bf16.msra.mxu0 %v5409_v58  ;;  %v436_v25 = vrot.slane %v6489_v36, %v435_v24  ;;  %v6611_v24 = vld [vmem:[%s7621_s6 + $0x18] sm:$0xff]  }
 0x16e   :  { %4949 = vmatprep.subr.bf16.mxu0 %v6046_v0 }
 0x16f   :  { %676 = vmatpush1.bf16.msra.mxu1 %v5399_v26 }
 0x170   :  { %4961 = vmatprep.subr.bf16.mxu1 %v6046_v0  ;;  %4946 = vmatmul.mubr.msk.bf16.vlgmr.msra.gmra.mrb[4].mxu0 %vm360_vm1, %v6429_v20 }
 0x171   :  { %4957 = vmatprep.mubr.msk.bf16.mxu0 %vm6047_vm0, %v6046_v0 }
 0x1cc   :  { %v6521_v8 = vpop.permute.xlu1 %751 }
 0x1cd   :  { %v6519_v62 = vpop.permute.xlu0 %747 }
 0x1d0   :  { %v6529_v17 = vpop.permute.xlu1 %753 }
 0x1d1   :  { %v6523_v11 = vpop.permute.xlu0 %749 }
 0x233   :  { %v398_v35 = vpop.f32.mrb[0].mxu0 }
 0x234   :  { %v6494_v38 = vadd.f32 %v4323_v33, %v398_v35  ;;  %v4935_v39 = vpop.f32.mrb[1].mxu0 }
 0x235   :  { %v401_v40 = vpop.f32.mrb[2].mxu0  ;;  %v541_v45 = vpop.f32.mrb[0].mxu1 }
 0x236   :  { %v605_v41 = vpack.c.bf16 %v6494_v38, %v6494_v38  ;;  %v4936_v42 = vpop.f32.mrb[3].mxu0  ;;  %v542_v46 = vadd.f32 %v541_v45, %v428_v43  ;;  %v543_v47 = vpop.f32.mrb[1].mxu1 }
 0x237   :  { %v544_v48 = vadd.f32 %v543_v47, %v432_v44  ;;  %v545_v49 = vpop.f32.mrb[2].mxu1 }
 0x238   :  { %4353 = vmatmul.mubr.msk.bf16.vlgmr.msra.gmra.mrb[4].mxu1 %vm360_vm1, %v605_v41  ;;  %v546_v50 = vadd.f32 %v545_v49, %v428_v43  ;;  %v547_v51 = vpop.f32.mrb[3].mxu1 }
 0x239   :  { %4969 = vmatprep.mubr.msk.bf16.mxu1 %vm6047_vm0, %v6046_v0  ;;  %v548_v52 = vadd.f32 %v547_v51, %v432_v44 }
 0x23a   :  { %v6505_v53 = vpack.c.bf16 %v546_v50, %v542_v46 }
 0x23b   :  { %v6507_v54 = vpack.c.bf16 %v548_v52, %v544_v48 }
 0x243   :  { %v584_v26 = vpop.f32.mrb[4].mxu0 }
 0x244   :  { %v585_v35 = vadd.f32 %v584_v26, %v436_v25  ;;  %v4947_v39 = vpop.f32.mrb[5].mxu0 }
 0x245   :  { %v587_v40 = vpop.f32.mrb[6].mxu0  ;;  %v6629_v39 = vld [vmem:[%s7621_s6 + $0x28] sm:$0xff]  }
 0x246   :  { %v588_v41 = vadd.f32 %v587_v40, %v436_v25  ;;  %v4948_v42 = vpop.f32.mrb[7].mxu0  ;;  %v1173_v25 = vmul.bf16 %v6611_v24, %v6505_v53  ;;  %v1175_v40 = vmul.bf16 %v6629_v39, %v6505_v53 }
 0x247   :  { %v6638_v42 = vld [vmem:[%s7621_s6 + $0x30] sm:$0xff]  }
 0x248   :  { %v6549_v43 = vpack.c.bf16 %v588_v41, %v585_v35  ;;  %v1224_v26 = vsel %vm360_vm1, %v1173_v25, 0  ;;  %v1230_v41 = vsel %vm360_vm1, %v1175_v40, 0 }
 0x30b   :  { %v703_v63 = vpop.f32.mrb[4].mxu1 }
 0x30c   :  { %v704_v2 = vadd.f32 %v703_v63, %v619_v60  ;;  %v705_v3 = vpop.f32.mrb[5].mxu1 }
 0x30d   :  { %v706_v4 = vadd.f32 %v705_v3, %v623_v61  ;;  %v707_v5 = vpop.f32.mrb[6].mxu1 }
 0x30e   :  { %v719_v6 = vpack.c.bf16 %v704_v2, %v704_v2  ;;  %v708_v7 = vpop.f32.mrb[7].mxu1 }
 0x30f   :  { %v763_v9 = vpack.c.bf16 %v706_v4, %v706_v4 }
 0x310   :  { %v721_v10 = vrot.slane %v719_v6, 4 }
 0x311   :  { %v765_v12 = vrot.slane %v763_v9, 4 }
 0x312   :  { %v725_v13 = vsel %vm722_vm2, %v719_v6, %v721_v10  ;;  %v6582_v10 = vld [vmem:[%s7621_s6] sm:$0xff]  }
 0x313   :  { %v768_v14 = vsel %vm722_vm2, %v763_v9, %v765_v12  ;;  %v759_v15 = vmul.bf16 %v6519_v62, %v725_v13  ;;  %v760_v16 = vmul.bf16 %v6523_v11, %v725_v13  ;;  %v761_v19 = vmul.bf16 %v6521_v8, %v725_v13 }
 0x314   :  { %v774_v18 = vmul.bf16 %v6461_v28, %v768_v14  ;;  %v762_v20 = vmul.bf16 %v6529_v17, %v725_v13  ;;  %v775_v21 = vmul.bf16 %v6471_v30, %v768_v14  ;;  %v776_v22 = vmul.bf16 %v6456_v27, %v768_v14 }
 0x315   :  { %782 = vrot.lane.b32.xlu0 %v759_v15, %s6021_s5  ;;  %784 = vrot.lane.b32.xlu1 %v760_v16, %s6021_s5  ;;  %v777_v23 = vmul.bf16 %v6466_v29, %v768_v14  ;;  %v1170_v14 = vmul.bf16 %v6582_v10, %v6505_v53 }
 0x316   :  { %4962 = vmatpush3.bf16.msra.mxu1 %v774_v18  ;;  %v6591_v18 = vld [vmem:[%s7621_s6 + $0x8] sm:$0xff]  }
 0x317   :  { %4963 = vmatprep.subr.bf16.mxu1 %v6046_v0  ;;  %v1215_v16 = vsel %vm360_vm1, %v1170_v14, 0  ;;  %v6696_v14 = vld [vmem:[#allocation21] ss:$0 sm:$0xff] }
 0x319   :  { %786 = vrot.lane.b32.xlu0 %v761_v19, %s6021_s5  ;;  %788 = vrot.lane.b32.xlu1 %v762_v20, %s6021_s5  ;;  %v1171_v19 = vmul.bf16 %v6591_v18, %v6505_v53 }
 0x31a   :  { %4964 = vmatpush3.bf16.msra.mxu1 %v775_v21  ;;  %v6602_v21 = vld [vmem:[%s7621_s6 + $0x10] sm:$0xff]  }
 0x31b   :  { %4965 = vmatprep.subr.bf16.mxu1 %v6046_v0  ;;  %v1218_v20 = vsel %vm360_vm1, %v1171_v19, 0  ;;  %v6701_v19 = vld [vmem:[#allocation22] ss:$0 sm:$0xff] }
 0x31e   :  { %4966 = vmatpush3.bf16.msra.mxu1 %v776_v22  ;;  %v1172_v22 = vmul.bf16 %v6602_v21, %v6505_v53 }
 0x31f   :  { %4967 = vmatprep.subr.bf16.mxu1 %v6046_v0 }
 0x322   :  { %4968 = vmatpush3.bf16.msra.mxu1 %v777_v23  ;;  %v1221_v23 = vsel %vm360_vm1, %v1172_v22, 0 }
 0x323   :  { %4973 = vmatprep.subr.bf16.mxu1 %v6046_v0 }
 0x387   :  { %v783_v31 = vpop.permute.xlu0 %782  ;;  %v785_v44 = vpop.permute.xlu1 %784 }
 0x388   :  { %v793_v33 = vsel %vm360_vm1, %v783_v31, 0  ;;  %v796_v45 = vsel %vm360_vm1, %v785_v44, 0  ;;  %v6620_v31 = vld [vmem:[%s7621_s6 + $0x20] sm:$0xff]   ;;  %v1176_v44 = vmul.bf16 %v6638_v42, %v6505_v53 }
 0x389   :  { %4950 = vmatpush3.bf16.xpose.msra.mxu0 %v793_v33  ;;  %v1174_v33 = vmul.bf16 %v6620_v31, %v6505_v53 }
 0x38a   :  { %4951 = vmatprep.subr.bf16.mxu0 %v6046_v0 }
 0x38b   :  { %v787_v32 = vpop.permute.xlu0 %786  ;;  %v789_v46 = vpop.permute.xlu1 %788  ;;  %v1227_v35 = vsel %vm360_vm1, %v1174_v33, 0 }
 0x38c   :  { %v799_v36 = vsel %vm360_vm1, %v787_v32, 0  ;;  %v802_v47 = vsel %vm360_vm1, %v789_v46, 0  ;;  %v6647_v32 = vld [vmem:[%s7621_s6 + $0x38] sm:$0xff]  }
 0x391   :  { %4952 = vmatpush3.bf16.xpose.msra.mxu0 %v796_v45  ;;  %v1233_v45 = vsel %vm360_vm1, %v1176_v44, 0 }
 0x392   :  { %4953 = vmatprep.subr.bf16.mxu0 %v6046_v0 }
 0x399   :  { %4954 = vmatpush3.bf16.xpose.msra.mxu0 %v799_v36  ;;  %v1177_v36 = vmul.bf16 %v6647_v32, %v6505_v53 }
 0x39a   :  { %4955 = vmatprep.subr.bf16.mxu0 %v6046_v0 }
 0x39b   :  { %v1236_v46 = vsel %vm360_vm1, %v1177_v36, 0 }
 0x3a1   :  { %4956 = vmatpush3.bf16.xpose.msra.mxu0 %v802_v47  ;;  %v4361_v47 = vld [vmem:[%s7622_s23] ss:$0 sm:$0xff] }
 0x3a2   :  { %4985 = vmatprep.subr.bf16.mxu0 %v6046_v0 }
 0x3a8   :  { %4958 = vmatmul.mubr.msk.bf16.vlgmr.msra.gmra.mrb[8].mxu0 %vm360_vm1, %v719_v6 }
 0x3a9   :  { %4993 = vmatprep.mubr.msk.bf16.mxu0 %vm6047_vm0, %v6046_v0 }
 0x47b   :  { %v838_v48 = vpop.f32.mrb[8].mxu0 }
 0x47c   :  { %v844_v49 = vmul.f32 0.35355338, %v838_v48  ;;  %v4959_v50 = vpop.f32.mrb[9].mxu0 }
 0x47d   :  { %v841_v51 = vpop.f32.mrb[10].mxu0 }
 0x47e   :  { %v4960_v52 = vpop.f32.mrb[11].mxu0  ;;  %v845_v55 = vsel %vm360_vm1, %v844_v49, -inf }
 0x47f   :  { %846 = vmax.xlane.f32.xlu0 %v845_v55 }
 0x50c   :  { %v847_v56 = vpop.xlane.xlu0 %846 }
 0x50d   :  { %v848_v57 = vsub.f32 %v844_v49, %v847_v56 }
 0x50f   :  { %v849_v58 = vmul.f32 1.442695, %v848_v57 }
 0x511   :  { %5590 = vpow2.f32 %v849_v58 }
 0x51b   :  { %v5591_v59 = vpop.eup %5590 }
 0x51c   :  { %v851_v60 = vpack.c.bf16 %v5591_v59, %v5591_v59 }
 0x51e   :  { %4970 = vmatmul.mubr.msk.bf16.vlgmr.msra.gmra.mrb[8].mxu1 %vm360_vm1, %v851_v60 }
 0x51f   :  { %4974 = vmatpush3.bf16.msra.mxu1 %v6461_v28  ;;  %4981 = vmatprep.mubr.msk.bf16.mxu1 %vm6047_vm0, %v6046_v0  ;;  %v5410_v28 = vld [vmem:[#allocation7] sm:$0xff]  }
 0x520   :  { %4975 = vmatprep.subr.bf16.mxu1 %v6046_v0  ;;  %4986 = vmatpush3.bf16.msra.mxu0 %v5410_v28  ;;  %v5422_v28 = vld [vmem:[#allocation9] sm:$0xff]  }
 0x521   :  { %4987 = vmatprep.subr.bf16.mxu0 %v6046_v0 }
 0x523   :  { %4976 = vmatpush3.bf16.msra.mxu1 %v6471_v30  ;;  %v5411_v30 = vld [vmem:[#allocation7 + $0x8] sm:$0xff]  }
 0x524   :  { %4977 = vmatprep.subr.bf16.mxu1 %v6046_v0  ;;  %4988 = vmatpush3.bf16.msra.mxu0 %v5411_v30  ;;  %v5423_v30 = vld [vmem:[#allocation9 + $0x8] sm:$0xff]  }
 0x525   :  { %4989 = vmatprep.subr.bf16.mxu0 %v6046_v0 }
 0x527   :  { %4978 = vmatpush3.bf16.msra.mxu1 %v6456_v27  ;;  %v5412_v27 = vld [vmem:[#allocation7 + $0x10] sm:$0xff]  }
 0x528   :  { %4979 = vmatprep.subr.bf16.mxu1 %v6046_v0  ;;  %4990 = vmatpush3.bf16.msra.mxu0 %v5412_v27  ;;  %v5424_v27 = vld [vmem:[#allocation9 + $0x10] sm:$0xff]  }
 0x529   :  { %4991 = vmatprep.subr.bf16.mxu0 %v6046_v0 }
 0x52b   :  { %4980 = vmatpush3.bf16.msra.mxu1 %v6466_v29  ;;  %v5413_v29 = vld [vmem:[#allocation7 + $0x18] sm:$0xff]  }
 0x52c   :  { %4997 = vmatprep.subr.bf16.mxu1 %v6046_v0  ;;  %4992 = vmatpush3.bf16.msra.mxu0 %v5413_v29  ;;  %v5425_v29 = vld [vmem:[#allocation9 + $0x18] sm:$0xff]  }
 0x52d   :  { %5009 = vmatprep.subr.bf16.mxu0 %v6046_v0 }
 0x52e   :  { %4982 = vmatmul.mubr.msk.bf16.vlgmr.msra.gmra.mrb[12].mxu1 %vm360_vm1, %v851_v60 }
 0x52f   :  { %5005 = vmatprep.mubr.msk.bf16.mxu1 %vm6047_vm0, %v6046_v0  ;;  %4998 = vmatpush3.bf16.msra.mxu1 %v5422_v28 }
 0x530   :  { %4999 = vmatprep.subr.bf16.mxu1 %v6046_v0 }
 0x533   :  { %5000 = vmatpush3.bf16.msra.mxu1 %v5423_v30 }
 0x534   :  { %5001 = vmatprep.subr.bf16.mxu1 %v6046_v0 }
 0x537   :  { %5002 = vmatpush3.bf16.msra.mxu1 %v5424_v27 }
 0x538   :  { %5003 = vmatprep.subr.bf16.mxu1 %v6046_v0 }
 0x53b   :  { %5004 = vmatpush3.bf16.msra.mxu1 %v5425_v29 }
 0x53c   :  { %5029 = vmatprep.subr.bf16.mxu1 %v6046_v0 }
 0x5f1   :  { %v889_v61 = vpop.f32.mrb[8].mxu1 }
 0x5f2   :  { %v4971_v63 = vpop.f32.mrb[9].mxu1 }
 0x5f3   :  { %v892_v2 = vpop.f32.mrb[10].mxu1 }
 0x5f4   :  { %v4972_v3 = vpop.f32.mrb[11].mxu1 }
 0x601   :  { %v929_v4 = vpop.f32.mrb[12].mxu1 }
 0x602   :  { %v935_v5 = vmax.f32 %v929_v4, 1e-20  ;;  %v4983_v6 = vpop.f32.mrb[13].mxu1 }
 0x603   :  { %v932_v7 = vpop.f32.mrb[14].mxu1 }
 0x604   :  { %5592 = vrcp.f32 %v935_v5  ;;  %v4984_v9 = vpop.f32.mrb[15].mxu1 }
 0x60e   :  { %v5593_v12 = vpop.eup %5592 }
 0x60f   :  { %v937_v13 = vmul.f32 %v5593_v12, %v889_v61 }
 0x611   :  { %v938_v15 = vpack.c.bf16 %v937_v13, %v937_v13 }
 0x613   :  { %4994 = vmatmul.mubr.msk.bf16.vlgmr.msra.gmra.mrb[12].mxu0 %vm360_vm1, %v938_v15 }
 0x614   :  { %5010 = vmatpush3.bf16.xpose.msra.mxu0 %v1215_v16  ;;  %5025 = vmatprep.mubr.msk.bf16.mxu0 %vm6047_vm0, %v6046_v0 }
 0x615   :  { %5011 = vmatprep.subr.bf16.mxu0 %v6046_v0 }
 0x61c   :  { %5012 = vmatpush3.bf16.xpose.msra.mxu0 %v1218_v20 }
 0x61d   :  { %5013 = vmatprep.subr.bf16.mxu0 %v6046_v0 }
 0x624   :  { %5014 = vmatpush3.bf16.xpose.msra.mxu0 %v1221_v23 }
 0x625   :  { %5015 = vmatprep.subr.bf16.mxu0 %v6046_v0 }
 0x62c   :  { %5016 = vmatpush3.bf16.xpose.msra.mxu0 %v1224_v26 }
 0x62d   :  { %5017 = vmatprep.subr.bf16.mxu0 %v6046_v0 }
 0x634   :  { %5018 = vmatpush3.bf16.xpose.msra.mxu0 %v1227_v35 }
 0x635   :  { %5019 = vmatprep.subr.bf16.mxu0 %v6046_v0 }
 0x63c   :  { %5020 = vmatpush3.bf16.xpose.msra.mxu0 %v1230_v41 }
 0x63d   :  { %5021 = vmatprep.subr.bf16.mxu0 %v6046_v0 }
 0x644   :  { %5022 = vmatpush3.bf16.xpose.msra.mxu0 %v1233_v45 }
 0x645   :  { %5023 = vmatprep.subr.bf16.mxu0 %v6046_v0 }
 0x64c   :  { %5024 = vmatpush3.bf16.xpose.msra.mxu0 %v1236_v46 }
 0x64d   :  { %5069 = vmatprep.subr.bf16.mxu0 %v6046_v0 }
 0x6e6   :  { %v1006_v48 = vpop.f32.mrb[12].mxu0 }
 0x6e7   :  { %v1007_v49 = vadd.f32 %v4361_v47, %v1006_v48  ;;  %v4995_v50 = vpop.f32.mrb[13].mxu0 }
 0x6e8   :  { %v1009_v51 = vpop.f32.mrb[14].mxu0 }
 0x6e9   :  { %v4996_v52 = vpop.f32.mrb[15].mxu0  ;;  %v1012_v55 = vadd.f32 %v1007_v49, %v6494_v38 }
 0x6ea   :  { %v4367_v52 = vld [vmem:[#allocation10] ss:$0 sm:$0xff] }
 0x6eb   :  { %v1013_v56 = vsel %vm360_vm1, %v1012_v55, 0.0 }
 0x6ec   :  { %1014 = vadd.xlane.f32.xlu1 %v1013_v56 }
 0x6fd   :  { %1180 = vrot.lane.b32.xlu1 %v6591_v18, %s6021_s5 }
 0x701   :  { %1182 = vrot.lane.b32.xlu1 %v6602_v21, %s6021_s5 }
 0x705   :  { %1186 = vrot.lane.b32.xlu1 %v6620_v31, %s6021_s5 }
 0x709   :  { %1190 = vrot.lane.b32.xlu1 %v6638_v42, %s6021_s5 }
 0x779   :  { %v1015_v57 = vpop.xlane.xlu1 %1014 }
 0x77a   :  { %v1017_v58 = vmul.f32 0.015625, %v1015_v57 }
 0x77c   :  { %v1018_v59 = vsub.f32 %v1012_v55, %v1017_v58 }
 0x77d   :  { %v6680_v3 = vpop.permute.xlu1 %1180 }
 0x77e   :  { %v1019_v60 = vmul.f32 %v1018_v59, %v1018_v59  ;;  %v1203_v6 = vmul.bf16 %v6680_v3, %v6505_v53 }
 0x780   :  { %v1020_v38 = vsel %vm360_vm1, %v1019_v60, 0.0 }
 0x781   :  { %1021 = vadd.xlane.f32.xlu0 %v1020_v38  ;;  %v6689_v7 = vpop.permute.xlu1 %1182 }
 0x782   :  { %v1204_v9 = vmul.bf16 %v6689_v7, %v6505_v53 }
 0x785   :  { %v6703_v20 = vpop.permute.xlu1 %1186 }
 0x786   :  { %v1206_v25 = vmul.bf16 %v6703_v20, %v6505_v53 }
 0x789   :  { %v6722_v40 = vpop.permute.xlu1 %1190 }
 0x78a   :  { %v1208_v41 = vmul.bf16 %v6722_v40, %v6505_v53 }
 0x797   :  { %1178 = vrot.lane.b32.xlu0 %v6582_v10, %s6021_s5 }
 0x79b   :  { %1184 = vrot.lane.b32.xlu0 %v6611_v24, %s6021_s5 }
 0x79f   :  { %1188 = vrot.lane.b32.xlu0 %v6629_v39, %s6021_s5 }
 0x7a3   :  { %1192 = vrot.lane.b32.xlu0 %v6647_v32, %s6021_s5 }
 0x80e   :  { %v1022_v61 = vpop.xlane.xlu0 %1021 }
 0x80f   :  { %v1023_v63 = vmul.f32 0.015625, %v1022_v61 }
 0x811   :  { %v1024_v2 = vadd.f32 1e-05, %v1023_v63 }
 0x812   :  { %v6682_v4 = vpop.permute.xlu0 %1178 }
 0x813   :  { %5594 = vrsqrt.f32 %v1024_v2  ;;  %v1202_v5 = vmul.bf16 %v6682_v4, %v6505_v53 }
 0x815   :  { %1293 = vrot.lane.b32.xlu1 %v1202_v5, %s6021_s5 }
 0x816   :  { %v6694_v12 = vpop.permute.xlu0 %1184 }
 0x817   :  { %v1205_v16 = vmul.bf16 %v6694_v12, %v6505_v53 }
 0x819   :  { %1295 = vrot.lane.b32.xlu1 %v1203_v6, %s6021_s5 }
 0x81a   :  { %v6712_v26 = vpop.permute.xlu0 %1188 }
 0x81b   :  { %v1207_v35 = vmul.bf16 %v6712_v26, %v6505_v53 }
 0x81d   :  { %v5595_v13 = vpop.eup %5594  ;;  %1297 = vrot.lane.b32.xlu1 %v1204_v9, %s6021_s5  ;;  %v5426_v9 = vld [vmem:[#allocation15] sm:$0xff]  }
 0x81e   :  { %v1026_v15 = vmul.f32 %v5595_v13, %v1018_v59  ;;  %v6727_v44 = vpop.permute.xlu0 %1192  ;;  %v5427_v13 = vld [vmem:[#allocation15 + $0x8] sm:$0xff]  }
 0x81f   :  { %v1209_v45 = vmul.bf16 %v6727_v44, %v6505_v53 }
 0x820   :  { %v1027_v22 = vmul.f32 %v6696_v14, %v1026_v15  ;;  %v5428_v15 = vld [vmem:[#allocation15 + $0x10] sm:$0xff]  }
 0x821   :  { %1299 = vrot.lane.b32.xlu1 %v1205_v16, %s6021_s5  ;;  %v5429_v16 = vld [vmem:[#allocation15 + $0x18] sm:$0xff]  }
 0x822   :  { %v6708_v23 = vadd.f32 %v6701_v19, %v1027_v22 }
 0x824   :  { %v1029_v33 = vpack.c.bf16 %v6708_v23, %v6708_v23 }
 0x825   :  { %1301 = vrot.lane.b32.xlu1 %v1206_v25, %s6021_s5 }
 0x826   :  { %5006 = vmatmul.mubr.msk.bf16.vlgmr.msra.gmra.mrb[16].mxu1 %vm360_vm1, %v1029_v33 }
 0x827   :  { %5045 = vmatprep.mubr.msk.bf16.mxu1 %vm6047_vm0, %v6046_v0 }
 0x829   :  { %1303 = vrot.lane.b32.xlu1 %v1207_v35, %s6021_s5 }
 0x82d   :  { %1305 = vrot.lane.b32.xlu1 %v1208_v41, %s6021_s5 }
 0x831   :  { %1307 = vrot.lane.b32.xlu1 %v1209_v45, %s6021_s5 }
 0x887   :  { %v1294_v36 = vpop.permute.xlu1 %1293 }
 0x888   :  { %5030 = vmatpush3.bf16.msra.mxu1 %v1294_v36 }
 0x889   :  { %5031 = vmatprep.subr.bf16.mxu1 %v6046_v0 }
 0x88b   :  { %v1296_v46 = vpop.permute.xlu1 %1295 }
 0x88c   :  { %5032 = vmatpush3.bf16.msra.mxu1 %v1296_v46 }
 0x88d   :  { %5033 = vmatprep.subr.bf16.mxu1 %v6046_v0 }
 0x88f   :  { %v1298_v47 = vpop.permute.xlu1 %1297 }
 0x890   :  { %5034 = vmatpush3.bf16.msra.mxu1 %v1298_v47 }
 0x891   :  { %5035 = vmatprep.subr.bf16.mxu1 %v6046_v0 }
 0x893   :  { %v1300_v48 = vpop.permute.xlu1 %1299 }
 0x894   :  { %5036 = vmatpush3.bf16.msra.mxu1 %v1300_v48 }
 0x895   :  { %5037 = vmatprep.subr.bf16.mxu1 %v6046_v0 }
 0x897   :  { %v1302_v49 = vpop.permute.xlu1 %1301 }
 0x898   :  { %5038 = vmatpush3.bf16.msra.mxu1 %v1302_v49 }
 0x899   :  { %5039 = vmatprep.subr.bf16.mxu1 %v6046_v0 }
 0x89b   :  { %v1304_v53 = vpop.permute.xlu1 %1303 }
 0x89c   :  { %5040 = vmatpush3.bf16.msra.mxu1 %v1304_v53 }
 0x89d   :  { %5041 = vmatprep.subr.bf16.mxu1 %v6046_v0 }
 0x89f   :  { %v1306_v50 = vpop.permute.xlu1 %1305 }
 0x8a0   :  { %5042 = vmatpush3.bf16.msra.mxu1 %v1306_v50  ;;  %v4382_v50 = vld [vmem:[#allocation16] ss:$0 sm:$0xff] }
 0x8a1   :  { %5043 = vmatprep.subr.bf16.mxu1 %v6046_v0 }
 0x8a3   :  { %v1308_v51 = vpop.permute.xlu1 %1307 }
 0x8a4   :  { %5044 = vmatpush3.bf16.msra.mxu1 %v1308_v51 }
 0x8a5   :  { %5049 = vmatprep.subr.bf16.mxu1 %v6046_v0 }
 0x8f9   :  { %v1106_v55 = vpop.f32.mrb[16].mxu1 }
 0x8fa   :  { %v1107_v56 = vadd.f32 %v4367_v52, %v1106_v55  ;;  %v5007_v57 = vpop.f32.mrb[17].mxu1 }
 0x8fb   :  { %v1109_v58 = vpop.f32.mrb[18].mxu1 }
 0x8fc   :  { %v1210_v59 = vpack.c.bf16 %v1107_v56, %v1107_v56  ;;  %v5008_v60 = vpop.f32.mrb[19].mxu1 }
 0x8fe   :  { %5026 = vmatmul.mubr.msk.bf16.vlgmr.msra.gmra.mrb[16].mxu0 %vm360_vm1, %v1210_v59 }
 0x8ff   :  { %5077 = vmatprep.mubr.msk.bf16.mxu0 %vm6047_vm0, %v6046_v0  ;;  %5070 = vmatpush3.bf16.msra.mxu0 %v5426_v9  ;;  %v5441_v9 = vld [vmem:[%s7576_s16 + $0x34] ss:$8 sps:$4 sm:$0xff]  }
 0x900   :  { %5071 = vmatprep.subr.bf16.mxu0 %v6046_v0 }
 0x903   :  { %5072 = vmatpush3.bf16.msra.mxu0 %v5427_v13  ;;  %v5442_v13 = vld [vmem:[%s7578_s18 + $0x40] sm:$0xff]  }
 0x904   :  { %5073 = vmatprep.subr.bf16.mxu0 %v6046_v0 }
 0x907   :  { %5074 = vmatpush3.bf16.msra.mxu0 %v5428_v15  ;;  %v5443_v15 = vld [vmem:[%s7578_s18] sm:$0xff]  }
 0x908   :  { %5075 = vmatprep.subr.bf16.mxu0 %v6046_v0 }
 0x90b   :  { %5076 = vmatpush3.bf16.msra.mxu0 %v5429_v16  ;;  %v5444_v16 = vld [vmem:[%s7578_s18 + $0x48] sm:$0xff]  }
 0x90c   :  { %4723 = vmatprep.subr.bf16.mxu0 %v5442_v13 }
 0x9d1   :  { %v1272_v38 = vpop.f32.mrb[16].mxu0 }
 0x9d2   :  { %v1278_v28 = vmul.f32 0.35355338, %v1272_v38  ;;  %v5027_v30 = vpop.f32.mrb[17].mxu0 }
 0x9d3   :  { %v1275_v27 = vpop.f32.mrb[18].mxu0 }
 0x9d4   :  { %1279 = vmax.xlane.f32.xlu0 %v1278_v28  ;;  %v5028_v29 = vpop.f32.mrb[19].mxu0 }
 0x9d5   :  { %v5432_v29 = vld [vmem:[%s7576_s16 + $0x4] ss:$8 sps:$4 sm:$0xff]  }
 0xa61   :  { %v1280_v61 = vpop.xlane.xlu0 %1279 }
 0xa62   :  { %v1281_v63 = vsub.f32 %v1278_v28, %v1280_v61  ;;  %v5430_v61 = vld [vmem:[%s7576_s16] ss:$8 sps:$4 sm:$0xff]  }
 0xa64   :  { %v1282_v2 = vmul.f32 1.442695, %v1281_v63  ;;  %v5433_v63 = vld [vmem:[%s7576_s16 + $0x10] ss:$8 sps:$4 sm:$0xff]  }
 0xa66   :  { %5596 = vpow2.f32 %v1282_v2  ;;  %v5438_v2 = vld [vmem:[%s7576_s16 + $0x24] ss:$8 sps:$4 sm:$0xff]  }
 0xa70   :  { %v5597_v5 = vpop.eup %5596 }
 0xa71   :  { %v1284_v6 = vpack.c.bf16 %v5597_v5, %v5597_v5  ;;  %v5436_v5 = vld [vmem:[%s7576_s16 + $0x20] ss:$8 sps:$4 sm:$0xff]  }
 0xa73   :  { %5046 = vmatmul.mubr.bf16.vlgmr.msra.gmra.mrb[20].mxu1 %v1284_v6 }
 0xa74   :  { %5050 = vmatpush3.bf16.msra.mxu1 %v6582_v10  ;;  %5065 = vmatprep.mubr.msk.bf16.mxu1 %vm6047_vm0, %v6046_v0 }
 0xa75   :  { %5051 = vmatprep.subr.bf16.mxu1 %v6046_v0 }
 0xa78   :  { %5052 = vmatpush3.bf16.msra.mxu1 %v6591_v18 }
 0xa79   :  { %5053 = vmatprep.subr.bf16.mxu1 %v6046_v0 }
 0xa7c   :  { %5054 = vmatpush3.bf16.msra.mxu1 %v6602_v21 }
 0xa7d   :  { %5055 = vmatprep.subr.bf16.mxu1 %v6046_v0 }
 0xa80   :  { %5056 = vmatpush3.bf16.msra.mxu1 %v6611_v24 }
 0xa81   :  { %5057 = vmatprep.subr.bf16.mxu1 %v6046_v0 }
 0xa84   :  { %5058 = vmatpush3.bf16.msra.mxu1 %v6620_v31 }
 0xa85   :  { %5059 = vmatprep.subr.bf16.mxu1 %v6046_v0 }
 0xa88   :  { %5060 = vmatpush3.bf16.msra.mxu1 %v6629_v39 }
 0xa89   :  { %5061 = vmatprep.subr.bf16.mxu1 %v6046_v0 }
 0xa8c   :  { %5062 = vmatpush3.bf16.msra.mxu1 %v6638_v42 }
 0xa8d   :  { %5063 = vmatprep.subr.bf16.mxu1 %v6046_v0 }
 0xa90   :  { %5064 = vmatpush3.bf16.msra.mxu1 %v6647_v32 }
 0xa91   :  { %1554 = vmatprep.subr.bf16.mxu1 %v5432_v29 }
 0xa93   :  { %5066 = vmatmul.mubr.bf16.vlgmr.msra.gmra.mrb[24].mxu1 %v1284_v6  ;;  %v5439_v6 = vld [vmem:[%s7576_s16 + $0x30] ss:$8 sps:$4 sm:$0xff]  }
 0xa94   :  { %1586 = vmatprep.mubr.bf16.mxu1 %v6048_v1  ;;  %1555 = vmatpush1.bf16.msra.mxu1 %v5430_v61 }
 0xb46   :  { %v1351_v22 = vpop.f32.mrb[20].mxu1 }
 0xb47   :  { %v5047_v25 = vpop.f32.mrb[21].mxu1 }
 0xb48   :  { %v1354_v33 = vpop.f32.mrb[22].mxu1  ;;  %v5446_v25 = vld [vmem:[%s7578_s18 + $0x50] sm:$0xff]  }
 0xb49   :  { %v5048_v35 = vpop.f32.mrb[23].mxu1  ;;  %v5447_v33 = vld [vmem:[%s7578_s18 + $0x10] sm:$0xff]  }
 0xb4a   :  { %v5448_v35 = vld [vmem:[%s7578_s18 + $0x58] sm:$0xff]  }
 0xb66   :  { %v1391_v41 = vpop.f32.mrb[24].mxu1 }
 0xb67   :  { %v1397_v45 = vmax.f32 %v1391_v41, 1e-20  ;;  %v5067_v36 = vpop.f32.mrb[25].mxu1  ;;  %v5449_v41 = vld [vmem:[%s7578_s18 + $0x18] sm:$0xff]  }
 0xb68   :  { %v1394_v46 = vpop.f32.mrb[26].mxu1  ;;  %v5451_v36 = vld [vmem:[%s7578_s18 + $0x20] sm:$0xff]  }
 0xb69   :  { %5598 = vrcp.f32 %v1397_v45  ;;  %v5068_v47 = vpop.f32.mrb[27].mxu1  ;;  %v5450_v45 = vld [vmem:[%s7578_s18 + $0x60] sm:$0xff]   ;;  %v5452_v46 = vld [vmem:[%s7578_s18 + $0x68] sm:$0xff]  }
 0xb6a   :  { %v5453_v47 = vld [vmem:[%s7578_s18 + $0x28] sm:$0xff]  }
 0xb73   :  { %v5599_v48 = vpop.eup %5598 }
 0xb74   :  { %v1399_v49 = vmul.f32 %v5599_v48, %v1351_v22  ;;  %v5445_v22 = vld [vmem:[%s7578_s18 + $0x8] sm:$0xff]  }
 0xb76   :  { %v1400_v53 = vpack.c.bf16 %v1399_v49, %v1399_v49 }
 0xb78   :  { %5078 = vmatmul.mubr.msk.bf16.vlgmr.msra.gmra.mrb[20].mxu0 %vm360_vm1, %v1400_v53 }
 0xb79   :  { %4724 = vmatpush3.bf16.msra.mxu0 %v5443_v15 }
 0xb7a   :  { %4725 = vmatprep.subr.bf16.mxu0 %v5444_v16  ;;  %v4397_v16 = vld [vmem:[#allocation19] ss:$0 sm:$0xff] }
 0xb7d   :  { %4726 = vmatpush3.bf16.msra.mxu0 %v5445_v22 }
 0xb7e   :  { %4727 = vmatprep.subr.bf16.mxu0 %v5446_v25 }
 0xb81   :  { %4728 = vmatpush3.bf16.msra.mxu0 %v5447_v33 }
 0xb82   :  { %4729 = vmatprep.subr.bf16.mxu0 %v5448_v35 }
 0xb85   :  { %4730 = vmatpush3.bf16.msra.mxu0 %v5449_v41 }
 0xb86   :  { %4731 = vmatprep.subr.bf16.mxu0 %v5450_v45 }
 0xb89   :  { %4732 = vmatpush3.bf16.msra.mxu0 %v5451_v36 }
 0xb8a   :  { %4733 = vmatprep.subr.bf16.mxu0 %v5452_v46 }
 0xb8d   :  { %4734 = vmatpush3.bf16.msra.mxu0 %v5453_v47 }
 0xc4b   :  { %v1468_v51 = vpop.f32.mrb[20].mxu0 }
 0xc4c   :  { %v1469_v52 = vadd.f32 %v4382_v50, %v1468_v51  ;;  %v5079_v55 = vpop.f32.mrb[21].mxu0 }
 0xc4d   :  { %v1471_v56 = vpop.f32.mrb[22].mxu0 }
 0xc4e   :  { %v5080_v57 = vpop.f32.mrb[23].mxu0  ;;  %v1474_v58 = vadd.f32 %v1469_v52, %v6708_v23  ;;  %v5435_v23 = vld [vmem:[%s7576_s16 + $0x14] ss:$8 sps:$4 sm:$0xff]  }
 0xc4f   :  { %1556 = vmatprep.subr.bf16.mxu1 %v5435_v23  ;;  %v5454_v57 = vld [vmem:[%s7578_s18 + $0x70] sm:$0xff]  }
 0xc50   :  { %v1475_v59 = vsel %vm360_vm1, %v1474_v58, 0.0  ;;  %1557 = vmatpush1.bf16.msra.mxu1 %v5433_v63  ;;  %4735 = vmatprep.subr.bf16.mxu0 %v5454_v57  ;;  %v5464_v57 = vld [vmem:[%s7618_s30 + $0x60] ss:$8 sps:$4 sm:$0xff]  }
 0xc51   :  { %1476 = vadd.xlane.f32.xlu1 %v1475_v59  ;;  %1558 = vmatprep.subr.bf16.mxu1 %v5438_v2  ;;  %v5456_v59 = vld [vmem:[%s7578_s18 + $0x78] sm:$0xff]  }
 0xc54   :  { %1559 = vmatpush1.bf16.msra.mxu1 %v5436_v5 }
 0xc55   :  { %1560 = vmatprep.subr.bf16.mxu1 %v5441_v9 }
 0xc58   :  { %1561 = vmatpush1.bf16.msra.mxu1 %v5439_v6 }
 0xcde   :  { %v1477_v60 = vpop.xlane.xlu1 %1476 }
 0xcdf   :  { %v1478_v38 = vmul.f32 0.015625, %v1477_v60  ;;  %v5457_v60 = vld [vmem:[%s7578_s18 + $0x38] sm:$0xff]  }
 0xce1   :  { %v1479_v28 = vsub.f32 %v1474_v58, %v1478_v38  ;;  %v5455_v58 = vld [vmem:[%s7578_s18 + $0x30] sm:$0xff]   ;;  %v1499_v38 = vld [vmem:[#allocation18] sm:$0x3] }
 0xce2   :  { %4736 = vmatpush3.bf16.msra.mxu0 %v5455_v58  ;;  %v5467_v58 = vld [vmem:[%s7618_s30 + $0x70] ss:$8 sps:$4 sm:$0xff]  }
 0xce3   :  { %v1480_v30 = vmul.f32 %v1479_v28, %v1479_v28  ;;  %4737 = vmatprep.subr.bf16.mxu0 %v5456_v59  ;;  %v5469_v59 = vld [vmem:[%s7618_s30 + $0x74] ss:$8 sps:$4 sm:$0xff]  }
 0xce5   :  { %v1481_v27 = vsel %vm360_vm1, %v1480_v30, 0.0  ;;  %v1508_v30 = vrot.slane %v1499_v38, %v6492_v37 }
 0xce6   :  { %1482 = vadd.xlane.f32.xlu0 %v1481_v27  ;;  %4738 = vmatpush3.bf16.msra.mxu0 %v5457_v60 }
 0xce7   :  { %5093 = vmatprep.subr.bf16.mxu0 %v6046_v0 }
 0xd73   :  { %v1483_v48 = vpop.xlane.xlu0 %1482 }
 0xd74   :  { %v1484_v49 = vmul.f32 0.015625, %v1483_v48 }
 0xd76   :  { %v1485_v53 = vadd.f32 1e-05, %v1484_v49 }
 0xd78   :  { %5600 = vrsqrt.f32 %v1485_v53 }
 0xd82   :  { %v5601_v50 = vpop.eup %5600 }
 0xd83   :  { %v1487_v51 = vmul.f32 %v5601_v50, %v1479_v28  ;;  %v1504_v28 = vrot.slane %v1499_v38, %v6487_v34  ;;  %v5460_v50 = vld [vmem:[%s7618_s30 + $0x44] ss:$8 sps:$4 sm:$0xff]  }
 0xd84   :  { %1872 = vmatprep.subr.bf16.mxu1 %v5460_v50 }
 0xd85   :  { %v1488_v52 = vmul.f32 %v6696_v14, %v1487_v51  ;;  %v5458_v51 = vld [vmem:[%s7618_s30 + $0x40] ss:$8 sps:$4 sm:$0xff]  }
 0xd87   :  { %v1489_v55 = vadd.f32 %v6701_v19, %v1488_v52  ;;  %v5463_v52 = vld [vmem:[%s7618_s30 + $0x54] ss:$8 sps:$4 sm:$0xff]  }
 0xd89   :  { %v1490_v56 = vpack.c.bf16 %v1489_v55, %v1489_v55 }
 0xd8b   :  { %4396 = vmatmul.mubr.msk.bf16.vlgmr.msra.gmra.mrb[28].mxu1 %vm360_vm1, %v1490_v56  ;;  %v5466_v56 = vld [vmem:[%s7618_s30 + $0x64] ss:$8 sps:$4 sm:$0xff]  }
 0xd8c   :  { %1904 = vmatprep.mubr.bf16.mxu1 %v6048_v1  ;;  %1873 = vmatpush1.bf16.msra.mxu1 %v5458_v51  ;;  %v6914_v51 = vld [vmem:[%s7619_s24 + $0x10] sm:$0xff]  }
 0xd8d   :  { %1874 = vmatprep.subr.bf16.mxu1 %v5463_v52 }
 0xe5e   :  { %v1588_v27 = vpop.f32.mrb[28].mxu1 }
 0xe5f   :  { %v1589_v29 = vadd.f32 %v1588_v27, %v1504_v28  ;;  %v1590_v61 = vpop.f32.mrb[29].mxu1 }
 0xe60   :  { %v1591_v23 = vadd.f32 %v1590_v61, %v1508_v30  ;;  %v1592_v63 = vpop.f32.mrb[30].mxu1 }
 0xe61   :  { %v1595_v2 = vmax.f32 %v1589_v29, 0.0  ;;  %v1593_v5 = vpop.f32.mrb[31].mxu1  ;;  %v1817_v63 = vld [vmem:[#allocation6 + $0x2] sm:$0x3] }
 0xe62   :  { %v1596_v6 = vmax.f32 %v1591_v23, 0.0  ;;  %v1826_v5 = vrot.slane %v1817_v63, %v6492_v37 }
 0xe63   :  { %v1597_v13 = vpack.c.bf16 %v1595_v2, %v1595_v2  ;;  %v1822_v2 = vrot.slane %v1817_v63, %v6487_v34 }
 0xe64   :  { %v1598_v9 = vpack.c.bf16 %v1596_v6, %v1596_v6 }
 0xe66   :  { %1766 = vmatprep.mubr.bf16.mxu0 %v1598_v9 }
 0xe67   :  { %1767 = vmatmul.mubr.bf16.vlgmr.msra.gmra.mrb[24].mxu0 %v1597_v13 }
 0xe68   :  { %5101 = vmatprep.mubr.msk.bf16.mxu0 %vm6047_vm0, %v6046_v0 }
 0xf3a   :  { %v4739_v15 = vpop.f32.mrb[24].mxu0 }
 0xf3b   :  { %v4740_v22 = vpop.f32.mrb[25].mxu0 }
 0xf3c   :  { %v4741_v25 = vadd.f32 %v4740_v22, %v4739_v15  ;;  %v4742_v33 = vpop.f32.mrb[26].mxu0 }
 0xf3d   :  { %v4743_v35 = vpop.f32.mrb[27].mxu0 }
 0xf3e   :  { %v1769_v41 = vadd.f32 %v4741_v25, %v4397_v16 }
 0xf40   :  { %v1774_v45 = vadd.f32 %v1769_v41, %v1489_v55  ;;  %v5461_v55 = vld [vmem:[%s7618_s30 + $0x50] ss:$8 sps:$4 sm:$0xff]  }
 0xf41   :  { %1875 = vmatpush1.bf16.msra.mxu1 %v5461_v55  ;;  %v6922_v55 = vld [vmem:[%s7619_s24 + $0x18] sm:$0xff]  }
 0xf42   :  { %v1775_v36 = vsel %vm360_vm1, %v1774_v45, 0.0  ;;  %1876 = vmatprep.subr.bf16.mxu1 %v5466_v56 }
 0xf43   :  { %1776 = vadd.xlane.f32.xlu0 %v1775_v36 }
 0xf45   :  { %1877 = vmatpush1.bf16.msra.mxu1 %v5464_v57 }
 0xf46   :  { %1878 = vmatprep.subr.bf16.mxu1 %v5469_v59 }
 0xf49   :  { %1879 = vmatpush1.bf16.msra.mxu1 %v5467_v58 }
 0xf4a   :  { %5081 = vmatprep.subr.bf16.mxu1 %v6046_v0 }
 0xfd0   :  { %v1777_v46 = vpop.xlane.xlu0 %1776 }
 0xfd1   :  { %v1778_v47 = vmul.f32 0.015625, %v1777_v46  ;;  %v6895_v46 = vld [vmem:[%s7619_s24] sm:$0xff]  }
 0xfd3   :  { %v1779_v48 = vsub.f32 %v1774_v45, %v1778_v47 }
 0xfd5   :  { %v1780_v49 = vmul.f32 %v1779_v48, %v1779_v48 }
 0xfd7   :  { %v1781_v53 = vsel %vm360_vm1, %v1780_v49, 0.0  ;;  %v6905_v49 = vld [vmem:[%s7619_s24 + $0x8] sm:$0xff]  }
 0xfd8   :  { %1782 = vadd.xlane.f32.xlu0 %v1781_v53 }
0x1065   :  { %v1783_v60 = vpop.xlane.xlu0 %1782 }
0x1066   :  { %v1784_v38 = vmul.f32 0.015625, %v1783_v60 }
0x1068   :  { %v1785_v28 = vadd.f32 1e-05, %v1784_v38 }
0x106a   :  { %5602 = vrsqrt.f32 %v1785_v28 }
0x1074   :  { %v5603_v30 = vpop.eup %5602 }
0x1075   :  { %v1787_v27 = vmul.f32 %v5603_v30, %v1779_v48 }
0x1077   :  { %v1788_v29 = vmul.f32 %v6696_v14, %v1787_v27 }
0x1079   :  { %v6879_v61 = vadd.f32 %v6701_v19, %v1788_v29 }
0x107b   :  { %v1806_v23 = vpack.c.bf16 %v6879_v61, %v6879_v61 }
0x107d   :  { %4432 = vmatmul.mubr.msk.bf16.vlgmr.msra.gmra.mrb[32].mxu1 %vm360_vm1, %v1806_v23 }
0x107e   :  { %5089 = vmatprep.mubr.msk.bf16.mxu1 %vm6047_vm0, %v6046_v0 }
0x1150   :  { %v1906_v6 = vpop.f32.mrb[32].mxu1 }
0x1151   :  { %v1907_v9 = vadd.f32 %v1906_v6, %v1822_v2  ;;  %v1908_v13 = vpop.f32.mrb[33].mxu1 }
0x1152   :  { %v1909_v14 = vadd.f32 %v1908_v13, %v1826_v5  ;;  %v1910_v15 = vpop.f32.mrb[34].mxu1 }
0x1153   :  { %v1924_v19 = vpack.c.bf16 %v1907_v9, %v1907_v9  ;;  %v1911_v16 = vpop.f32.mrb[35].mxu1 }
0x1154   :  { %v1935_v22 = vpack.c.bf16 %v1909_v14, %v1909_v14 }
0x1155   :  { %v1926_v25 = vrot.slane %v1924_v19, 4 }
0x1156   :  { %v1937_v33 = vrot.slane %v1935_v22, 4 }
0x1157   :  { %v1929_v35 = vsel %vm722_vm2, %v1924_v19, %v1926_v25  ;;  %v5472_v25 = vld [vmem:[#allocation7 + $0x30] sm:$0xff]  }
0x1158   :  { %v1940_v41 = vsel %vm722_vm2, %v1935_v22, %v1937_v33  ;;  %v1932_v45 = vmul.bf16 %v1929_v35, %v6523_v11  ;;  %v1931_v36 = vmul.bf16 %v1929_v35, %v6519_v62  ;;  %v1933_v48 = vmul.bf16 %v1929_v35, %v6521_v8  ;;  %v5471_v22 = vld [vmem:[#allocation7 + $0x28] sm:$0xff]   ;;  %v5473_v33 = vld [vmem:[#allocation7 + $0x38] sm:$0xff]  }
0x1159   :  { %v1942_v47 = vmul.bf16 %v6895_v46, %v1940_v41  ;;  %v1943_v53 = vmul.bf16 %v6905_v49, %v1940_v41  ;;  %v1934_v50 = vmul.bf16 %v1929_v35, %v6529_v17  ;;  %v1944_v52 = vmul.bf16 %v6914_v51, %v1940_v41 }
0x115a   :  { %1952 = vrot.lane.b32.xlu1 %v1932_v45, %s6021_s5  ;;  %1950 = vrot.lane.b32.xlu0 %v1931_v36, %s6021_s5  ;;  %v1945_v56 = vmul.bf16 %v6922_v55, %v1940_v41 }
0x115b   :  { %5094 = vmatpush3.bf16.msra.mxu0 %v1942_v47 }
0x115c   :  { %5095 = vmatprep.subr.bf16.mxu0 %v6046_v0 }
0x115e   :  { %1954 = vrot.lane.b32.xlu0 %v1933_v48, %s6021_s5 }
0x115f   :  { %5096 = vmatpush3.bf16.msra.mxu0 %v1943_v53 }
0x1160   :  { %5097 = vmatprep.subr.bf16.mxu0 %v6046_v0 }
0x1162   :  { %1956 = vrot.lane.b32.xlu0 %v1934_v50, %s6021_s5 }
0x1163   :  { %5098 = vmatpush3.bf16.msra.mxu0 %v1944_v52 }
0x1164   :  { %5099 = vmatprep.subr.bf16.mxu0 %v6046_v0 }
0x1167   :  { %5100 = vmatpush3.bf16.msra.mxu0 %v1945_v56 }
0x1168   :  { %5105 = vmatprep.subr.bf16.mxu0 %v6046_v0 }
0x11cc   :  { %v1951_v57 = vpop.permute.xlu0 %1950  ;;  %v1953_v59 = vpop.permute.xlu1 %1952 }
0x11cd   :  { %v1961_v58 = vsel %vm360_vm1, %v1951_v57, 0  ;;  %v1964_v60 = vsel %vm360_vm1, %v1953_v59, 0 }
0x11ce   :  { %5082 = vmatpush3.bf16.xpose.msra.mxu1 %v1961_v58  ;;  %v2293_v58 = vmul.bf16 %v6582_v10, %v6507_v54  ;;  %v2295_v10 = vmul.bf16 %v6602_v21, %v6507_v54  ;;  %v2298_v21 = vmul.bf16 %v6629_v39, %v6507_v54  ;;  %v4437_v39 = vld [vmem:[%s7622_s23 + $0x1] ss:$0 sm:$0xff] }
0x11cf   :  { %5083 = vmatprep.subr.bf16.mxu1 %v6046_v0 }
0x11d0   :  { %v1955_v38 = vpop.permute.xlu0 %1954 }
0x11d1   :  { %v1967_v28 = vsel %vm360_vm1, %v1955_v38, 0  ;;  %v2294_v38 = vmul.bf16 %v6591_v18, %v6507_v54  ;;  %v2297_v18 = vmul.bf16 %v6620_v31, %v6507_v54  ;;  %v2300_v31 = vmul.bf16 %v6647_v32, %v6507_v54 }
0x11d2   :  { %v2302_v32 = vmul.bf16 %v6507_v54, %v6680_v3 }
0x11d4   :  { %v1957_v30 = vpop.permute.xlu0 %1956 }
0x11d5   :  { %v1970_v27 = vsel %vm360_vm1, %v1957_v30, 0  ;;  %v2320_v30 = vsel %vm360_vm1, %v2295_v10, 0  ;;  %v7024_v10 = vld [vmem:[#allocation22 + $0x1] ss:$0 sm:$0xff] }
0x11d6   :  { %5084 = vmatpush3.bf16.xpose.msra.mxu1 %v1964_v60  ;;  %v2314_v60 = vsel %vm360_vm1, %v2293_v58, 0 }
0x11d7   :  { %5085 = vmatprep.subr.bf16.mxu1 %v6046_v0 }
0x11de   :  { %5086 = vmatpush3.bf16.xpose.msra.mxu1 %v1967_v28  ;;  %v2317_v28 = vsel %vm360_vm1, %v2294_v38, 0  ;;  %v7022_v38 = vld [vmem:[#allocation21 + $0x1] ss:$0 sm:$0xff] }
0x11df   :  { %5087 = vmatprep.subr.bf16.mxu1 %v6046_v0 }
0x11e6   :  { %5088 = vmatpush3.bf16.xpose.msra.mxu1 %v1970_v27  ;;  %v2296_v27 = vmul.bf16 %v6611_v24, %v6507_v54  ;;  %v2299_v24 = vmul.bf16 %v6638_v42, %v6507_v54 }
0x11e7   :  { %5117 = vmatprep.subr.bf16.mxu1 %v6046_v0 }
0x11ed   :  { %5090 = vmatmul.mubr.msk.bf16.vlgmr.msra.gmra.mrb[36].mxu1 %vm360_vm1, %v1924_v19  ;;  %v5470_v19 = vld [vmem:[#allocation7 + $0x20] sm:$0xff]  }
0x11ee   :  { %5125 = vmatprep.mubr.msk.bf16.mxu1 %vm6047_vm0, %v6046_v0  ;;  %5118 = vmatpush3.bf16.msra.mxu1 %v5470_v19  ;;  %v2306_v19 = vmul.bf16 %v6507_v54, %v6712_v26 }
0x11ef   :  { %5119 = vmatprep.subr.bf16.mxu1 %v6046_v0 }
0x11f2   :  { %5120 = vmatpush3.bf16.msra.mxu1 %v5471_v22 }
0x11f3   :  { %5121 = vmatprep.subr.bf16.mxu1 %v6046_v0 }
0x11f6   :  { %5122 = vmatpush3.bf16.msra.mxu1 %v5472_v25 }
0x11f7   :  { %5123 = vmatprep.subr.bf16.mxu1 %v6046_v0 }
0x11fa   :  { %5124 = vmatpush3.bf16.msra.mxu1 %v5473_v33 }
0x11fb   :  { %5141 = vmatprep.subr.bf16.mxu1 %v6046_v0 }
0x12c0   :  { %v2006_v29 = vpop.f32.mrb[36].mxu1 }
0x12c1   :  { %v2012_v23 = vmul.f32 0.35355338, %v2006_v29  ;;  %v5091_v63 = vpop.f32.mrb[37].mxu1  ;;  %v2323_v29 = vsel %vm360_vm1, %v2296_v27, 0 }
0x12c2   :  { %v2009_v2 = vpop.f32.mrb[38].mxu1  ;;  %v2329_v63 = vsel %vm360_vm1, %v2298_v21, 0 }
0x12c3   :  { %v5092_v5 = vpop.f32.mrb[39].mxu1  ;;  %v2013_v6 = vsel %vm360_vm1, %v2012_v23, -inf  ;;  %v2332_v2 = vsel %vm360_vm1, %v2299_v24, 0 }
0x12c4   :  { %2014 = vmax.xlane.f32.xlu0 %v2013_v6  ;;  %v2335_v5 = vsel %vm360_vm1, %v2300_v31, 0 }
0x1351   :  { %v2015_v9 = vpop.xlane.xlu0 %2014 }
0x1352   :  { %v2016_v13 = vsub.f32 %v2012_v23, %v2015_v9  ;;  %v2326_v23 = vsel %vm360_vm1, %v2297_v18, 0 }
0x1354   :  { %v2017_v14 = vmul.f32 1.442695, %v2016_v13 }
0x1356   :  { %5604 = vpow2.f32 %v2017_v14 }
0x1360   :  { %v5605_v15 = vpop.eup %5604 }
0x1361   :  { %v2019_v16 = vpack.c.bf16 %v5605_v15, %v5605_v15 }
0x1363   :  { %5102 = vmatmul.mubr.msk.bf16.vlgmr.msra.gmra.mrb[28].mxu0 %vm360_vm1, %v2019_v16 }
0x1364   :  { %5106 = vmatpush3.bf16.msra.mxu0 %v6895_v46  ;;  %5113 = vmatprep.mubr.msk.bf16.mxu0 %vm6047_vm0, %v6046_v0 }
0x1365   :  { %5107 = vmatprep.subr.bf16.mxu0 %v6046_v0 }
0x1368   :  { %5108 = vmatpush3.bf16.msra.mxu0 %v6905_v49 }
0x1369   :  { %5109 = vmatprep.subr.bf16.mxu0 %v6046_v0 }
0x136c   :  { %5110 = vmatpush3.bf16.msra.mxu0 %v6914_v51 }
0x136d   :  { %5111 = vmatprep.subr.bf16.mxu0 %v6046_v0 }
0x1370   :  { %5112 = vmatpush3.bf16.msra.mxu0 %v6922_v55 }
0x1371   :  { %5129 = vmatprep.subr.bf16.mxu0 %v6046_v0 }
0x1373   :  { %5114 = vmatmul.mubr.msk.bf16.vlgmr.msra.gmra.mrb[32].mxu0 %vm360_vm1, %v2019_v16 }
0x1374   :  { %5137 = vmatprep.mubr.msk.bf16.mxu0 %vm6047_vm0, %v6046_v0 }
0x1436   :  { %v2057_v35 = vpop.f32.mrb[28].mxu0 }
0x1437   :  { %v5103_v41 = vpop.f32.mrb[29].mxu0 }
0x1438   :  { %v2060_v45 = vpop.f32.mrb[30].mxu0 }
0x1439   :  { %v5104_v36 = vpop.f32.mrb[31].mxu0  ;;  %v5474_v45 = vld [vmem:[#allocation9 + $0x20] sm:$0xff]  }
0x143a   :  { %5130 = vmatpush3.bf16.msra.mxu0 %v5474_v45  ;;  %v2303_v36 = vmul.bf16 %v6507_v54, %v6689_v7 }
0x143b   :  { %5131 = vmatprep.subr.bf16.mxu0 %v6046_v0 }
0x1446   :  { %v2097_v47 = vpop.f32.mrb[32].mxu0 }
0x1447   :  { %v2103_v48 = vmax.f32 %v2097_v47, 1e-20  ;;  %v5115_v53 = vpop.f32.mrb[33].mxu0  ;;  %v5475_v47 = vld [vmem:[#allocation9 + $0x28] sm:$0xff]  }
0x1448   :  { %v2100_v50 = vpop.f32.mrb[34].mxu0  ;;  %5132 = vmatpush3.bf16.msra.mxu0 %v5475_v47  ;;  %v5476_v53 = vld [vmem:[#allocation9 + $0x30] sm:$0xff]  }
0x1449   :  { %5606 = vrcp.f32 %v2103_v48  ;;  %v5116_v52 = vpop.f32.mrb[35].mxu0  ;;  %5133 = vmatprep.subr.bf16.mxu0 %v6046_v0  ;;  %v2304_v48 = vmul.bf16 %v6507_v54, %v6694_v12  ;;  %v5477_v50 = vld [vmem:[#allocation9 + $0x38] sm:$0xff]   ;;  %v7052_v47 = vld [vmem:[%s7621_s6] sm:$0xff]  }
0x144a   :  { %v2305_v52 = vmul.bf16 %v6507_v54, %v6703_v20 }
0x144c   :  { %5134 = vmatpush3.bf16.msra.mxu0 %v5476_v53  ;;  %v7075_v53 = vld [vmem:[%s7621_s6 + $0x18] sm:$0xff]  }
0x144d   :  { %5135 = vmatprep.subr.bf16.mxu0 %v6046_v0 }
0x1450   :  { %5136 = vmatpush3.bf16.msra.mxu0 %v5477_v50  ;;  %v7082_v50 = vld [vmem:[%s7621_s6 + $0x20] sm:$0xff]  }
0x1451   :  { %5161 = vmatprep.subr.bf16.mxu0 %v6046_v0 }
0x1453   :  { %v5607_v56 = vpop.eup %5606 }
0x1454   :  { %v2105_v57 = vmul.f32 %v5607_v56, %v2057_v35  ;;  %v2307_v56 = vmul.bf16 %v6507_v54, %v6722_v40 }
0x1456   :  { %v2106_v59 = vpack.c.bf16 %v2105_v57, %v2105_v57 }
0x1458   :  { %5126 = vmatmul.mubr.msk.bf16.vlgmr.msra.gmra.mrb[40].mxu1 %vm360_vm1, %v2106_v59 }
0x1459   :  { %5142 = vmatpush3.bf16.xpose.msra.mxu1 %v2314_v60  ;;  %5157 = vmatprep.mubr.msk.bf16.mxu1 %vm6047_vm0, %v6046_v0 }
0x145a   :  { %5143 = vmatprep.subr.bf16.mxu1 %v6046_v0 }
0x1461   :  { %5144 = vmatpush3.bf16.xpose.msra.mxu1 %v2317_v28 }
0x1462   :  { %5145 = vmatprep.subr.bf16.mxu1 %v6046_v0 }
0x1469   :  { %5146 = vmatpush3.bf16.xpose.msra.mxu1 %v2320_v30 }
0x146a   :  { %5147 = vmatprep.subr.bf16.mxu1 %v6046_v0 }
0x1471   :  { %5148 = vmatpush3.bf16.xpose.msra.mxu1 %v2323_v29 }
0x1472   :  { %5149 = vmatprep.subr.bf16.mxu1 %v6046_v0 }
0x1479   :  { %5150 = vmatpush3.bf16.xpose.msra.mxu1 %v2326_v23 }
0x147a   :  { %5151 = vmatprep.subr.bf16.mxu1 %v6046_v0 }
0x1481   :  { %5152 = vmatpush3.bf16.xpose.msra.mxu1 %v2329_v63 }
0x1482   :  { %5153 = vmatprep.subr.bf16.mxu1 %v6046_v0 }
0x1489   :  { %5154 = vmatpush3.bf16.xpose.msra.mxu1 %v2332_v2 }
0x148a   :  { %5155 = vmatprep.subr.bf16.mxu1 %v6046_v0 }
0x1491   :  { %5156 = vmatpush3.bf16.xpose.msra.mxu1 %v2335_v5  ;;  %v4443_v5 = vld [vmem:[#allocation10 + $0x1] ss:$0 sm:$0xff] }
0x1492   :  { %5201 = vmatprep.subr.bf16.mxu1 %v6046_v0 }
0x152b   :  { %v2174_v6 = vpop.f32.mrb[40].mxu1 }
0x152c   :  { %v2175_v9 = vadd.f32 %v4437_v39, %v2174_v6  ;;  %v5127_v42 = vpop.f32.mrb[41].mxu1 }
0x152d   :  { %v2177_v13 = vpop.f32.mrb[42].mxu1 }
0x152e   :  { %v5128_v14 = vpop.f32.mrb[43].mxu1  ;;  %v2180_v15 = vadd.f32 %v2175_v9, %v6879_v61  ;;  %v2301_v61 = vmul.bf16 %v6507_v54, %v6682_v4 }
0x1530   :  { %v2181_v16 = vsel %vm360_vm1, %v2180_v15, 0.0 }
0x1531   :  { %2182 = vadd.xlane.f32.xlu1 %v2181_v16 }
0x1542   :  { %2394 = vrot.lane.b32.xlu1 %v2302_v32, %s6021_s5 }
0x1546   :  { %2402 = vrot.lane.b32.xlu1 %v2306_v19, %s6021_s5 }
0x15be   :  { %v2183_v22 = vpop.xlane.xlu1 %2182 }
0x15bf   :  { %v2184_v25 = vmul.f32 0.015625, %v2183_v22 }
0x15c1   :  { %v2185_v33 = vsub.f32 %v2180_v15, %v2184_v25  ;;  %v2308_v25 = vmul.bf16 %v6507_v54, %v6727_v44  ;;  %v7061_v54 = vld [vmem:[%s7621_s6 + $0x8] sm:$0xff]  }
0x15c2   :  { %v2395_v23 = vpop.permute.xlu1 %2394 }
0x15c3   :  { %v2186_v35 = vmul.f32 %v2185_v33, %v2185_v33 }
0x15c5   :  { %v2187_v41 = vsel %vm360_vm1, %v2186_v35, 0.0 }
0x15c6   :  { %2188 = vadd.xlane.f32.xlu0 %v2187_v41  ;;  %v2403_v2 = vpop.permute.xlu1 %2402 }
0x15dc   :  { %2392 = vrot.lane.b32.xlu0 %v2301_v61, %s6021_s5 }
0x15e0   :  { %2396 = vrot.lane.b32.xlu0 %v2303_v36, %s6021_s5 }
0x15e4   :  { %2398 = vrot.lane.b32.xlu0 %v2304_v48, %s6021_s5  ;;  %v7068_v48 = vld [vmem:[%s7621_s6 + $0x10] sm:$0xff]  }
0x15e8   :  { %2400 = vrot.lane.b32.xlu0 %v2305_v52, %s6021_s5  ;;  %v7089_v52 = vld [vmem:[%s7621_s6 + $0x28] sm:$0xff]  }
0x15ec   :  { %2404 = vrot.lane.b32.xlu0 %v2307_v56, %s6021_s5  ;;  %v7096_v56 = vld [vmem:[%s7621_s6 + $0x30] sm:$0xff]  }
0x1653   :  { %v2189_v57 = vpop.xlane.xlu0 %2188 }
0x1654   :  { %v2190_v58 = vmul.f32 0.015625, %v2189_v57  ;;  %v7103_v57 = vld [vmem:[%s7621_s6 + $0x38] sm:$0xff]  }
0x1656   :  { %v2191_v59 = vadd.f32 1e-05, %v2190_v58  ;;  %v5478_v58 = vld [vmem:[#allocation15 + $0x20] sm:$0xff]  }
0x1657   :  { %v2393_v29 = vpop.permute.xlu0 %2392 }
0x1658   :  { %5608 = vrsqrt.f32 %v2191_v59  ;;  %v5479_v59 = vld [vmem:[#allocation15 + $0x28] sm:$0xff]  }
0x165b   :  { %v2397_v21 = vpop.permute.xlu0 %2396 }
0x165f   :  { %v2399_v63 = vpop.permute.xlu0 %2398 }
0x1662   :  { %v5609_v60 = vpop.eup %5608 }
0x1663   :  { %v2193_v28 = vmul.f32 %v5609_v60, %v2185_v33  ;;  %v2401_v24 = vpop.permute.xlu0 %2400  ;;  %v5480_v60 = vld [vmem:[#allocation15 + $0x30] sm:$0xff]  }
0x1665   :  { %v2194_v30 = vmul.f32 %v7022_v38, %v2193_v28  ;;  %v5481_v28 = vld [vmem:[#allocation15 + $0x38] sm:$0xff]  }
0x1667   :  { %v7028_v27 = vadd.f32 %v7024_v10, %v2194_v30  ;;  %v2405_v31 = vpop.permute.xlu0 %2404 }
0x1669   :  { %v2196_v18 = vpack.c.bf16 %v7028_v27, %v7028_v27 }
0x166b   :  { %5138 = vmatmul.mubr.msk.bf16.vlgmr.msra.gmra.mrb[36].mxu0 %vm360_vm1, %v2196_v18 }
0x166c   :  { %5162 = vmatpush3.bf16.msra.mxu0 %v2393_v29  ;;  %5177 = vmatprep.mubr.msk.bf16.mxu0 %vm6047_vm0, %v6046_v0 }
0x166d   :  { %5163 = vmatprep.subr.bf16.mxu0 %v6046_v0 }
0x1670   :  { %5164 = vmatpush3.bf16.msra.mxu0 %v2395_v23 }
0x1671   :  { %5165 = vmatprep.subr.bf16.mxu0 %v6046_v0 }
0x1674   :  { %5166 = vmatpush3.bf16.msra.mxu0 %v2397_v21 }
0x1675   :  { %5167 = vmatprep.subr.bf16.mxu0 %v6046_v0 }
0x1678   :  { %5168 = vmatpush3.bf16.msra.mxu0 %v2399_v63 }
0x1679   :  { %5169 = vmatprep.subr.bf16.mxu0 %v6046_v0 }
0x167c   :  { %5170 = vmatpush3.bf16.msra.mxu0 %v2401_v24 }
0x167d   :  { %5171 = vmatprep.subr.bf16.mxu0 %v6046_v0 }
0x1680   :  { %5172 = vmatpush3.bf16.msra.mxu0 %v2403_v2 }
0x1681   :  { %5173 = vmatprep.subr.bf16.mxu0 %v6046_v0 }
0x1684   :  { %5174 = vmatpush3.bf16.msra.mxu0 %v2405_v31 }
0x1685   :  { %5175 = vmatprep.subr.bf16.mxu0 %v6046_v0 }
0x173e   :  { %v2275_v39 = vpop.f32.mrb[36].mxu0 }
0x173f   :  { %v2276_v6 = vadd.f32 %v4443_v5, %v2275_v39  ;;  %v5139_v9 = vpop.f32.mrb[37].mxu0 }
0x1740   :  { %v2278_v42 = vpop.f32.mrb[38].mxu0  ;;  %v4450_v9 = vld [vmem:[#allocation16 + $0x1] ss:$0 sm:$0xff] }
0x1741   :  { %v2309_v13 = vpack.c.bf16 %v2276_v6, %v2276_v6  ;;  %v5140_v14 = vpop.f32.mrb[39].mxu0 }
0x1743   :  { %5158 = vmatmul.mubr.msk.bf16.vlgmr.msra.gmra.mrb[44].mxu1 %vm360_vm1, %v2309_v13 }
0x1744   :  { %5209 = vmatprep.mubr.msk.bf16.mxu1 %vm6047_vm0, %v6046_v0  ;;  %5202 = vmatpush3.bf16.msra.mxu1 %v5478_v58  ;;  %v5490_v58 = vld [vmem:[%s7576_s16 + $0x64] ss:$8 sps:$4 sm:$0xff]  }
0x1745   :  { %5203 = vmatprep.subr.bf16.mxu1 %v6046_v0 }
0x1748   :  { %5204 = vmatpush3.bf16.msra.mxu1 %v5479_v59  ;;  %v5488_v59 = vld [vmem:[%s7576_s16 + $0x60] ss:$8 sps:$4 sm:$0xff]  }
0x1749   :  { %5205 = vmatprep.subr.bf16.mxu1 %v6046_v0 }
0x174c   :  { %5206 = vmatpush3.bf16.msra.mxu1 %v5480_v60  ;;  %v5491_v60 = vld [vmem:[%s7576_s16 + $0x70] ss:$8 sps:$4 sm:$0xff]  }
0x174d   :  { %5207 = vmatprep.subr.bf16.mxu1 %v6046_v0 }
0x1750   :  { %5208 = vmatpush3.bf16.msra.mxu1 %v5481_v28  ;;  %v5493_v28 = vld [vmem:[%s7576_s16 + $0x74] ss:$8 sps:$4 sm:$0xff]  }
0x1816   :  { %v2371_v15 = vpop.f32.mrb[44].mxu1 }
0x1817   :  { %v2377_v16 = vmul.f32 0.35355338, %v2371_v15  ;;  %v5159_v32 = vpop.f32.mrb[45].mxu1 }
0x1818   :  { %v2374_v19 = vpop.f32.mrb[46].mxu1 }
0x1819   :  { %2378 = vmax.xlane.f32.xlu1 %v2377_v16  ;;  %v5160_v22 = vpop.f32.mrb[47].mxu1 }
0x182a   :  { %2406 = vrot.lane.b32.xlu1 %v2308_v25, %s6021_s5 }
0x18a6   :  { %v2379_v33 = vpop.xlane.xlu1 %2378 }
0x18a7   :  { %v2380_v35 = vsub.f32 %v2377_v16, %v2379_v33 }
0x18a9   :  { %v2381_v41 = vmul.f32 1.442695, %v2380_v35 }
0x18aa   :  { %v2407_v61 = vpop.permute.xlu1 %2406 }
0x18ab   :  { %5610 = vpow2.f32 %v2381_v41  ;;  %5176 = vmatpush3.bf16.msra.mxu0 %v2407_v61  ;;  %v5484_v61 = vld [vmem:[%s7576_s16 + $0x44] ss:$8 sps:$4 sm:$0xff]  }
0x18ac   :  { %5181 = vmatprep.subr.bf16.mxu0 %v6046_v0 }
0x18b5   :  { %v5611_v45 = vpop.eup %5610 }
0x18b6   :  { %v2383_v36 = vpack.c.bf16 %v5611_v45, %v5611_v45  ;;  %v5482_v45 = vld [vmem:[%s7576_s16 + $0x40] ss:$8 sps:$4 sm:$0xff]  }
0x18b8   :  { %5178 = vmatmul.mubr.bf16.vlgmr.msra.gmra.mrb[40].mxu0 %v2383_v36 }
0x18b9   :  { %5182 = vmatpush3.bf16.msra.mxu0 %v7052_v47  ;;  %5197 = vmatprep.mubr.msk.bf16.mxu0 %vm6047_vm0, %v6046_v0 }
0x18ba   :  { %5183 = vmatprep.subr.bf16.mxu0 %v6046_v0 }
0x18bd   :  { %5184 = vmatpush3.bf16.msra.mxu0 %v7061_v54 }
0x18be   :  { %5185 = vmatprep.subr.bf16.mxu0 %v6046_v0 }
0x18c1   :  { %5186 = vmatpush3.bf16.msra.mxu0 %v7068_v48 }
0x18c2   :  { %5187 = vmatprep.subr.bf16.mxu0 %v6046_v0 }
0x18c5   :  { %5188 = vmatpush3.bf16.msra.mxu0 %v7075_v53 }
0x18c6   :  { %5189 = vmatprep.subr.bf16.mxu0 %v6046_v0 }
0x18c9   :  { %5190 = vmatpush3.bf16.msra.mxu0 %v7082_v50 }
0x18ca   :  { %5191 = vmatprep.subr.bf16.mxu0 %v6046_v0 }
0x18cd   :  { %5192 = vmatpush3.bf16.msra.mxu0 %v7089_v52 }
0x18ce   :  { %5193 = vmatprep.subr.bf16.mxu0 %v6046_v0 }
0x18d1   :  { %5194 = vmatpush3.bf16.msra.mxu0 %v7096_v56 }
0x18d2   :  { %5195 = vmatprep.subr.bf16.mxu0 %v6046_v0 }
0x18d5   :  { %5196 = vmatpush3.bf16.msra.mxu0 %v7103_v57 }
0x18d6   :  { %2655 = vmatprep.subr.bf16.mxu0 %v5484_v61 }
0x18d8   :  { %5198 = vmatmul.mubr.bf16.vlgmr.msra.gmra.mrb[44].mxu0 %v2383_v36  ;;  %v5485_v36 = vld [vmem:[%s7576_s16 + $0x50] ss:$8 sps:$4 sm:$0xff]  }
0x18d9   :  { %2687 = vmatprep.mubr.bf16.mxu0 %v6048_v1  ;;  %2656 = vmatpush1.bf16.msra.mxu0 %v5482_v45 }
0x198b   :  { %v2450_v30 = vpop.f32.mrb[40].mxu0 }
0x198c   :  { %v5179_v29 = vpop.f32.mrb[41].mxu0 }
0x198d   :  { %v2453_v18 = vpop.f32.mrb[42].mxu0  ;;  %v5495_v29 = vld [vmem:[%s7578_s18 + $0x80] sm:$0xff]  }
0x198e   :  { %v5180_v23 = vpop.f32.mrb[43].mxu0  ;;  %v5496_v18 = vld [vmem:[%s7578_s18 + $0xc8] sm:$0xff]  }
0x198f   :  { %v5497_v23 = vld [vmem:[%s7578_s18 + $0x88] sm:$0xff]  }
0x19ab   :  { %v2490_v21 = vpop.f32.mrb[44].mxu0 }
0x19ac   :  { %v2496_v63 = vmax.f32 %v2490_v21, 1e-20  ;;  %v5199_v24 = vpop.f32.mrb[45].mxu0  ;;  %v5498_v21 = vld [vmem:[%s7578_s18 + $0xd0] sm:$0xff]  }
0x19ad   :  { %v2493_v2 = vpop.f32.mrb[46].mxu0  ;;  %v5500_v24 = vld [vmem:[%s7578_s18 + $0xd8] sm:$0xff]  }
0x19ae   :  { %5612 = vrcp.f32 %v2496_v63  ;;  %v5200_v31 = vpop.f32.mrb[47].mxu0  ;;  %v5499_v63 = vld [vmem:[%s7578_s18 + $0x90] sm:$0xff]   ;;  %v5501_v2 = vld [vmem:[%s7578_s18 + $0x98] sm:$0xff]  }
0x19af   :  { %v5502_v31 = vld [vmem:[%s7578_s18 + $0xe0] sm:$0xff]  }
0x19b8   :  { %v5613_v5 = vpop.eup %5612 }
0x19b9   :  { %v2498_v39 = vmul.f32 %v5613_v5, %v2450_v30  ;;  %v5494_v30 = vld [vmem:[%s7578_s18 + $0xc0] sm:$0xff]  }
0x19ba   :  { %4802 = vmatprep.subr.bf16.mxu1 %v5494_v30  ;;  %v5503_v5 = vld [vmem:[%s7578_s18 + $0xa0] sm:$0xff]  }
0x19bb   :  { %v2499_v6 = vpack.c.bf16 %v2498_v39, %v2498_v39  ;;  %v5504_v39 = vld [vmem:[%s7578_s18 + $0xe8] sm:$0xff]  }
0x19bd   :  { %5210 = vmatmul.mubr.msk.bf16.vlgmr.msra.gmra.mrb[48].mxu1 %vm360_vm1, %v2499_v6  ;;  %v5505_v6 = vld [vmem:[%s7578_s18 + $0xa8] sm:$0xff]  }
0x19be   :  { %4803 = vmatpush3.bf16.msra.mxu1 %v5495_v29 }
0x19bf   :  { %4804 = vmatprep.subr.bf16.mxu1 %v5496_v18 }
0x19c2   :  { %4805 = vmatpush3.bf16.msra.mxu1 %v5497_v23 }
0x19c3   :  { %4806 = vmatprep.subr.bf16.mxu1 %v5498_v21 }
0x19c6   :  { %4807 = vmatpush3.bf16.msra.mxu1 %v5499_v63  ;;  %v4505_v63 = vld [vmem:[#allocation19 + $0x1] ss:$0 sm:$0xff] }
0x19c7   :  { %4808 = vmatprep.subr.bf16.mxu1 %v5500_v24 }
0x19ca   :  { %4809 = vmatpush3.bf16.msra.mxu1 %v5501_v2 }
0x19cb   :  { %4810 = vmatprep.subr.bf16.mxu1 %v5502_v31 }
0x19ce   :  { %4811 = vmatpush3.bf16.msra.mxu1 %v5503_v5 }
0x19cf   :  { %4812 = vmatprep.subr.bf16.mxu1 %v5504_v39 }
0x19d2   :  { %4813 = vmatpush3.bf16.msra.mxu1 %v5505_v6 }
0x1a90   :  { %v2567_v42 = vpop.f32.mrb[48].mxu1 }
0x1a91   :  { %v2568_v13 = vadd.f32 %v4450_v9, %v2567_v42  ;;  %v5211_v14 = vpop.f32.mrb[49].mxu1 }
0x1a92   :  { %v2570_v15 = vpop.f32.mrb[50].mxu1 }
0x1a93   :  { %v5212_v16 = vpop.f32.mrb[51].mxu1  ;;  %v2573_v32 = vadd.f32 %v2568_v13, %v7028_v27  ;;  %v5487_v27 = vld [vmem:[%s7576_s16 + $0x54] ss:$8 sps:$4 sm:$0xff]  }
0x1a94   :  { %2657 = vmatprep.subr.bf16.mxu0 %v5487_v27 }
0x1a95   :  { %v2574_v19 = vsel %vm360_vm1, %v2573_v32, 0.0  ;;  %2658 = vmatpush1.bf16.msra.mxu0 %v5485_v36 }
0x1a96   :  { %2575 = vadd.xlane.f32.xlu0 %v2574_v19  ;;  %2659 = vmatprep.subr.bf16.mxu0 %v5490_v58 }
0x1a99   :  { %2660 = vmatpush1.bf16.msra.mxu0 %v5488_v59 }
0x1a9a   :  { %2661 = vmatprep.subr.bf16.mxu0 %v5493_v28 }
0x1a9d   :  { %2662 = vmatpush1.bf16.msra.mxu0 %v5491_v60 }
0x1b23   :  { %v2576_v22 = vpop.xlane.xlu0 %2575 }
0x1b24   :  { %v2577_v25 = vmul.f32 0.015625, %v2576_v22  ;;  %v5506_v22 = vld [vmem:[%s7578_s18 + $0xf0] sm:$0xff]  }
0x1b25   :  { %4814 = vmatprep.subr.bf16.mxu1 %v5506_v22  ;;  %v5510_v22 = vld [vmem:[%s7618_s30 + $0x80] ss:$8 sps:$4 sm:$0xff]  }
0x1b26   :  { %v2578_v33 = vsub.f32 %v2573_v32, %v2577_v25  ;;  %v5507_v25 = vld [vmem:[%s7578_s18 + $0xb0] sm:$0xff]  }
0x1b27   :  { %4815 = vmatpush3.bf16.msra.mxu1 %v5507_v25  ;;  %v5513_v25 = vld [vmem:[%s7618_s30 + $0x90] ss:$8 sps:$4 sm:$0xff]  }
0x1b28   :  { %v2579_v35 = vmul.f32 %v2578_v33, %v2578_v33 }
0x1b2a   :  { %v2580_v41 = vsel %vm360_vm1, %v2579_v35, 0.0  ;;  %v5509_v35 = vld [vmem:[%s7578_s18 + $0xb8] sm:$0xff]  }
0x1b2b   :  { %2581 = vadd.xlane.f32.xlu1 %v2580_v41  ;;  %v2600_v41 = vld [vmem:[#allocation18 + $0x2] sm:$0x3] }
0x1b2c   :  { %v2605_v61 = vrot.slane %v2600_v41, %v6487_v34  ;;  %v2609_v45 = vrot.slane %v2600_v41, %v6492_v37  ;;  %v5519_v41 = vld [vmem:[%s7618_s30 + $0xb0] ss:$8 sps:$4 sm:$0xff]  }
0x1bb8   :  { %v2582_v9 = vpop.xlane.xlu1 %2581 }
0x1bb9   :  { %v2583_v42 = vmul.f32 0.015625, %v2582_v9 }
0x1bbb   :  { %v2584_v13 = vadd.f32 1e-05, %v2583_v42 }
0x1bbd   :  { %5614 = vrsqrt.f32 %v2584_v13 }
0x1bc7   :  { %v5615_v14 = vpop.eup %5614 }
0x1bc8   :  { %v2586_v15 = vmul.f32 %v5615_v14, %v2578_v33  ;;  %v5508_v33 = vld [vmem:[%s7578_s18 + $0xf8] sm:$0xff]  }
0x1bc9   :  { %4816 = vmatprep.subr.bf16.mxu1 %v5508_v33  ;;  %v5518_v33 = vld [vmem:[%s7618_s30 + $0xa4] ss:$8 sps:$4 sm:$0xff]  }
0x1bca   :  { %v2587_v16 = vmul.f32 %v7022_v38, %v2586_v15  ;;  %4817 = vmatpush3.bf16.msra.mxu1 %v5509_v35  ;;  %v5516_v35 = vld [vmem:[%s7618_s30 + $0xa0] ss:$8 sps:$4 sm:$0xff]  }
0x1bcb   :  { %5225 = vmatprep.subr.bf16.mxu1 %v6046_v0 }
0x1bcc   :  { %v2588_v32 = vadd.f32 %v7024_v10, %v2587_v16 }
0x1bce   :  { %v2589_v19 = vpack.c.bf16 %v2588_v32, %v2588_v32 }
0x1bd0   :  { %4472 = vmatmul.mubr.msk.bf16.vlgmr.msra.gmra.mrb[48].mxu0 %vm360_vm1, %v2589_v19  ;;  %v5512_v19 = vld [vmem:[%s7618_s30 + $0x84] ss:$8 sps:$4 sm:$0xff]  }
0x1bd1   :  { %3007 = vmatprep.mubr.bf16.mxu0 %v6048_v1  ;;  %2975 = vmatprep.subr.bf16.mxu0 %v5512_v19 }
0x1bd2   :  { %2976 = vmatpush1.bf16.msra.mxu0 %v5510_v22 }
0x1ca3   :  { %v2689_v27 = vpop.f32.mrb[48].mxu0 }
0x1ca4   :  { %v2690_v36 = vadd.f32 %v2689_v27, %v2605_v61  ;;  %v2691_v58 = vpop.f32.mrb[49].mxu0  ;;  %v5521_v61 = vld [vmem:[%s7618_s30 + $0xb4] ss:$8 sps:$4 sm:$0xff]  }
0x1ca5   :  { %v2692_v59 = vadd.f32 %v2691_v58, %v2609_v45  ;;  %v2693_v60 = vpop.f32.mrb[50].mxu0 }
0x1ca6   :  { %v2696_v28 = vmax.f32 %v2690_v36, 0.0  ;;  %v2694_v30 = vpop.f32.mrb[51].mxu0 }
0x1ca7   :  { %v2697_v29 = vmax.f32 %v2692_v59, 0.0 }
0x1ca8   :  { %v2698_v23 = vpack.c.bf16 %v2696_v28, %v2696_v28 }
0x1ca9   :  { %v2699_v18 = vpack.c.bf16 %v2697_v29, %v2697_v29  ;;  %v2920_v29 = vld [vmem:[#allocation6 + $0x4] sm:$0x3] }
0x1cab   :  { %2869 = vmatprep.mubr.bf16.mxu1 %v2699_v18  ;;  %v2925_v18 = vrot.slane %v2920_v29, %v6487_v34 }
0x1cac   :  { %2870 = vmatmul.mubr.bf16.vlgmr.msra.gmra.mrb[52].mxu1 %v2698_v23  ;;  %v2929_v23 = vrot.slane %v2920_v29, %v6492_v37 }
0x1cad   :  { %5233 = vmatprep.mubr.msk.bf16.mxu1 %vm6047_vm0, %v6046_v0 }
0x1d7f   :  { %v4818_v21 = vpop.f32.mrb[52].mxu1 }
0x1d80   :  { %v4819_v24 = vpop.f32.mrb[53].mxu1 }
0x1d81   :  { %v4820_v2 = vadd.f32 %v4819_v24, %v4818_v21  ;;  %v4821_v31 = vpop.f32.mrb[54].mxu1 }
0x1d82   :  { %v4822_v5 = vpop.f32.mrb[55].mxu1 }
0x1d83   :  { %v2872_v39 = vadd.f32 %v4820_v2, %v4505_v63 }
0x1d85   :  { %v2877_v6 = vadd.f32 %v2872_v39, %v2588_v32  ;;  %v5515_v32 = vld [vmem:[%s7618_s30 + $0x94] ss:$8 sps:$4 sm:$0xff]  }
0x1d86   :  { %2977 = vmatprep.subr.bf16.mxu0 %v5515_v32 }
0x1d87   :  { %v2878_v9 = vsel %vm360_vm1, %v2877_v6, 0.0  ;;  %2978 = vmatpush1.bf16.msra.mxu0 %v5513_v25 }
0x1d88   :  { %2879 = vadd.xlane.f32.xlu0 %v2878_v9  ;;  %2979 = vmatprep.subr.bf16.mxu0 %v5518_v33 }
0x1d8b   :  { %2980 = vmatpush1.bf16.msra.mxu0 %v5516_v35 }
0x1d8c   :  { %2981 = vmatprep.subr.bf16.mxu0 %v5521_v61 }
0x1d8f   :  { %2982 = vmatpush1.bf16.msra.mxu0 %v5519_v41 }
0x1d90   :  { %5213 = vmatprep.subr.bf16.mxu0 %v6046_v0 }
0x1e15   :  { %v2880_v42 = vpop.xlane.xlu0 %2879 }
0x1e16   :  { %v2881_v13 = vmul.f32 0.015625, %v2880_v42 }
0x1e18   :  { %v2882_v14 = vsub.f32 %v2877_v6, %v2881_v13 }
0x1e1a   :  { %v2883_v15 = vmul.f32 %v2882_v14, %v2882_v14 }
0x1e1c   :  { %v2884_v16 = vsel %vm360_vm1, %v2883_v15, 0.0 }
0x1e1d   :  { %2885 = vadd.xlane.f32.xlu0 %v2884_v16 }
0x1eaa   :  { %v2886_v45 = vpop.xlane.xlu0 %2885 }
0x1eab   :  { %v2887_v27 = vmul.f32 0.015625, %v2886_v45 }
0x1ead   :  { %v2888_v36 = vadd.f32 1e-05, %v2887_v27 }
0x1eaf   :  { %5616 = vrsqrt.f32 %v2888_v36 }
0x1eb9   :  { %v5617_v58 = vpop.eup %5616 }
0x1eba   :  { %v2890_v59 = vmul.f32 %v5617_v58, %v2882_v14 }
0x1ebc   :  { %v2891_v60 = vmul.f32 %v7022_v38, %v2890_v59 }
0x1ebe   :  { %v7224_v28 = vadd.f32 %v7024_v10, %v2891_v60 }
0x1ec0   :  { %v2909_v30 = vpack.c.bf16 %v7224_v28, %v7224_v28 }
0x1ec2   :  { %4540 = vmatmul.mubr.msk.bf16.vlgmr.msra.gmra.mrb[52].mxu0 %vm360_vm1, %v2909_v30 }
0x1ec3   :  { %5221 = vmatprep.mubr.msk.bf16.mxu0 %vm6047_vm0, %v6046_v0 }
0x1f95   :  { %v3009_v21 = vpop.f32.mrb[52].mxu0 }
0x1f96   :  { %v3010_v63 = vadd.f32 %v3009_v21, %v2925_v18  ;;  %v3011_v24 = vpop.f32.mrb[53].mxu0 }
0x1f97   :  { %v3012_v38 = vadd.f32 %v3011_v24, %v2929_v23  ;;  %v3013_v2 = vpop.f32.mrb[54].mxu0 }
0x1f98   :  { %v3027_v10 = vpack.c.bf16 %v3010_v63, %v3010_v63  ;;  %v3014_v31 = vpop.f32.mrb[55].mxu0 }
0x1f99   :  { %v3038_v5 = vpack.c.bf16 %v3012_v38, %v3012_v38 }
0x1f9a   :  { %v3029_v39 = vrot.slane %v3027_v10, 4 }
0x1f9b   :  { %v3040_v6 = vrot.slane %v3038_v5, 4 }
0x1f9c   :  { %v3032_v9 = vsel %vm722_vm2, %v3027_v10, %v3029_v39 }
0x1f9d   :  { %v3043_v42 = vsel %vm722_vm2, %v3038_v5, %v3040_v6  ;;  %v3035_v13 = vmul.bf16 %v3032_v9, %v6523_v11  ;;  %v3034_v14 = vmul.bf16 %v3032_v9, %v6519_v62  ;;  %v3036_v16 = vmul.bf16 %v3032_v9, %v6521_v8 }
0x1f9e   :  { %v3045_v15 = vmul.bf16 %v6895_v46, %v3043_v42  ;;  %v3046_v19 = vmul.bf16 %v6905_v49, %v3043_v42  ;;  %v3037_v62 = vmul.bf16 %v3032_v9, %v6529_v17  ;;  %v3047_v11 = vmul.bf16 %v6914_v51, %v3043_v42 }
0x1f9f   :  { %3055 = vrot.lane.b32.xlu0 %v3035_v13, %s6021_s5  ;;  %3053 = vrot.lane.b32.xlu1 %v3034_v14, %s6021_s5  ;;  %v3048_v22 = vmul.bf16 %v6922_v55, %v3043_v42  ;;  %v3396_v13 = vmul.bf16 %v7052_v47, %v6549_v43 }
0x1fa0   :  { %5226 = vmatpush3.bf16.msra.mxu1 %v3045_v15 }
0x1fa1   :  { %5227 = vmatprep.subr.bf16.mxu1 %v6046_v0  ;;  %v3417_v15 = vsel %vm360_vm1, %v3396_v13, 0 }
0x1fa3   :  { %3057 = vrot.lane.b32.xlu1 %v3036_v16, %s6021_s5  ;;  %v3397_v16 = vmul.bf16 %v7061_v54, %v6549_v43 }
0x1fa4   :  { %5228 = vmatpush3.bf16.msra.mxu1 %v3046_v19 }
0x1fa5   :  { %5229 = vmatprep.subr.bf16.mxu1 %v6046_v0  ;;  %v3420_v19 = vsel %vm360_vm1, %v3397_v16, 0 }
0x1fa7   :  { %3059 = vrot.lane.b32.xlu1 %v3037_v62, %s6021_s5  ;;  %v3398_v62 = vmul.bf16 %v7068_v48, %v6549_v43 }
0x1fa8   :  { %5230 = vmatpush3.bf16.msra.mxu1 %v3047_v11 }
0x1fa9   :  { %5231 = vmatprep.subr.bf16.mxu1 %v6046_v0  ;;  %v3423_v11 = vsel %vm360_vm1, %v3398_v62, 0 }
0x1fac   :  { %5232 = vmatpush3.bf16.msra.mxu1 %v3048_v22  ;;  %v3399_v22 = vmul.bf16 %v7075_v53, %v6549_v43 }
0x1fad   :  { %5237 = vmatprep.subr.bf16.mxu1 %v6046_v0 }
0x2011   :  { %v3054_v8 = vpop.permute.xlu1 %3053  ;;  %v3056_v25 = vpop.permute.xlu0 %3055 }
0x2012   :  { %v3064_v32 = vsel %vm360_vm1, %v3054_v8, 0  ;;  %v3067_v17 = vsel %vm360_vm1, %v3056_v25, 0  ;;  %v3426_v8 = vsel %vm360_vm1, %v3399_v22, 0 }
0x2013   :  { %5214 = vmatpush3.bf16.xpose.msra.mxu0 %v3064_v32  ;;  %v3400_v32 = vmul.bf16 %v7082_v50, %v6549_v43 }
0x2014   :  { %5215 = vmatprep.subr.bf16.mxu0 %v6046_v0 }
0x2015   :  { %v3058_v33 = vpop.permute.xlu1 %3057  ;;  %v3429_v25 = vsel %vm360_vm1, %v3400_v32, 0 }
0x2016   :  { %v3070_v35 = vsel %vm360_vm1, %v3058_v33, 0 }
0x2019   :  { %v3060_v41 = vpop.permute.xlu1 %3059 }
0x201a   :  { %v3073_v61 = vsel %vm360_vm1, %v3060_v41, 0 }
0x201b   :  { %5216 = vmatpush3.bf16.xpose.msra.mxu0 %v3067_v17  ;;  %v3401_v17 = vmul.bf16 %v7089_v52, %v6549_v43 }
0x201c   :  { %5217 = vmatprep.subr.bf16.mxu0 %v6046_v0 }
0x201d   :  { %v3432_v33 = vsel %vm360_vm1, %v3401_v17, 0 }
0x2023   :  { %5218 = vmatpush3.bf16.xpose.msra.mxu0 %v3070_v35  ;;  %v3402_v35 = vmul.bf16 %v7096_v56, %v6549_v43 }
0x2024   :  { %5219 = vmatprep.subr.bf16.mxu0 %v6046_v0 }
0x2025   :  { %v3435_v41 = vsel %vm360_vm1, %v3402_v35, 0 }
0x202b   :  { %5220 = vmatpush3.bf16.xpose.msra.mxu0 %v3073_v61  ;;  %v3403_v61 = vmul.bf16 %v7103_v57, %v6549_v43 }
0x202c   :  { %5249 = vmatprep.subr.bf16.mxu0 %v6046_v0 }
0x2032   :  { %5222 = vmatmul.mubr.msk.bf16.vlgmr.msra.gmra.mrb[56].mxu0 %vm360_vm1, %v3027_v10 }
0x2033   :  { %5257 = vmatprep.mubr.msk.bf16.mxu0 %vm6047_vm0, %v6046_v0 }
0x2105   :  { %v3109_v45 = vpop.f32.mrb[56].mxu0 }
0x2106   :  { %v3115_v27 = vmul.f32 0.35355338, %v3109_v45  ;;  %v5223_v36 = vpop.f32.mrb[57].mxu0  ;;  %v3438_v45 = vsel %vm360_vm1, %v3403_v61, 0 }
0x2107   :  { %v3112_v58 = vpop.f32.mrb[58].mxu0 }
0x2108   :  { %v5224_v59 = vpop.f32.mrb[59].mxu0  ;;  %v3116_v60 = vsel %vm360_vm1, %v3115_v27, -inf }
0x2109   :  { %3117 = vmax.xlane.f32.xlu0 %v3116_v60 }
0x2196   :  { %v3118_v30 = vpop.xlane.xlu0 %3117 }
0x2197   :  { %v3119_v29 = vsub.f32 %v3115_v27, %v3118_v30  ;;  %v4545_v27 = vld [vmem:[%s7622_s23 + $0x2] ss:$0 sm:$0xff] }
0x2199   :  { %v3120_v18 = vmul.f32 1.442695, %v3119_v29 }
0x219b   :  { %5618 = vpow2.f32 %v3120_v18 }
0x21a5   :  { %v5619_v23 = vpop.eup %5618 }
0x21a6   :  { %v3122_v21 = vpack.c.bf16 %v5619_v23, %v5619_v23  ;;  %v3405_v23 = vmul.bf16 %v6549_v43, %v6680_v3  ;;  %v3404_v3 = vmul.bf16 %v6549_v43, %v6682_v4  ;;  %v5529_v4 = vld [vmem:[#allocation9 + $0x58] sm:$0xff]  }
0x21a8   :  { %5234 = vmatmul.mubr.msk.bf16.vlgmr.msra.gmra.mrb[56].mxu1 %vm360_vm1, %v3122_v21 }
0x21a9   :  { %5238 = vmatpush3.bf16.msra.mxu1 %v6895_v46  ;;  %5245 = vmatprep.mubr.msk.bf16.mxu1 %vm6047_vm0, %v6046_v0  ;;  %v5522_v46 = vld [vmem:[#allocation7 + $0x40] sm:$0xff]  }
0x21aa   :  { %5239 = vmatprep.subr.bf16.mxu1 %v6046_v0  ;;  %5250 = vmatpush3.bf16.msra.mxu0 %v5522_v46  ;;  %v3409_v46 = vmul.bf16 %v6549_v43, %v6712_v26  ;;  %v5527_v26 = vld [vmem:[#allocation9 + $0x48] sm:$0xff]  }
0x21ab   :  { %5251 = vmatprep.subr.bf16.mxu0 %v6046_v0 }
0x21ad   :  { %5240 = vmatpush3.bf16.msra.mxu1 %v6905_v49  ;;  %v5523_v49 = vld [vmem:[#allocation7 + $0x48] sm:$0xff]  }
0x21ae   :  { %5241 = vmatprep.subr.bf16.mxu1 %v6046_v0  ;;  %5252 = vmatpush3.bf16.msra.mxu0 %v5523_v49 }
0x21af   :  { %5253 = vmatprep.subr.bf16.mxu0 %v6046_v0 }
0x21b1   :  { %5242 = vmatpush3.bf16.msra.mxu1 %v6914_v51  ;;  %v5524_v51 = vld [vmem:[#allocation7 + $0x50] sm:$0xff]  }
0x21b2   :  { %5243 = vmatprep.subr.bf16.mxu1 %v6046_v0  ;;  %5254 = vmatpush3.bf16.msra.mxu0 %v5524_v51 }
0x21b3   :  { %5255 = vmatprep.subr.bf16.mxu0 %v6046_v0 }
0x21b5   :  { %5244 = vmatpush3.bf16.msra.mxu1 %v6922_v55  ;;  %v5525_v55 = vld [vmem:[#allocation7 + $0x58] sm:$0xff]  }
0x21b6   :  { %5261 = vmatprep.subr.bf16.mxu1 %v6046_v0  ;;  %5256 = vmatpush3.bf16.msra.mxu0 %v5525_v55 }
0x21b7   :  { %5273 = vmatprep.subr.bf16.mxu0 %v6046_v0 }
0x21b8   :  { %5246 = vmatmul.mubr.msk.bf16.vlgmr.msra.gmra.mrb[60].mxu1 %vm360_vm1, %v3122_v21  ;;  %v3407_v21 = vmul.bf16 %v6549_v43, %v6694_v12  ;;  %v3406_v12 = vmul.bf16 %v6549_v43, %v6689_v7 }
0x21b9   :  { %5269 = vmatprep.mubr.msk.bf16.mxu1 %vm6047_vm0, %v6046_v0 }
0x227b   :  { %v3160_v63 = vpop.f32.mrb[56].mxu1 }
0x227c   :  { %v5235_v24 = vpop.f32.mrb[57].mxu1 }
0x227d   :  { %v3163_v38 = vpop.f32.mrb[58].mxu1  ;;  %v5526_v24 = vld [vmem:[#allocation9 + $0x40] sm:$0xff]  }
0x227e   :  { %v5236_v2 = vpop.f32.mrb[59].mxu1  ;;  %5262 = vmatpush3.bf16.msra.mxu1 %v5526_v24  ;;  %v3408_v38 = vmul.bf16 %v6549_v43, %v6703_v20 }
0x227f   :  { %5263 = vmatprep.subr.bf16.mxu1 %v6046_v0  ;;  %v5528_v2 = vld [vmem:[#allocation9 + $0x50] sm:$0xff]  }
0x2282   :  { %5264 = vmatpush3.bf16.msra.mxu1 %v5527_v26 }
0x2283   :  { %5265 = vmatprep.subr.bf16.mxu1 %v6046_v0 }
0x2286   :  { %5266 = vmatpush3.bf16.msra.mxu1 %v5528_v2 }
0x2287   :  { %5267 = vmatprep.subr.bf16.mxu1 %v6046_v0 }
0x228a   :  { %5268 = vmatpush3.bf16.msra.mxu1 %v5529_v4 }
0x228b   :  { %v3200_v10 = vpop.f32.mrb[60].mxu1  ;;  %5293 = vmatprep.subr.bf16.mxu1 %v6046_v0 }
0x228c   :  { %v3206_v31 = vmax.f32 %v3200_v10, 1e-20  ;;  %v5247_v5 = vpop.f32.mrb[61].mxu1  ;;  %v3410_v10 = vmul.bf16 %v6549_v43, %v6722_v40 }
0x228d   :  { %v3203_v39 = vpop.f32.mrb[62].mxu1 }
0x228e   :  { %5620 = vrcp.f32 %v3206_v31  ;;  %v5248_v6 = vpop.f32.mrb[63].mxu1  ;;  %v7347_v39 = vld [vmem:[#allocation21 + $0x2] ss:$0 sm:$0xff] }
0x2298   :  { %v5621_v9 = vpop.eup %5620 }
0x2299   :  { %v3208_v42 = vmul.f32 %v5621_v9, %v3160_v63  ;;  %v7349_v9 = vld [vmem:[#allocation22 + $0x2] ss:$0 sm:$0xff] }
0x229b   :  { %v3209_v14 = vpack.c.bf16 %v3208_v42, %v3208_v42 }
0x229d   :  { %5258 = vmatmul.mubr.msk.bf16.vlgmr.msra.gmra.mrb[60].mxu0 %vm360_vm1, %v3209_v14 }
0x229e   :  { %5274 = vmatpush3.bf16.xpose.msra.mxu0 %v3417_v15  ;;  %5289 = vmatprep.mubr.msk.bf16.mxu0 %vm6047_vm0, %v6046_v0 }
0x229f   :  { %5275 = vmatprep.subr.bf16.mxu0 %v6046_v0 }
0x22a6   :  { %5276 = vmatpush3.bf16.xpose.msra.mxu0 %v3420_v19 }
0x22a7   :  { %5277 = vmatprep.subr.bf16.mxu0 %v6046_v0 }
0x22ae   :  { %5278 = vmatpush3.bf16.xpose.msra.mxu0 %v3423_v11 }
0x22af   :  { %5279 = vmatprep.subr.bf16.mxu0 %v6046_v0 }
0x22b6   :  { %5280 = vmatpush3.bf16.xpose.msra.mxu0 %v3426_v8  ;;  %v4551_v8 = vld [vmem:[#allocation10 + $0x2] ss:$0 sm:$0xff] }
0x22b7   :  { %5281 = vmatprep.subr.bf16.mxu0 %v6046_v0 }
0x22be   :  { %5282 = vmatpush3.bf16.xpose.msra.mxu0 %v3429_v25 }
0x22bf   :  { %5283 = vmatprep.subr.bf16.mxu0 %v6046_v0 }
0x22c6   :  { %5284 = vmatpush3.bf16.xpose.msra.mxu0 %v3432_v33 }
0x22c7   :  { %5285 = vmatprep.subr.bf16.mxu0 %v6046_v0 }
0x22ce   :  { %5286 = vmatpush3.bf16.xpose.msra.mxu0 %v3435_v41 }
0x22cf   :  { %5287 = vmatprep.subr.bf16.mxu0 %v6046_v0 }
0x22d6   :  { %5288 = vmatpush3.bf16.xpose.msra.mxu0 %v3438_v45 }
0x22d7   :  { %5333 = vmatprep.subr.bf16.mxu0 %v6046_v0 }
0x2370   :  { %v3277_v36 = vpop.f32.mrb[60].mxu0 }
0x2371   :  { %v3278_v58 = vadd.f32 %v4545_v27, %v3277_v36  ;;  %v5259_v59 = vpop.f32.mrb[61].mxu0 }
0x2372   :  { %v3280_v60 = vpop.f32.mrb[62].mxu0  ;;  %v3411_v59 = vmul.bf16 %v6549_v43, %v6727_v44  ;;  %v5530_v43 = vld [vmem:[#allocation15 + $0x40] sm:$0xff]   ;;  %v5531_v44 = vld [vmem:[#allocation15 + $0x48] sm:$0xff]  }
0x2373   :  { %v5260_v30 = vpop.f32.mrb[63].mxu0  ;;  %v3283_v29 = vadd.f32 %v3278_v58, %v7224_v28 }
0x2375   :  { %v3284_v18 = vsel %vm360_vm1, %v3283_v29, 0.0 }
0x2376   :  { %3285 = vadd.xlane.f32.xlu1 %v3284_v18 }
0x2387   :  { %3497 = vrot.lane.b32.xlu1 %v3405_v23, %s6021_s5 }
0x238b   :  { %3501 = vrot.lane.b32.xlu1 %v3407_v21, %s6021_s5 }
0x238f   :  { %3505 = vrot.lane.b32.xlu1 %v3409_v46, %s6021_s5 }
0x2403   :  { %v3286_v49 = vpop.xlane.xlu1 %3285 }
0x2404   :  { %v3287_v28 = vmul.f32 0.015625, %v3286_v49 }
0x2406   :  { %v3288_v51 = vsub.f32 %v3283_v29, %v3287_v28 }
0x2407   :  { %v3498_v15 = vpop.permute.xlu1 %3497 }
0x2408   :  { %v3289_v55 = vmul.f32 %v3288_v51, %v3288_v51 }
0x240a   :  { %v3290_v63 = vsel %vm360_vm1, %v3289_v55, 0.0 }
0x240b   :  { %3291 = vadd.xlane.f32.xlu0 %v3290_v63  ;;  %v3502_v19 = vpop.permute.xlu1 %3501 }
0x240f   :  { %v3506_v11 = vpop.permute.xlu1 %3505 }
0x2421   :  { %3495 = vrot.lane.b32.xlu0 %v3404_v3, %s6021_s5  ;;  %v4558_v3 = vld [vmem:[#allocation16 + $0x2] ss:$0 sm:$0xff] }
0x2425   :  { %3499 = vrot.lane.b32.xlu0 %v3406_v12, %s6021_s5 }
0x2429   :  { %3503 = vrot.lane.b32.xlu0 %v3408_v38, %s6021_s5 }
0x242d   :  { %3507 = vrot.lane.b32.xlu0 %v3410_v10, %s6021_s5 }
0x2498   :  { %v3292_v7 = vpop.xlane.xlu0 %3291 }
0x2499   :  { %v3293_v31 = vmul.f32 0.015625, %v3292_v7 }
0x249b   :  { %v3294_v5 = vadd.f32 1e-05, %v3293_v31 }
0x249c   :  { %v3496_v14 = vpop.permute.xlu0 %3495 }
0x249d   :  { %5622 = vrsqrt.f32 %v3294_v5 }
0x24a0   :  { %v3500_v16 = vpop.permute.xlu0 %3499 }
0x24a4   :  { %v3504_v62 = vpop.permute.xlu0 %3503 }
0x24a7   :  { %v5623_v20 = vpop.eup %5622 }
0x24a8   :  { %v3296_v6 = vmul.f32 %v5623_v20, %v3288_v51  ;;  %v3508_v22 = vpop.permute.xlu0 %3507 }
0x24aa   :  { %v3297_v42 = vmul.f32 %v7347_v39, %v3296_v6  ;;  %v5536_v6 = vld [vmem:[%s7576_s16 + $0x84] ss:$8 sps:$4 sm:$0xff]  }
0x24ac   :  { %v7353_v13 = vadd.f32 %v7349_v9, %v3297_v42  ;;  %v5534_v42 = vld [vmem:[%s7576_s16 + $0x80] ss:$8 sps:$4 sm:$0xff]  }
0x24ae   :  { %v3299_v40 = vpack.c.bf16 %v7353_v13, %v7353_v13 }
0x24b0   :  { %5270 = vmatmul.mubr.msk.bf16.vlgmr.msra.gmra.mrb[64].mxu1 %vm360_vm1, %v3299_v40  ;;  %v5537_v40 = vld [vmem:[%s7576_s16 + $0x90] ss:$8 sps:$4 sm:$0xff]  }
0x24b1   :  { %5294 = vmatpush3.bf16.msra.mxu1 %v3496_v14  ;;  %5309 = vmatprep.mubr.msk.bf16.mxu1 %vm6047_vm0, %v6046_v0  ;;  %v5542_v14 = vld [vmem:[%s7576_s16 + $0xa4] ss:$8 sps:$4 sm:$0xff]  }
0x24b2   :  { %5295 = vmatprep.subr.bf16.mxu1 %v6046_v0 }
0x24b5   :  { %5296 = vmatpush3.bf16.msra.mxu1 %v3498_v15  ;;  %v5540_v15 = vld [vmem:[%s7576_s16 + $0xa0] ss:$8 sps:$4 sm:$0xff]  }
0x24b6   :  { %5297 = vmatprep.subr.bf16.mxu1 %v6046_v0 }
0x24b9   :  { %5298 = vmatpush3.bf16.msra.mxu1 %v3500_v16  ;;  %v5543_v16 = vld [vmem:[%s7576_s16 + $0xb0] ss:$8 sps:$4 sm:$0xff]  }
0x24ba   :  { %5299 = vmatprep.subr.bf16.mxu1 %v6046_v0 }
0x24bd   :  { %5300 = vmatpush3.bf16.msra.mxu1 %v3502_v19  ;;  %v5545_v19 = vld [vmem:[%s7576_s16 + $0xb4] ss:$8 sps:$4 sm:$0xff]  }
0x24be   :  { %5301 = vmatprep.subr.bf16.mxu1 %v6046_v0 }
0x24c1   :  { %5302 = vmatpush3.bf16.msra.mxu1 %v3504_v62  ;;  %v5546_v62 = vld [vmem:[%s7578_s18 + $0x140] sm:$0xff]  }
0x24c2   :  { %5303 = vmatprep.subr.bf16.mxu1 %v6046_v0 }
0x24c5   :  { %5304 = vmatpush3.bf16.msra.mxu1 %v3506_v11  ;;  %v5547_v11 = vld [vmem:[%s7578_s18 + $0x100] sm:$0xff]  }
0x24c6   :  { %5305 = vmatprep.subr.bf16.mxu1 %v6046_v0 }
0x24c9   :  { %5306 = vmatpush3.bf16.msra.mxu1 %v3508_v22  ;;  %v5548_v22 = vld [vmem:[%s7578_s18 + $0x148] sm:$0xff]  }
0x24ca   :  { %5307 = vmatprep.subr.bf16.mxu1 %v6046_v0 }
0x2583   :  { %v3378_v32 = vpop.f32.mrb[64].mxu1 }
0x2584   :  { %v3379_v25 = vadd.f32 %v4551_v8, %v3378_v32  ;;  %v5271_v17 = vpop.f32.mrb[65].mxu1  ;;  %v5549_v8 = vld [vmem:[%s7578_s18 + $0x108] sm:$0xff]   ;;  %v5550_v32 = vld [vmem:[%s7578_s18 + $0x150] sm:$0xff]  }
0x2585   :  { %v3381_v33 = vpop.f32.mrb[66].mxu1  ;;  %v5552_v17 = vld [vmem:[%s7578_s18 + $0x158] sm:$0xff]  }
0x2586   :  { %v3412_v35 = vpack.c.bf16 %v3379_v25, %v3379_v25  ;;  %v5272_v41 = vpop.f32.mrb[67].mxu1  ;;  %v5551_v25 = vld [vmem:[%s7578_s18 + $0x110] sm:$0xff]   ;;  %v5553_v33 = vld [vmem:[%s7578_s18 + $0x118] sm:$0xff]  }
0x2587   :  { %v5555_v41 = vld [vmem:[%s7578_s18 + $0x120] sm:$0xff]  }
0x2588   :  { %5290 = vmatmul.mubr.msk.bf16.vlgmr.msra.gmra.mrb[64].mxu0 %vm360_vm1, %v3412_v35  ;;  %v5554_v35 = vld [vmem:[%s7578_s18 + $0x160] sm:$0xff]  }
0x2589   :  { %5341 = vmatprep.mubr.msk.bf16.mxu0 %vm6047_vm0, %v6046_v0  ;;  %5334 = vmatpush3.bf16.msra.mxu0 %v5530_v43  ;;  %v5560_v43 = vld [vmem:[%s7578_s18 + $0x178] sm:$0xff]  }
0x258a   :  { %5335 = vmatprep.subr.bf16.mxu0 %v6046_v0 }
0x258d   :  { %5336 = vmatpush3.bf16.msra.mxu0 %v5531_v44  ;;  %v5561_v44 = vld [vmem:[%s7578_s18 + $0x138] sm:$0xff]  }
0x258e   :  { %5337 = vmatprep.subr.bf16.mxu0 %v6046_v0 }
0x265b   :  { %v3474_v61 = vpop.f32.mrb[64].mxu0 }
0x265c   :  { %v3480_v45 = vmul.f32 0.35355338, %v3474_v61  ;;  %v5291_v27 = vpop.f32.mrb[65].mxu0  ;;  %v5556_v61 = vld [vmem:[%s7578_s18 + $0x168] sm:$0xff]  }
0x265d   :  { %v3477_v36 = vpop.f32.mrb[66].mxu0 }
0x265e   :  { %3481 = vmax.xlane.f32.xlu1 %v3480_v45  ;;  %v5292_v58 = vpop.f32.mrb[67].mxu0 }
0x266f   :  { %3509 = vrot.lane.b32.xlu1 %v3411_v59, %s6021_s5 }
0x26eb   :  { %v3482_v60 = vpop.xlane.xlu1 %3481 }
0x26ec   :  { %v3483_v30 = vsub.f32 %v3480_v45, %v3482_v60  ;;  %v5557_v45 = vld [vmem:[%s7578_s18 + $0x128] sm:$0xff]  }
0x26ee   :  { %v3484_v29 = vmul.f32 1.442695, %v3483_v30 }
0x26ef   :  { %v3510_v18 = vpop.permute.xlu1 %3509 }
0x26f0   :  { %5624 = vpow2.f32 %v3484_v29  ;;  %5308 = vmatpush3.bf16.msra.mxu1 %v3510_v18 }
0x26f1   :  { %5313 = vmatprep.subr.bf16.mxu1 %v6046_v0 }
0x26fa   :  { %v5625_v23 = vpop.eup %5624 }
0x26fb   :  { %v3486_v21 = vpack.c.bf16 %v5625_v23, %v5625_v23  ;;  %v5558_v23 = vld [vmem:[%s7578_s18 + $0x170] sm:$0xff]  }
0x26fd   :  { %5310 = vmatmul.mubr.bf16.vlgmr.msra.gmra.mrb[68].mxu1 %v3486_v21 }
0x26fe   :  { %5314 = vmatpush3.bf16.msra.mxu1 %v7052_v47  ;;  %5329 = vmatprep.mubr.msk.bf16.mxu1 %vm6047_vm0, %v6046_v0  ;;  %v5532_v47 = vld [vmem:[#allocation15 + $0x50] sm:$0xff]  }
0x26ff   :  { %5315 = vmatprep.subr.bf16.mxu1 %v6046_v0  ;;  %5338 = vmatpush3.bf16.msra.mxu0 %v5532_v47 }
0x2700   :  { %5339 = vmatprep.subr.bf16.mxu0 %v6046_v0 }
0x2702   :  { %5316 = vmatpush3.bf16.msra.mxu1 %v7061_v54  ;;  %v5533_v54 = vld [vmem:[#allocation15 + $0x58] sm:$0xff]  }
0x2703   :  { %5317 = vmatprep.subr.bf16.mxu1 %v6046_v0  ;;  %5340 = vmatpush3.bf16.msra.mxu0 %v5533_v54 }
0x2704   :  { %4881 = vmatprep.subr.bf16.mxu0 %v5546_v62  ;;  %v5562_v62 = vld [vmem:[%s7623_s15] ss:$8 sps:$4 sm:$0xff]  }
0x2706   :  { %5318 = vmatpush3.bf16.msra.mxu1 %v7068_v48 }
0x2707   :  { %5319 = vmatprep.subr.bf16.mxu1 %v6046_v0 }
0x270a   :  { %5320 = vmatpush3.bf16.msra.mxu1 %v7075_v53 }
0x270b   :  { %5321 = vmatprep.subr.bf16.mxu1 %v6046_v0 }
0x270e   :  { %5322 = vmatpush3.bf16.msra.mxu1 %v7082_v50 }
0x270f   :  { %5323 = vmatprep.subr.bf16.mxu1 %v6046_v0 }
0x2712   :  { %5324 = vmatpush3.bf16.msra.mxu1 %v7089_v52 }
0x2713   :  { %5325 = vmatprep.subr.bf16.mxu1 %v6046_v0 }
0x2716   :  { %5326 = vmatpush3.bf16.msra.mxu1 %v7096_v56 }
0x2717   :  { %5327 = vmatprep.subr.bf16.mxu1 %v6046_v0 }
0x271a   :  { %5328 = vmatpush3.bf16.msra.mxu1 %v7103_v57 }
0x271b   :  { %3758 = vmatprep.subr.bf16.mxu1 %v5536_v6 }
0x271d   :  { %5330 = vmatmul.mubr.bf16.vlgmr.msra.gmra.mrb[72].mxu1 %v3486_v21  ;;  %v5559_v21 = vld [vmem:[%s7578_s18 + $0x130] sm:$0xff]  }
0x271e   :  { %3790 = vmatprep.mubr.bf16.mxu1 %v6048_v1  ;;  %3759 = vmatpush1.bf16.msra.mxu1 %v5534_v42 }
0x27d0   :  { %v3553_v48 = vpop.f32.mrb[68].mxu1 }
0x27d1   :  { %v5311_v53 = vpop.f32.mrb[69].mxu1 }
0x27d2   :  { %v3556_v50 = vpop.f32.mrb[70].mxu1 }
0x27d3   :  { %v5312_v52 = vpop.f32.mrb[71].mxu1 }
0x27f0   :  { %v3593_v56 = vpop.f32.mrb[72].mxu1 }
0x27f1   :  { %v3599_v57 = vmax.f32 %v3593_v56, 1e-20  ;;  %v5331_v46 = vpop.f32.mrb[73].mxu1 }
0x27f2   :  { %v3596_v49 = vpop.f32.mrb[74].mxu1 }
0x27f3   :  { %5626 = vrcp.f32 %v3599_v57  ;;  %v5332_v28 = vpop.f32.mrb[75].mxu1 }
0x27fd   :  { %v5627_v51 = vpop.eup %5626 }
0x27fe   :  { %v3601_v55 = vmul.f32 %v5627_v51, %v3553_v48 }
0x2800   :  { %v3602_v63 = vpack.c.bf16 %v3601_v55, %v3601_v55 }
0x2802   :  { %5342 = vmatmul.mubr.msk.bf16.vlgmr.msra.gmra.mrb[68].mxu0 %vm360_vm1, %v3602_v63  ;;  %v4613_v63 = vld [vmem:[#allocation19 + $0x2] ss:$0 sm:$0xff] }
0x2803   :  { %4882 = vmatpush3.bf16.msra.mxu0 %v5547_v11  ;;  %v5564_v11 = vld [vmem:[%s7623_s15 + $0x4] ss:$8 sps:$4 sm:$0xff]  }
0x2804   :  { %4883 = vmatprep.subr.bf16.mxu0 %v5548_v22  ;;  %v5567_v22 = vld [vmem:[%s7623_s15 + $0x14] ss:$8 sps:$4 sm:$0xff]  }
0x2807   :  { %4884 = vmatpush3.bf16.msra.mxu0 %v5549_v8  ;;  %v5568_v8 = vld [vmem:[%s7623_s15 + $0x20] ss:$8 sps:$4 sm:$0xff]  }
0x2808   :  { %4885 = vmatprep.subr.bf16.mxu0 %v5550_v32  ;;  %v5573_v32 = vld [vmem:[%s7623_s15 + $0x34] ss:$8 sps:$4 sm:$0xff]  }
0x280b   :  { %4886 = vmatpush3.bf16.msra.mxu0 %v5551_v25  ;;  %v5571_v25 = vld [vmem:[%s7623_s15 + $0x30] ss:$8 sps:$4 sm:$0xff]  }
0x280c   :  { %4887 = vmatprep.subr.bf16.mxu0 %v5552_v17  ;;  %v5574_v17 = vld [vmem:[%s7624_s28 + $0x40] sm:$0xff]  }
0x280f   :  { %4888 = vmatpush3.bf16.msra.mxu0 %v5553_v33 }
0x2810   :  { %4889 = vmatprep.subr.bf16.mxu0 %v5554_v35 }
0x2813   :  { %4890 = vmatpush3.bf16.msra.mxu0 %v5555_v41 }
0x2814   :  { %4891 = vmatprep.subr.bf16.mxu0 %v5556_v61 }
0x2817   :  { %4892 = vmatpush3.bf16.msra.mxu0 %v5557_v45 }
0x2818   :  { %4893 = vmatprep.subr.bf16.mxu0 %v5558_v23 }
0x281b   :  { %4894 = vmatpush3.bf16.msra.mxu0 %v5559_v21 }
0x281c   :  { %4895 = vmatprep.subr.bf16.mxu0 %v5560_v43 }
0x281f   :  { %4896 = vmatpush3.bf16.msra.mxu0 %v5561_v44 }
0x28d5   :  { %v3670_v24 = vpop.f32.mrb[68].mxu0 }
0x28d6   :  { %v3671_v0 = vadd.f32 %v4558_v3, %v3670_v24  ;;  %v5343_v12 = vpop.f32.mrb[69].mxu0 }
0x28d7   :  { %v3673_v26 = vpop.f32.mrb[70].mxu0 }
0x28d8   :  { %v5344_v38 = vpop.f32.mrb[71].mxu0  ;;  %v3676_v2 = vadd.f32 %v3671_v0, %v7353_v13  ;;  %v5539_v13 = vld [vmem:[%s7576_s16 + $0x94] ss:$8 sps:$4 sm:$0xff]  }
0x28d9   :  { %3760 = vmatprep.subr.bf16.mxu1 %v5539_v13 }
0x28da   :  { %v3677_v4 = vsel %vm360_vm1, %v3676_v2, 0.0  ;;  %3761 = vmatpush1.bf16.msra.mxu1 %v5537_v40 }
0x28db   :  { %3678 = vadd.xlane.f32.xlu0 %v3677_v4  ;;  %3762 = vmatprep.subr.bf16.mxu1 %v5542_v14 }
0x28de   :  { %3763 = vmatpush1.bf16.msra.mxu1 %v5540_v15 }
0x28df   :  { %3764 = vmatprep.subr.bf16.mxu1 %v5545_v19 }
0x28e2   :  { %3765 = vmatpush1.bf16.msra.mxu1 %v5543_v16 }
0x28e3   :  { %4089 = vmatprep.subr.bf16.mxu1 %v5564_v11  ;;  %v4639_v11 = vld [vmem:[#allocation25] ss:$0 sm:$0xff] }
0x2968   :  { %v3679_v10 = vpop.xlane.xlu0 %3678 }
0x2969   :  { %v3680_v7 = vmul.f32 0.015625, %v3679_v10 }
0x296b   :  { %v3681_v31 = vsub.f32 %v3676_v2, %v3680_v7 }
0x296d   :  { %v3682_v5 = vmul.f32 %v3681_v31, %v3681_v31 }
0x296f   :  { %v3683_v20 = vsel %vm360_vm1, %v3682_v5, 0.0 }
0x2970   :  { %3684 = vadd.xlane.f32.xlu1 %v3683_v20 }
0x29fd   :  { %v3685_v27 = vpop.xlane.xlu1 %3684 }
0x29fe   :  { %v3686_v36 = vmul.f32 0.015625, %v3685_v27 }
0x2a00   :  { %v3687_v58 = vadd.f32 1e-05, %v3686_v36 }
0x2a02   :  { %5628 = vrsqrt.f32 %v3687_v58 }
0x2a0c   :  { %v5629_v59 = vpop.eup %5628 }
0x2a0d   :  { %v3689_v60 = vmul.f32 %v5629_v59, %v3681_v31 }
0x2a0f   :  { %v3690_v30 = vmul.f32 %v7347_v39, %v3689_v60 }
0x2a11   :  { %v3691_v29 = vadd.f32 %v7349_v9, %v3690_v30 }
0x2a13   :  { %v3692_v18 = vpack.c.bf16 %v3691_v29, %v3691_v29 }
0x2a15   :  { %4580 = vmatmul.mubr.msk.bf16.vlgmr.msra.gmra.mrb[76].mxu1 %vm360_vm1, %v3692_v18 }
0x2a16   :  { %4121 = vmatprep.mubr.bf16.mxu1 %v6048_v1  ;;  %v3703_v1 = vld [vmem:[#allocation18 + $0x4] sm:$0x3]  ;;  %4090 = vmatpush1.bf16.msra.mxu1 %v5562_v62 }
0x2a17   :  { %v3708_v47 = vrot.slane %v3703_v1, %v6487_v34  ;;  %v3712_v54 = vrot.slane %v3703_v1, %v6492_v37  ;;  %4091 = vmatprep.subr.bf16.mxu1 %v5567_v22 }
0x2ae8   :  { %v3792_v48 = vpop.f32.mrb[76].mxu1 }
0x2ae9   :  { %v3793_v53 = vadd.f32 %v3792_v48, %v3708_v47  ;;  %v3794_v50 = vpop.f32.mrb[77].mxu1 }
0x2aea   :  { %v3795_v52 = vadd.f32 %v3794_v50, %v3712_v54  ;;  %v3796_v56 = vpop.f32.mrb[78].mxu1 }
0x2aeb   :  { %v3799_v57 = vmax.f32 %v3793_v53, 0.0  ;;  %v3797_v46 = vpop.f32.mrb[79].mxu1  ;;  %v5575_v56 = vld [vmem:[%s7624_s28] sm:$0xff]  }
0x2aec   :  { %v3800_v49 = vmax.f32 %v3795_v52, 0.0  ;;  %v5576_v46 = vld [vmem:[%s7624_s28 + $0x48] sm:$0xff]  }
0x2aed   :  { %v3801_v51 = vpack.c.bf16 %v3799_v57, %v3799_v57 }
0x2aee   :  { %v3802_v28 = vpack.c.bf16 %v3800_v49, %v3800_v49  ;;  %v5577_v49 = vld [vmem:[%s7624_s28 + $0x8] sm:$0xff]  }
0x2af0   :  { %3972 = vmatprep.mubr.bf16.mxu0 %v3802_v28  ;;  %v5578_v28 = vld [vmem:[%s7624_s28 + $0x50] sm:$0xff]  }
0x2af1   :  { %3973 = vmatmul.mubr.bf16.vlgmr.msra.gmra.mrb[72].mxu0 %v3801_v51  ;;  %v5579_v51 = vld [vmem:[%s7624_s28 + $0x10] sm:$0xff]  }
0x2bc4   :  { %v4897_v55 = vpop.f32.mrb[72].mxu0 }
0x2bc5   :  { %v4898_v3 = vpop.f32.mrb[73].mxu0 }
0x2bc6   :  { %v4899_v24 = vadd.f32 %v4898_v3, %v4897_v55  ;;  %v4900_v0 = vpop.f32.mrb[74].mxu0  ;;  %v5580_v55 = vld [vmem:[%s7624_s28 + $0x58] sm:$0xff]   ;;  %v5582_v3 = vld [vmem:[%s7624_s28 + $0x60] sm:$0xff]  }
0x2bc7   :  { %v4901_v12 = vpop.f32.mrb[75].mxu0  ;;  %v5584_v0 = vld [vmem:[%s7624_s28 + $0x68] sm:$0xff]  }
0x2bc8   :  { %v3975_v26 = vadd.f32 %v4899_v24, %v4613_v63  ;;  %v5581_v63 = vld [vmem:[%s7624_s28 + $0x18] sm:$0xff]   ;;  %v5583_v24 = vld [vmem:[%s7624_s28 + $0x20] sm:$0xff]   ;;  %v5585_v12 = vld [vmem:[%s7624_s28 + $0x28] sm:$0xff]  }
0x2bca   :  { %v3980_v38 = vadd.f32 %v3975_v26, %v3691_v29  ;;  %v5586_v26 = vld [vmem:[%s7624_s28 + $0x70] sm:$0xff]  }
0x2bcc   :  { %v3981_v2 = vsel %vm360_vm1, %v3980_v38, 0.0 }
0x2bcd   :  { %3982 = vadd.xlane.f32.xlu0 %v3981_v2  ;;  %v5588_v2 = vld [vmem:[%s7624_s28 + $0x78] sm:$0xff]  }
0x2c5a   :  { %v3983_v4 = vpop.xlane.xlu0 %3982 }
0x2c5b   :  { %v3984_v10 = vmul.f32 0.015625, %v3983_v4  ;;  %v5589_v4 = vld [vmem:[%s7624_s28 + $0x38] sm:$0xff]  }
0x2c5d   :  { %v3985_v7 = vsub.f32 %v3980_v38, %v3984_v10  ;;  %v5587_v38 = vld [vmem:[%s7624_s28 + $0x30] sm:$0xff]  }
0x2c5e   :  { %v4034_v10 = vld [vmem:[#allocation24] sm:$0x3] }
0x2c5f   :  { %v3986_v31 = vmul.f32 %v3985_v7, %v3985_v7 }
0x2c61   :  { %v3987_v5 = vsel %vm360_vm1, %v3986_v31, 0.0  ;;  %v4043_v31 = vrot.slane %v4034_v10, %v6492_v37 }
0x2c62   :  { %3988 = vadd.xlane.f32.xlu0 %v3987_v5 }
0x2cef   :  { %v3989_v20 = vpop.xlane.xlu0 %3988 }
0x2cf0   :  { %v3990_v6 = vmul.f32 0.015625, %v3989_v20 }
0x2cf2   :  { %v3991_v42 = vadd.f32 1e-05, %v3990_v6 }
0x2cf4   :  { %5630 = vrsqrt.f32 %v3991_v42 }
0x2cfe   :  { %v5631_v13 = vpop.eup %5630 }
0x2cff   :  { %v3993_v40 = vmul.f32 %v5631_v13, %v3985_v7  ;;  %v4039_v7 = vrot.slane %v4034_v10, %v6487_v34 }
0x2d01   :  { %v3994_v14 = vmul.f32 %v7347_v39, %v3993_v40  ;;  %v5565_v39 = vld [vmem:[%s7623_s15 + $0x10] ss:$8 sps:$4 sm:$0xff]  }
0x2d02   :  { %4092 = vmatpush1.bf16.msra.mxu1 %v5565_v39 }
0x2d03   :  { %v3995_v15 = vadd.f32 %v7349_v9, %v3994_v14  ;;  %v5570_v9 = vld [vmem:[%s7623_s15 + $0x24] ss:$8 sps:$4 sm:$0xff]  }
0x2d04   :  { %4093 = vmatprep.subr.bf16.mxu1 %v5570_v9 }
0x2d05   :  { %v3996_v16 = vmul.f32 %v3995_v15, %v3995_v15 }
0x2d06   :  { %4094 = vmatpush1.bf16.msra.mxu1 %v5568_v8 }
0x2d07   :  { %v3997_v19 = vsel %vm360_vm1, %v3996_v16, 0.0  ;;  %4095 = vmatprep.subr.bf16.mxu1 %v5573_v32 }
0x2d08   :  { %3998 = vadd.xlane.f32.xlu1 %v3997_v19 }
0x2d0a   :  { %4096 = vmatpush1.bf16.msra.mxu1 %v5571_v25 }
0x2d0b   :  { %4903 = vmatprep.subr.bf16.mxu1 %v5574_v17 }
0x2d95   :  { %v3999_v33 = vpop.xlane.xlu1 %3998 }
0x2d96   :  { %5632 = vrsqrt.f32 %v3999_v33  ;;  %vm4002_vm3 = vcmp.eq.f32.partialorder %v3999_v33, inf  ;;  %v4005_v61 = vand.u32 2147483648, %v3999_v33  ;;  %vm4004_vm4 = vcmp.eq.f32.partialorder %v3999_v33, 0.0 }
0x2da0   :  { %v5633_v35 = vpop.eup %5632 }
0x2da1   :  { %v4001_v41 = vmul.f32 %v5633_v35, %v3999_v33 }
0x2da3   :  { %v4003_v45 = vsel %vm4002_vm3, %v3999_v33, %v4001_v41 }
0x2da4   :  { %v4006_v27 = vsel %vm4004_vm4, %v4005_v61, %v4003_v45 }
0x2da5   :  { %v4007_v36 = vrot.slane %v4006_v27, 4 }
0x2da7   :  { %v4008_v58 = vmax.f32 %v4006_v27, %v4007_v36 }
0x2da9   :  { %v4009_v59 = vrot.slane %v4008_v58, 2 }
0x2dab   :  { %v4010_v60 = vmax.f32 %v4008_v58, %v4009_v59 }
0x2dad   :  { %v4011_v30 = vrot.slane %v4010_v60, 1 }
0x2daf   :  { %v4012_v29 = vmax.f32 %v4010_v60, %v4011_v30 }
0x2db1   :  { %v4013_v18 = vsub.f32 %v4006_v27, %v4012_v29 }
0x2db3   :  { %v4014_v23 = vmul.f32 1.442695, %v4013_v18 }
0x2db5   :  { %5634 = vpow2.f32 %v4014_v23 }
0x2dbf   :  { %v5635_v21 = vpop.eup %5634 }
0x2dc0   :  { %v4016_v43 = vrot.slane %v5635_v21, 4 }
0x2dc2   :  { %v4017_v44 = vadd.f32 %v5635_v21, %v4016_v43 }
0x2dc4   :  { %v4018_v1 = vrot.slane %v4017_v44, 2 }
0x2dc6   :  { %v4019_v47 = vadd.f32 %v4018_v1, %v4017_v44 }
0x2dc8   :  { %v4020_v54 = vrot.slane %v4019_v47, 1 }
0x2dca   :  { %v4021_v48 = vadd.f32 %v4020_v54, %v4019_v47 }
0x2dcc   :  { %5636 = vrcp.f32 %v4021_v48 }
0x2dd6   :  { %v5637_v53 = vpop.eup %5636 }
0x2dd7   :  { %v4023_v50 = vmul.f32 %v5637_v53, %v5635_v21 }
0x2dd9   :  { %v4024_v52 = vmul.f32 %v4023_v50, %v3995_v15 }
0x2ddb   :  { %v4025_v57 = vpack.c.bf16 %v4024_v52, %v4024_v52 }
0x2ddd   :  { %4638 = vmatmul.mubr.msk.bf16.vlgmr.msra.gmra.mrb[80].mxu1 %vm360_vm1, %v4025_v57 }
0x2dde   :  { %4904 = vmatpush3.bf16.msra.mxu1 %v5575_v56 }
0x2ddf   :  { %4905 = vmatprep.subr.bf16.mxu1 %v5576_v46 }
0x2de2   :  { %4906 = vmatpush3.bf16.msra.mxu1 %v5577_v49 }
0x2de3   :  { %4907 = vmatprep.subr.bf16.mxu1 %v5578_v28 }
0x2de6   :  { %4908 = vmatpush3.bf16.msra.mxu1 %v5579_v51 }
0x2de7   :  { %4909 = vmatprep.subr.bf16.mxu1 %v5580_v55 }
0x2dea   :  { %4910 = vmatpush3.bf16.msra.mxu1 %v5581_v63 }
0x2deb   :  { %4911 = vmatprep.subr.bf16.mxu1 %v5582_v3 }
0x2dee   :  { %4912 = vmatpush3.bf16.msra.mxu1 %v5583_v24 }
0x2def   :  { %4913 = vmatprep.subr.bf16.mxu1 %v5584_v0 }
0x2df2   :  { %4914 = vmatpush3.bf16.msra.mxu1 %v5585_v12 }
0x2df3   :  { %4915 = vmatprep.subr.bf16.mxu1 %v5586_v26 }
0x2df6   :  { %4916 = vmatpush3.bf16.msra.mxu1 %v5587_v38 }
0x2df7   :  { %4917 = vmatprep.subr.bf16.mxu1 %v5588_v2 }
0x2dfa   :  { %4918 = vmatpush3.bf16.msra.mxu1 %v5589_v4 }
0x2eb0   :  { %v4123_v5 = vpop.f32.mrb[80].mxu1 }
0x2eb1   :  { %v4124_v20 = vadd.f32 %v4123_v5, %v4039_v7  ;;  %v4125_v6 = vpop.f32.mrb[81].mxu1 }
0x2eb2   :  { %v4126_v42 = vadd.f32 %v4125_v6, %v4043_v31  ;;  %v4127_v13 = vpop.f32.mrb[82].mxu1 }
0x2eb3   :  { %v4130_v40 = vmax.f32 %v4124_v20, 0.0  ;;  %v4128_v14 = vpop.f32.mrb[83].mxu1 }
0x2eb4   :  { %v4131_v15 = vmax.f32 %v4126_v42, 0.0 }
0x2eb5   :  { %v4132_v19 = vpack.c.bf16 %v4130_v40, %v4130_v40 }
0x2eb6   :  { %v4133_v16 = vpack.c.bf16 %v4131_v15, %v4131_v15 }
0x2eb8   :  { %4301 = vmatprep.mubr.bf16.mxu1 %v4133_v16 }
0x2eb9   :  { %4302 = vmatmul.mubr.bf16.vlgmr.msra.gmra.mrb[84].mxu1 %v4132_v19 }
0x2f8c   :  { %v4919_v62 = vpop.f32.mrb[84].mxu1 }
0x2f8d   :  { %v4920_v22 = vpop.f32.mrb[85].mxu1 }
0x2f8e   :  { %v4921_v39 = vadd.f32 %v4920_v22, %v4919_v62  ;;  %v4922_v9 = vpop.f32.mrb[86].mxu1 }
0x2f8f   :  { %v4923_v34 = vpop.f32.mrb[87].mxu1 }
0x2f90   :  { %v4304_v8 = vadd.f32 %v4921_v39, %v4639_v11 }
0x2f92   :  { %4309 = vst [vmem:[%s7625_s8] sm:$0xff] %v4304_v8 }
0x2f93   :  { %4314 = vsyncpa [#allocation3], 1 }
0x2f94   :  { %4315 = vsyncpa [#allocation5], 1 }
0x2f95   :  { %4316 = vsyncpa [#allocation8], 1 }
0x2f96   :  { %4317 = vsyncpa [#allocation11], 1 }
0x2f97   :  { %4318 = vsyncpa [#allocation14], 1 }
0x2f98   :  { %4319 = vsyncpa [#allocation17], 1 }
0x2f99   :  { %4320 = vsyncpa [#allocation20], 1 }
0x2f9a   :  { %4321 = vsyncpa [#allocation23], 1 }
0x2f9b   :  { %4322 = vsyncpa [#allocation26], 1 }

</bundles_post_ra>
